<compile_context>
chip_gen: v5e
topology: v5e:2x2
jax: 0.10.0
libtpu: 0.0.40
codegen_flags: <defaults>
</compile_context>

<pallas_src>
import functools
import numpy as np
import jax
import jax.numpy as jnp
from jax import lax
from jax.experimental import pallas as pl
from jax.experimental.pallas import tpu as pltpu


def _round_up(x, m):
    return (x + m - 1) // m * m


def _elu(v):
    # F.elu, alpha=1.0
    return jnp.where(v > 0, v, jnp.exp(jnp.minimum(v, 0.0)) - 1.0)


def _fused_conv3(x, w_fused, b, *, axis, dil, size):
    """3-tap separable conv (valid) along `axis`; all taps fused into one MXU matmul.

    x:       (R, S, Cp) f32 activation tile
    w_fused: (3*Cp, Cp) bf16 weight, tap-major rows
    b:       (1, Cp)    f32 bias
    Returns an f32 array with `size` entries along `axis` (single large-M matmul,
    bf16 operands, f32 accumulation).
    """
    c = x.shape[-1]
    taps = [lax.slice_in_dim(x, k * dil, k * dil + size, axis=axis) for k in range(3)]
    xs = jnp.concatenate(taps, axis=-1)                      # (r, s, 3*Cp), lane-aligned
    r, s, _ = xs.shape
    xs2 = xs.reshape(r * s, 3 * c).astype(jnp.bfloat16)      # one (M, 3*Cp) operand
    y = jnp.dot(xs2, w_fused, preferred_element_type=jnp.float32) + b
    return y.reshape(r, s, c)


def _nb1d_kernel(x_ref, w1, b1, w2, b2, s1, t1, w3, b3, w4, b4, s2, t2, o_ref,
                 *, dilated, tile_h, img_h, img_w, w_mid):
    d = dilated
    pad = d + 1                      # H halo rows == left zero-pad columns on W
    rows_mid = tile_h + 2 * d        # rows carried between the two conv pairs

    x = x_ref[...]                   # (tile_h + 2*pad, W_in, Cp) f32

    # conv3x1_1 + ELU (valid over the H halo)
    a = _elu(_fused_conv3(x, w1[...], b1[...], axis=0, dil=1, size=rows_mid))
    # columns outside the image act as conv1x3_1's zero padding
    col = lax.broadcasted_iota(jnp.int32, (1, a.shape[1], 1), 1)
    a = jnp.where((col >= pad) & (col < pad + img_w), a, 0.0)

    # conv1x3_1 (valid over the W halo) + folded BN1 + ELU
    y = _fused_conv3(a, w2[...], b2[...], axis=1, dil=1, size=w_mid)
    y = _elu(y * s1[...] + t1[...])
    # rows outside the image act as conv3x1_2's zero padding
    row0 = pl.program_id(1) * tile_h - d
    row = lax.broadcasted_iota(jnp.int32, (rows_mid, 1, 1), 0) + row0
    y = jnp.where((row >= 0) & (row < img_h), y, 0.0)

    # conv3x1_2 (dilated) + ELU
    z = _elu(_fused_conv3(y, w3[...], b3[...], axis=0, dil=d, size=tile_h))
    # columns outside the image act as conv1x3_2's zero padding
    col2 = lax.broadcasted_iota(jnp.int32, (1, z.shape[1], 1), 1)
    z = jnp.where((col2 >= d) & (col2 < d + img_w), z, 0.0)

    # conv1x3_2 (dilated) + folded BN2
    out = _fused_conv3(z, w4[...], b4[...], axis=1, dil=d, size=img_w)
    out = out * s2[...] + t2[...]

    # TODO(synk): training-mode BatchNorm (batch stats) and Dropout2d are not
    # implemented; eval semantics (running stats, dropprob == 0 branch) are reproduced.
    x_c = x[pad:pad + tile_h, pad:pad + img_w, :]            # residual in f32
    o_ref[...] = _elu(out + x_c).astype(o_ref.dtype)


def _pick_tile_h(H, w_in, c_pad, budget_bytes=6 * 1024 * 1024):
    # ~14 live tile-row-sized buffers per step (input, stacked matmul operands,
    # per-stage outputs, output) -> keep well under the scoped VMEM limit.
    per_row = w_in * c_pad * 4 * 14
    cap = max(1, budget_bytes // per_row)
    tile = 1
    for cand in range(1, H + 1):
        if H % cand == 0 and cand <= cap:
            tile = cand
    return tile


def non_bottleneck_1d_pallas(x_nhwc, p, dilated, tile_h=None):
    N, H, W, C = x_nhwc.shape
    d = int(dilated)
    pad = d + 1                                  # H halo / left W zero-pad
    cp = _round_up(C, 128)                       # lane-dense channels
    w_mid = _round_up(W + 2 * d, 8)              # width carried between the W-convs
    w_in = _round_up(w_mid + 2, 8)               # width of the padded input tile
    pad_r = w_in - W - pad

    if tile_h is None:
        tile_h = _pick_tile_h(H, w_in, cp)
    if H % tile_h != 0:
        raise ValueError("tile_h must divide H")
    n_t = H // tile_h
    th_in = tile_h + 2 * pad

    eps = 1e-3
    f32 = jnp.float32

    def vec(v):                                  # (C,) -> (1, Cp) f32, zero padded
        return jnp.pad(v.astype(f32), (0, cp - C)).reshape(1, cp)

    inv1 = p['g1'] / jnp.sqrt(p['v1'] + eps)
    inv2 = p['g2'] / jnp.sqrt(p['v2'] + eps)
    s1, t1 = vec(inv1), vec(p['be1'] - p['m1'] * inv1)       # folded BN (inference)
    s2, t2 = vec(inv2), vec(p['be2'] - p['m2'] * inv2)

    def fuse(taps):                              # 3 x (Ci, Co) -> (3*Cp, Cp) bf16
        blocks = [jnp.pad(w, ((0, cp - C), (0, cp - C))) for w in taps]
        return jnp.concatenate(blocks, axis=0).astype(jnp.bfloat16)

    w1 = fuse([p['w1'][:, :, k, 0].T for k in range(3)])     # (3,1) conv, tap-major
    w2 = fuse([p['w2'][:, :, 0, k].T for k in range(3)])     # (1,3) conv
    w3 = fuse([p['w3'][:, :, k, 0].T for k in range(3)])
    w4 = fuse([p['w4'][:, :, 0, k].T for k in range(3)])

    # Pad once in the wrapper (H halo + W halo + channel lanes) and lay out the
    # overlapping H windows so every grid step is a plain Blocked, pipelined DMA.
    x_p = jnp.pad(x_nhwc.astype(f32),
                  ((0, 0), (pad, pad), (pad, pad_r), (0, cp - C)))
    xt = jnp.stack([lax.slice_in_dim(x_p, t * tile_h, t * tile_h + th_in, axis=1)
                    for t in range(n_t)], axis=1)            # (N, n_t, th_in, w_in, Cp)

    args = (xt,
            w1, vec(p['b1']), w2, vec(p['b2']), s1, t1,
            w3, vec(p['b3']), w4, vec(p['b4']), s2, t2)

    # (v5e) if the xprof trace shows the input DMA exposed, add
    #       pipeline_mode=pl.Buffered(3) to x_spec.
    x_spec = pl.BlockSpec((None, None, th_in, w_in, cp), lambda n, t: (n, t, 0, 0, 0))
    w_spec = pl.BlockSpec((3 * cp, cp), lambda n, t: (0, 0))
    v_spec = pl.BlockSpec((1, cp), lambda n, t: (0, 0))
    in_specs = [x_spec,
                w_spec, v_spec, w_spec, v_spec, v_spec, v_spec,
                w_spec, v_spec, w_spec, v_spec, v_spec, v_spec]
    out_spec = pl.BlockSpec((None, tile_h, W, cp), lambda n, t: (n, t, 0, 0))

    cost = pl.CostEstimate(
        flops=4 * 2 * 3 * cp * cp * H * W * N,               # 4 separable convs, 3 fused taps
        transcendentals=4 * N * H * W * cp,                  # 4 ELUs
        bytes_accessed=(N * n_t * th_in * w_in * cp + N * H * W * cp) * 4
                       + 4 * 3 * cp * cp * 2 + 8 * cp * 4)

    out = pl.pallas_call(
        functools.partial(_nb1d_kernel, dilated=d, tile_h=tile_h,
                          img_h=H, img_w=W, w_mid=w_mid),
        out_shape=jax.ShapeDtypeStruct((N, H, W, cp), f32),
        grid_spec=pltpu.PrefetchScalarGridSpec(
            num_scalar_prefetch=0,
            grid=(N, n_t),
            in_specs=in_specs,
            out_specs=out_spec),
        compiler_params=pltpu.CompilerParams(
            dimension_semantics=("parallel", "parallel"),
            vmem_limit_bytes=48 * 1024 * 1024),              # headroom under v7x's 64 MiB
        cost_estimate=cost,
    )(*args)
    return out[..., :C]


def ref_forward_nchw(x, p, dilated):
    # Pure-JAX reference matching the PyTorch module (eval mode, dropprob=0).
    eps = 1e-3

    def conv(x, w, b, padhw, dil):
        y = lax.conv_general_dilated(x, w, (1, 1),
                                     [(padhw[0], padhw[0]), (padhw[1], padhw[1])],
                                     rhs_dilation=dil,
                                     dimension_numbers=('NCHW', 'OIHW', 'NCHW'))
        return y + b[None, :, None, None]

    def bn(x, g, be, m, v):
        return ((x - m[None, :, None, None]) / jnp.sqrt(v[None, :, None, None] + eps)
                * g[None, :, None, None] + be[None, :, None, None])

    elu = lambda v: jnp.where(v > 0, v, jnp.exp(jnp.minimum(v, 0.0)) - 1.0)
    y = elu(conv(x, p['w1'], p['b1'], (1, 0), (1, 1)))
    y = conv(y, p['w2'], p['b2'], (0, 1), (1, 1))
    y = elu(bn(y, p['g1'], p['be1'], p['m1'], p['v1']))
    y = elu(conv(y, p['w3'], p['b3'], (dilated, 0), (dilated, 1)))
    y = conv(y, p['w4'], p['b4'], (0, dilated), (1, dilated))
    y = bn(y, p['g2'], p['be2'], p['m2'], p['v2'])
    return elu(y + x)


if __name__ == "__main__":
    N, C, H, W = 2, 4, 16, 16
    dilated = 2
    # dropprob = 0.0 -> dropout branch is skipped exactly as in the PyTorch forward.

    keys = jax.random.split(jax.random.PRNGKey(0), 17)
    f32 = jnp.float32
    p = {
        'w1': 0.2 * jax.random.normal(keys[0], (C, C, 3, 1), f32),
        'b1': 0.1 * jax.random.normal(keys[1], (C,), f32),
        'w2': 0.2 * jax.random.normal(keys[2], (C, C, 1, 3), f32),
        'b2': 0.1 * jax.random.normal(keys[3], (C,), f32),
        'g1': 1.0 + 0.1 * jax.random.normal(keys[4], (C,), f32),
        'be1': 0.1 * jax.random.normal(keys[5], (C,), f32),
        'm1': 0.1 * jax.random.normal(keys[6], (C,), f32),
        'v1': 0.5 + jnp.abs(jax.random.normal(keys[7], (C,), f32)),
        'w3': 0.2 * jax.random.normal(keys[8], (C, C, 3, 1), f32),
        'b3': 0.1 * jax.random.normal(keys[9], (C,), f32),
        'w4': 0.2 * jax.random.normal(keys[10], (C, C, 1, 3), f32),
        'b4': 0.1 * jax.random.normal(keys[11], (C,), f32),
        'g2': 1.0 + 0.1 * jax.random.normal(keys[12], (C,), f32),
        'be2': 0.1 * jax.random.normal(keys[13], (C,), f32),
        'm2': 0.1 * jax.random.normal(keys[14], (C,), f32),
        'v2': 0.5 + jnp.abs(jax.random.normal(keys[15], (C,), f32)),
    }
    x_nchw = jax.random.normal(keys[16], (N, C, H, W), f32)   # PyTorch layout
    x_nhwc = jnp.transpose(x_nchw, (0, 2, 3, 1))              # kernel layout

    out_nhwc = jax.block_until_ready(
        non_bottleneck_1d_pallas(x_nhwc, p, dilated, tile_h=8))
    out_nchw = jnp.transpose(out_nhwc, (0, 3, 1, 2))

    ref = ref_forward_nchw(x_nchw, p, dilated)
    # bf16 MXU operands (f32 accumulation / f32 elementwise) -> relaxed tolerance.
    np.testing.assert_allclose(np.asarray(out_nchw), np.asarray(ref),
                               rtol=5e-2, atol=5e-2)
    print("KERNEL_OK")
</pallas_src>

<mosaic_0001>
module attributes {stable_mosaic.version = 11 : i64} {
  func.func @_nb1d_kernel(%arg0: i32, %arg1: i32, %arg2: memref<1x1x14x32x128xf32, #tpu.memory_space<vmem>>, %arg3: memref<384x128xbf16, #tpu.memory_space<vmem>>, %arg4: memref<1x128xf32, #tpu.memory_space<vmem>>, %arg5: memref<384x128xbf16, #tpu.memory_space<vmem>>, %arg6: memref<1x128xf32, #tpu.memory_space<vmem>>, %arg7: memref<1x128xf32, #tpu.memory_space<vmem>>, %arg8: memref<1x128xf32, #tpu.memory_space<vmem>>, %arg9: memref<384x128xbf16, #tpu.memory_space<vmem>>, %arg10: memref<1x128xf32, #tpu.memory_space<vmem>>, %arg11: memref<384x128xbf16, #tpu.memory_space<vmem>>, %arg12: memref<1x128xf32, #tpu.memory_space<vmem>>, %arg13: memref<1x128xf32, #tpu.memory_space<vmem>>, %arg14: memref<1x128xf32, #tpu.memory_space<vmem>>, %arg15: memref<1x8x16x128xf32, #tpu.memory_space<vmem>>) attributes {dimension_semantics = [#tpu.dimension_semantics<parallel>, #tpu.dimension_semantics<parallel>], iteration_bounds = array<i64: 2, 2>, scalar_prefetch = 0 : i64, scratch_operands = 0 : i64, tpu.core_type = #tpu.core_type<tc>, window_params = [{transform_indices = @transform_0, window_bounds = array<i64: 1, 1, 14, 32, 128>}, {pipeline_mode = #tpu.pipeline_mode<synchronous>, transform_indices = @transform_1, window_bounds = array<i64: 384, 128>}, {pipeline_mode = #tpu.pipeline_mode<synchronous>, transform_indices = @transform_2, window_bounds = array<i64: 1, 128>}, {pipeline_mode = #tpu.pipeline_mode<synchronous>, transform_indices = @transform_3, window_bounds = array<i64: 384, 128>}, {pipeline_mode = #tpu.pipeline_mode<synchronous>, transform_indices = @transform_4, window_bounds = array<i64: 1, 128>}, {pipeline_mode = #tpu.pipeline_mode<synchronous>, transform_indices = @transform_5, window_bounds = array<i64: 1, 128>}, {pipeline_mode = #tpu.pipeline_mode<synchronous>, transform_indices = @transform_6, window_bounds = array<i64: 1, 128>}, {pipeline_mode = #tpu.pipeline_mode<synchronous>, transform_indices = @transform_7, window_bounds = array<i64: 384, 128>}, {pipeline_mode = #tpu.pipeline_mode<synchronous>, transform_indices = @transform_8, window_bounds = array<i64: 1, 128>}, {pipeline_mode = #tpu.pipeline_mode<synchronous>, transform_indices = @transform_9, window_bounds = array<i64: 384, 128>}, {pipeline_mode = #tpu.pipeline_mode<synchronous>, transform_indices = @transform_10, window_bounds = array<i64: 1, 128>}, {pipeline_mode = #tpu.pipeline_mode<synchronous>, transform_indices = @transform_11, window_bounds = array<i64: 1, 128>}, {pipeline_mode = #tpu.pipeline_mode<synchronous>, transform_indices = @transform_12, window_bounds = array<i64: 1, 128>}, {transform_indices = @transform_13, window_bounds = array<i64: 1, 8, 16, 128>}]} {
    %c0 = arith.constant 0 : index
    %c0_0 = arith.constant 0 : index
    %c0_1 = arith.constant 0 : index
    %c0_2 = arith.constant 0 : index
    %c0_3 = arith.constant 0 : index
    %0 = vector.load %arg2[%c0, %c0_0, %c0_1, %c0_2, %c0_3] : memref<1x1x14x32x128xf32, #tpu.memory_space<vmem>>, vector<1x1x14x32x128xf32>
    %1 = vector.shape_cast %0 : vector<1x1x14x32x128xf32> to vector<14x32x128xf32>
    %c0_4 = arith.constant 0 : index
    %c0_5 = arith.constant 0 : index
    %2 = vector.load %arg3[%c0_4, %c0_5] : memref<384x128xbf16, #tpu.memory_space<vmem>>, vector<384x128xbf16>
    %c0_6 = arith.constant 0 : index
    %c0_7 = arith.constant 0 : index
    %3 = vector.load %arg4[%c0_6, %c0_7] : memref<1x128xf32, #tpu.memory_space<vmem>>, vector<1x128xf32>
    %4 = vector.extract_strided_slice %1 {offsets = [0, 0, 0], sizes = [12, 32, 128], strides = [1, 1, 1]} : vector<14x32x128xf32> to vector<12x32x128xf32>
    %5 = vector.extract_strided_slice %1 {offsets = [1, 0, 0], sizes = [12, 32, 128], strides = [1, 1, 1]} : vector<14x32x128xf32> to vector<12x32x128xf32>
    %6 = vector.extract_strided_slice %1 {offsets = [2, 0, 0], sizes = [12, 32, 128], strides = [1, 1, 1]} : vector<14x32x128xf32> to vector<12x32x128xf32>
    %7 = tpu.concatenate %4, %5, %6 in 2 : vector<12x32x128xf32>, vector<12x32x128xf32>, vector<12x32x128xf32> -> vector<12x32x384xf32>
    %8 = vector.shape_cast %7 : vector<12x32x384xf32> to vector<384x384xf32>
    %9 = arith.truncf %8 : vector<384x384xf32> to vector<384x384xbf16>
    %cst = arith.constant dense<0.000000e+00> : vector<384x128xf32>
    %10 = tpu.matmul %9, %2, %cst {dimension_numbers = #tpu.dot_dimension_numbers<[1], [0], [0], [1], [0, 0, 1, 1], [], []>} : vector<384x384xbf16>, vector<384x128xbf16>, vector<384x128xf32> -> vector<384x128xf32>
    %11 = vector.broadcast %3 : vector<1x128xf32> to vector<384x128xf32>
    %12 = arith.addf %10, %11 : vector<384x128xf32>
    %13 = vector.shape_cast %12 : vector<384x128xf32> to vector<12x32x128xf32>
    %cst_8 = arith.constant 0.000000e+00 : f32
    %14 = vector.broadcast %cst_8 : f32 to vector<12x32x128xf32>
    %15 = arith.cmpf ogt, %13, %14 : vector<12x32x128xf32>
    %cst_9 = arith.constant 0.000000e+00 : f32
    %16 = vector.broadcast %cst_9 : f32 to vector<12x32x128xf32>
    %17 = arith.minimumf %13, %16 : vector<12x32x128xf32>
    %18 = math.exp %17 : vector<12x32x128xf32>
    %cst_10 = arith.constant 1.000000e+00 : f32
    %19 = vector.broadcast %cst_10 : f32 to vector<12x32x128xf32>
    %20 = arith.subf %18, %19 : vector<12x32x128xf32>
    %21 = arith.select %15, %13, %20 : vector<12x32x128xi1>, vector<12x32x128xf32>
    %22 = tpu.iota {dimensions = array<i32: 1>} : vector<1x32x1xi32>
    %c3_i32 = arith.constant 3 : i32
    %23 = vector.broadcast %c3_i32 : i32 to vector<1x32x1xi32>
    %24 = arith.cmpi sge, %22, %23 : vector<1x32x1xi32>
    %c19_i32 = arith.constant 19 : i32
    %25 = vector.broadcast %c19_i32 : i32 to vector<1x32x1xi32>
    %26 = arith.cmpi slt, %22, %25 : vector<1x32x1xi32>
    %27 = arith.andi %24, %26 : vector<1x32x1xi1>
    %cst_11 = arith.constant 0.000000e+00 : f32
    %28 = vector.shape_cast %27 : vector<1x32x1xi1> to vector<1x32x1xi1>
    %29 = vector.broadcast %28 : vector<1x32x1xi1> to vector<12x32x128xi1>
    %30 = vector.broadcast %cst_11 : f32 to vector<12x32x128xf32>
    %31 = arith.select %29, %21, %30 : vector<12x32x128xi1>, vector<12x32x128xf32>
    %c0_12 = arith.constant 0 : index
    %c0_13 = arith.constant 0 : index
    %32 = vector.load %arg5[%c0_12, %c0_13] : memref<384x128xbf16, #tpu.memory_space<vmem>>, vector<384x128xbf16>
    %c0_14 = arith.constant 0 : index
    %c0_15 = arith.constant 0 : index
    %33 = vector.load %arg6[%c0_14, %c0_15] : memref<1x128xf32, #tpu.memory_space<vmem>>, vector<1x128xf32>
    %34 = vector.extract_strided_slice %31 {offsets = [0, 0, 0], sizes = [12, 24, 128], strides = [1, 1, 1]} : vector<12x32x128xf32> to vector<12x24x128xf32>
    %35 = vector.extract_strided_slice %31 {offsets = [0, 1, 0], sizes = [12, 24, 128], strides = [1, 1, 1]} : vector<12x32x128xf32> to vector<12x24x128xf32>
    %36 = vector.extract_strided_slice %31 {offsets = [0, 2, 0], sizes = [12, 24, 128], strides = [1, 1, 1]} : vector<12x32x128xf32> to vector<12x24x128xf32>
    %37 = tpu.concatenate %34, %35, %36 in 2 : vector<12x24x128xf32>, vector<12x24x128xf32>, vector<12x24x128xf32> -> vector<12x24x384xf32>
    %38 = vector.shape_cast %37 : vector<12x24x384xf32> to vector<288x384xf32>
    %39 = arith.truncf %38 : vector<288x384xf32> to vector<288x384xbf16>
    %cst_16 = arith.constant dense<0.000000e+00> : vector<288x128xf32>
    %40 = tpu.matmul %39, %32, %cst_16 {dimension_numbers = #tpu.dot_dimension_numbers<[1], [0], [0], [1], [0, 0, 1, 1], [], []>} : vector<288x384xbf16>, vector<384x128xbf16>, vector<288x128xf32> -> vector<288x128xf32>
    %41 = vector.broadcast %33 : vector<1x128xf32> to vector<288x128xf32>
    %42 = arith.addf %40, %41 : vector<288x128xf32>
    %43 = vector.shape_cast %42 : vector<288x128xf32> to vector<12x24x128xf32>
    %c0_17 = arith.constant 0 : index
    %c0_18 = arith.constant 0 : index
    %44 = vector.load %arg7[%c0_17, %c0_18] : memref<1x128xf32, #tpu.memory_space<vmem>>, vector<1x128xf32>
    %45 = vector.shape_cast %44 : vector<1x128xf32> to vector<1x1x128xf32>
    %46 = vector.broadcast %45 : vector<1x1x128xf32> to vector<12x24x128xf32>
    %47 = arith.mulf %43, %46 : vector<12x24x128xf32>
    %c0_19 = arith.constant 0 : index
    %c0_20 = arith.constant 0 : index
    %48 = vector.load %arg8[%c0_19, %c0_20] : memref<1x128xf32, #tpu.memory_space<vmem>>, vector<1x128xf32>
    %49 = vector.shape_cast %48 : vector<1x128xf32> to vector<1x1x128xf32>
    %50 = vector.broadcast %49 : vector<1x1x128xf32> to vector<12x24x128xf32>
    %51 = arith.addf %47, %50 : vector<12x24x128xf32>
    %cst_21 = arith.constant 0.000000e+00 : f32
    %52 = vector.broadcast %cst_21 : f32 to vector<12x24x128xf32>
    %53 = arith.cmpf ogt, %51, %52 : vector<12x24x128xf32>
    %cst_22 = arith.constant 0.000000e+00 : f32
    %54 = vector.broadcast %cst_22 : f32 to vector<12x24x128xf32>
    %55 = arith.minimumf %51, %54 : vector<12x24x128xf32>
    %56 = math.exp %55 : vector<12x24x128xf32>
    %cst_23 = arith.constant 1.000000e+00 : f32
    %57 = vector.broadcast %cst_23 : f32 to vector<12x24x128xf32>
    %58 = arith.subf %56, %57 : vector<12x24x128xf32>
    %59 = arith.select %53, %51, %58 : vector<12x24x128xi1>, vector<12x24x128xf32>
    %c8_i32 = arith.constant 8 : i32
    %60 = arith.muli %arg1, %c8_i32 : i32
    %c2_i32 = arith.constant 2 : i32
    %61 = arith.subi %60, %c2_i32 : i32
    %62 = tpu.iota {dimensions = array<i32: 0>} : vector<12x1x1xi32>
    %63 = vector.broadcast %61 : i32 to vector<12x1x1xi32>
    %64 = arith.addi %62, %63 : vector<12x1x1xi32>
    %c0_i32 = arith.constant 0 : i32
    %65 = vector.broadcast %c0_i32 : i32 to vector<12x1x1xi32>
    %66 = arith.cmpi sge, %64, %65 : vector<12x1x1xi32>
    %c16_i32 = arith.constant 16 : i32
    %67 = vector.broadcast %c16_i32 : i32 to vector<12x1x1xi32>
    %68 = arith.cmpi slt, %64, %67 : vector<12x1x1xi32>
    %69 = arith.andi %66, %68 : vector<12x1x1xi1>
    %cst_24 = arith.constant 0.000000e+00 : f32
    %70 = vector.shape_cast %69 : vector<12x1x1xi1> to vector<12x1x1xi1>
    %71 = vector.broadcast %70 : vector<12x1x1xi1> to vector<12x24x128xi1>
    %72 = vector.broadcast %cst_24 : f32 to vector<12x24x128xf32>
    %73 = arith.select %71, %59, %72 : vector<12x24x128xi1>, vector<12x24x128xf32>
    %c0_25 = arith.constant 0 : index
    %c0_26 = arith.constant 0 : index
    %74 = vector.load %arg9[%c0_25, %c0_26] : memref<384x128xbf16, #tpu.memory_space<vmem>>, vector<384x128xbf16>
    %c0_27 = arith.constant 0 : index
    %c0_28 = arith.constant 0 : index
    %75 = vector.load %arg10[%c0_27, %c0_28] : memref<1x128xf32, #tpu.memory_space<vmem>>, vector<1x128xf32>
    %76 = vector.extract_strided_slice %73 {offsets = [0, 0, 0], sizes = [8, 24, 128], strides = [1, 1, 1]} : vector<12x24x128xf32> to vector<8x24x128xf32>
    %77 = vector.extract_strided_slice %73 {offsets = [2, 0, 0], sizes = [8, 24, 128], strides = [1, 1, 1]} : vector<12x24x128xf32> to vector<8x24x128xf32>
    %78 = vector.extract_strided_slice %73 {offsets = [4, 0, 0], sizes = [8, 24, 128], strides = [1, 1, 1]} : vector<12x24x128xf32> to vector<8x24x128xf32>
    %79 = tpu.concatenate %76, %77, %78 in 2 : vector<8x24x128xf32>, vector<8x24x128xf32>, vector<8x24x128xf32> -> vector<8x24x384xf32>
    %80 = vector.shape_cast %79 : vector<8x24x384xf32> to vector<192x384xf32>
    %81 = arith.truncf %80 : vector<192x384xf32> to vector<192x384xbf16>
    %cst_29 = arith.constant dense<0.000000e+00> : vector<192x128xf32>
    %82 = tpu.matmul %81, %74, %cst_29 {dimension_numbers = #tpu.dot_dimension_numbers<[1], [0], [0], [1], [0, 0, 1, 1], [], []>} : vector<192x384xbf16>, vector<384x128xbf16>, vector<192x128xf32> -> vector<192x128xf32>
    %83 = vector.broadcast %75 : vector<1x128xf32> to vector<192x128xf32>
    %84 = arith.addf %82, %83 : vector<192x128xf32>
    %85 = vector.shape_cast %84 : vector<192x128xf32> to vector<8x24x128xf32>
    %cst_30 = arith.constant 0.000000e+00 : f32
    %86 = vector.broadcast %cst_30 : f32 to vector<8x24x128xf32>
    %87 = arith.cmpf ogt, %85, %86 : vector<8x24x128xf32>
    %cst_31 = arith.constant 0.000000e+00 : f32
    %88 = vector.broadcast %cst_31 : f32 to vector<8x24x128xf32>
    %89 = arith.minimumf %85, %88 : vector<8x24x128xf32>
    %90 = math.exp %89 : vector<8x24x128xf32>
    %cst_32 = arith.constant 1.000000e+00 : f32
    %91 = vector.broadcast %cst_32 : f32 to vector<8x24x128xf32>
    %92 = arith.subf %90, %91 : vector<8x24x128xf32>
    %93 = arith.select %87, %85, %92 : vector<8x24x128xi1>, vector<8x24x128xf32>
    %94 = tpu.iota {dimensions = array<i32: 1>} : vector<1x24x1xi32>
    %c2_i32_33 = arith.constant 2 : i32
    %95 = vector.broadcast %c2_i32_33 : i32 to vector<1x24x1xi32>
    %96 = arith.cmpi sge, %94, %95 : vector<1x24x1xi32>
    %c18_i32 = arith.constant 18 : i32
    %97 = vector.broadcast %c18_i32 : i32 to vector<1x24x1xi32>
    %98 = arith.cmpi slt, %94, %97 : vector<1x24x1xi32>
    %99 = arith.andi %96, %98 : vector<1x24x1xi1>
    %cst_34 = arith.constant 0.000000e+00 : f32
    %100 = vector.shape_cast %99 : vector<1x24x1xi1> to vector<1x24x1xi1>
    %101 = vector.broadcast %100 : vector<1x24x1xi1> to vector<8x24x128xi1>
    %102 = vector.broadcast %cst_34 : f32 to vector<8x24x128xf32>
    %103 = arith.select %101, %93, %102 : vector<8x24x128xi1>, vector<8x24x128xf32>
    %c0_35 = arith.constant 0 : index
    %c0_36 = arith.constant 0 : index
    %104 = vector.load %arg11[%c0_35, %c0_36] : memref<384x128xbf16, #tpu.memory_space<vmem>>, vector<384x128xbf16>
    %c0_37 = arith.constant 0 : index
    %c0_38 = arith.constant 0 : index
    %105 = vector.load %arg12[%c0_37, %c0_38] : memref<1x128xf32, #tpu.memory_space<vmem>>, vector<1x128xf32>
    %106 = vector.extract_strided_slice %103 {offsets = [0, 0, 0], sizes = [8, 16, 128], strides = [1, 1, 1]} : vector<8x24x128xf32> to vector<8x16x128xf32>
    %107 = vector.extract_strided_slice %103 {offsets = [0, 2, 0], sizes = [8, 16, 128], strides = [1, 1, 1]} : vector<8x24x128xf32> to vector<8x16x128xf32>
    %108 = vector.extract_strided_slice %103 {offsets = [0, 4, 0], sizes = [8, 16, 128], strides = [1, 1, 1]} : vector<8x24x128xf32> to vector<8x16x128xf32>
    %109 = tpu.concatenate %106, %107, %108 in 2 : vector<8x16x128xf32>, vector<8x16x128xf32>, vector<8x16x128xf32> -> vector<8x16x384xf32>
    %110 = vector.shape_cast %109 : vector<8x16x384xf32> to vector<128x384xf32>
    %111 = arith.truncf %110 : vector<128x384xf32> to vector<128x384xbf16>
    %cst_39 = arith.constant dense<0.000000e+00> : vector<128x128xf32>
    %112 = tpu.matmul %111, %104, %cst_39 {dimension_numbers = #tpu.dot_dimension_numbers<[1], [0], [0], [1], [0, 0, 1, 1], [], []>} : vector<128x384xbf16>, vector<384x128xbf16>, vector<128x128xf32> -> vector<128x128xf32>
    %113 = vector.broadcast %105 : vector<1x128xf32> to vector<128x128xf32>
    %114 = arith.addf %112, %113 : vector<128x128xf32>
    %115 = vector.shape_cast %114 : vector<128x128xf32> to vector<8x16x128xf32>
    %c0_40 = arith.constant 0 : index
    %c0_41 = arith.constant 0 : index
    %116 = vector.load %arg13[%c0_40, %c0_41] : memref<1x128xf32, #tpu.memory_space<vmem>>, vector<1x128xf32>
    %117 = vector.shape_cast %116 : vector<1x128xf32> to vector<1x1x128xf32>
    %118 = vector.broadcast %117 : vector<1x1x128xf32> to vector<8x16x128xf32>
    %119 = arith.mulf %115, %118 : vector<8x16x128xf32>
    %c0_42 = arith.constant 0 : index
    %c0_43 = arith.constant 0 : index
    %120 = vector.load %arg14[%c0_42, %c0_43] : memref<1x128xf32, #tpu.memory_space<vmem>>, vector<1x128xf32>
    %121 = vector.shape_cast %120 : vector<1x128xf32> to vector<1x1x128xf32>
    %122 = vector.broadcast %121 : vector<1x1x128xf32> to vector<8x16x128xf32>
    %123 = arith.addf %119, %122 : vector<8x16x128xf32>
    %124 = vector.extract_strided_slice %1 {offsets = [3, 3, 0], sizes = [8, 16, 128], strides = [1, 1, 1]} : vector<14x32x128xf32> to vector<8x16x128xf32>
    %125 = arith.addf %123, %124 : vector<8x16x128xf32>
    %cst_44 = arith.constant 0.000000e+00 : f32
    %126 = vector.broadcast %cst_44 : f32 to vector<8x16x128xf32>
    %127 = arith.cmpf ogt, %125, %126 : vector<8x16x128xf32>
    %cst_45 = arith.constant 0.000000e+00 : f32
    %128 = vector.broadcast %cst_45 : f32 to vector<8x16x128xf32>
    %129 = arith.minimumf %125, %128 : vector<8x16x128xf32>
    %130 = math.exp %129 : vector<8x16x128xf32>
    %cst_46 = arith.constant 1.000000e+00 : f32
    %131 = vector.broadcast %cst_46 : f32 to vector<8x16x128xf32>
    %132 = arith.subf %130, %131 : vector<8x16x128xf32>
    %133 = arith.select %127, %125, %132 : vector<8x16x128xi1>, vector<8x16x128xf32>
    %c0_47 = arith.constant 0 : index
    %c0_48 = arith.constant 0 : index
    %c0_49 = arith.constant 0 : index
    %c0_50 = arith.constant 0 : index
    %134 = vector.load %arg15[%c0_47, %c0_48, %c0_49, %c0_50] : memref<1x8x16x128xf32, #tpu.memory_space<vmem>>, vector<1x8x16x128xf32>
    %135 = vector.shape_cast %134 : vector<1x8x16x128xf32> to vector<8x16x128xf32>
    %136 = vector.shape_cast %133 : vector<8x16x128xf32> to vector<1x8x16x128xf32>
    tpu.vector_store %arg15[%c0_47, %c0_48, %c0_49, %c0_50], %136 {strides = array<i32>} : memref<1x8x16x128xf32, #tpu.memory_space<vmem>>, vector<1x8x16x128xf32>,
    return
  }
  func.func @transform_0(%arg0: i32, %arg1: i32) -> (i32, i32, i32, i32, i32) {
    %c0_i32 = arith.constant 0 : i32
    %c0_i32_0 = arith.constant 0 : i32
    %c0_i32_1 = arith.constant 0 : i32
    %c0_i32_2 = arith.constant 0 : i32
    return %arg0, %arg1, %c0_i32, %c0_i32_0, %c0_i32_1 : i32, i32, i32, i32, i32
  }
  func.func @transform_1(%arg0: i32, %arg1: i32) -> (i32, i32) {
    %c0_i32 = arith.constant 0 : i32
    %c0_i32_0 = arith.constant 0 : i32
    %c0_i32_1 = arith.constant 0 : i32
    return %c0_i32, %c0_i32_0 : i32, i32
  }
  func.func @transform_2(%arg0: i32, %arg1: i32) -> (i32, i32) {
    %c0_i32 = arith.constant 0 : i32
    %c0_i32_0 = arith.constant 0 : i32
    %c0_i32_1 = arith.constant 0 : i32
    return %c0_i32, %c0_i32_0 : i32, i32
  }
  func.func @transform_3(%arg0: i32, %arg1: i32) -> (i32, i32) {
    %c0_i32 = arith.constant 0 : i32
    %c0_i32_0 = arith.constant 0 : i32
    %c0_i32_1 = arith.constant 0 : i32
    return %c0_i32, %c0_i32_0 : i32, i32
  }
  func.func @transform_4(%arg0: i32, %arg1: i32) -> (i32, i32) {
    %c0_i32 = arith.constant 0 : i32
    %c0_i32_0 = arith.constant 0 : i32
    %c0_i32_1 = arith.constant 0 : i32
    return %c0_i32, %c0_i32_0 : i32, i32
  }
  func.func @transform_5(%arg0: i32, %arg1: i32) -> (i32, i32) {
    %c0_i32 = arith.constant 0 : i32
    %c0_i32_0 = arith.constant 0 : i32
    %c0_i32_1 = arith.constant 0 : i32
    return %c0_i32, %c0_i32_0 : i32, i32
  }
  func.func @transform_6(%arg0: i32, %arg1: i32) -> (i32, i32) {
    %c0_i32 = arith.constant 0 : i32
    %c0_i32_0 = arith.constant 0 : i32
    %c0_i32_1 = arith.constant 0 : i32
    return %c0_i32, %c0_i32_0 : i32, i32
  }
  func.func @transform_7(%arg0: i32, %arg1: i32) -> (i32, i32) {
    %c0_i32 = arith.constant 0 : i32
    %c0_i32_0 = arith.constant 0 : i32
    %c0_i32_1 = arith.constant 0 : i32
    return %c0_i32, %c0_i32_0 : i32, i32
  }
  func.func @transform_8(%arg0: i32, %arg1: i32) -> (i32, i32) {
    %c0_i32 = arith.constant 0 : i32
    %c0_i32_0 = arith.constant 0 : i32
    %c0_i32_1 = arith.constant 0 : i32
    return %c0_i32, %c0_i32_0 : i32, i32
  }
  func.func @transform_9(%arg0: i32, %arg1: i32) -> (i32, i32) {
    %c0_i32 = arith.constant 0 : i32
    %c0_i32_0 = arith.constant 0 : i32
    %c0_i32_1 = arith.constant 0 : i32
    return %c0_i32, %c0_i32_0 : i32, i32
  }
  func.func @transform_10(%arg0: i32, %arg1: i32) -> (i32, i32) {
    %c0_i32 = arith.constant 0 : i32
    %c0_i32_0 = arith.constant 0 : i32
    %c0_i32_1 = arith.constant 0 : i32
    return %c0_i32, %c0_i32_0 : i32, i32
  }
  func.func @transform_11(%arg0: i32, %arg1: i32) -> (i32, i32) {
    %c0_i32 = arith.constant 0 : i32
    %c0_i32_0 = arith.constant 0 : i32
    %c0_i32_1 = arith.constant 0 : i32
    return %c0_i32, %c0_i32_0 : i32, i32
  }
  func.func @transform_12(%arg0: i32, %arg1: i32) -> (i32, i32) {
    %c0_i32 = arith.constant 0 : i32
    %c0_i32_0 = arith.constant 0 : i32
    %c0_i32_1 = arith.constant 0 : i32
    return %c0_i32, %c0_i32_0 : i32, i32
  }
  func.func @transform_13(%arg0: i32, %arg1: i32) -> (i32, i32, i32, i32) {
    %c0_i32 = arith.constant 0 : i32
    %c0_i32_0 = arith.constant 0 : i32
    %c0_i32_1 = arith.constant 0 : i32
    return %arg0, %arg1, %c0_i32, %c0_i32_0 : i32, i32, i32, i32
  }
}

</mosaic_0001>

<bundles_post_ra>
// kernel: tpu_custom_call.1
= control target key start
LH: loop header
LB: loop body
LE: loop exit
PB: predicated region body
PF: predicated region fallthrough
CT: control target
= control target key end

     0   :  { %s7960_s0 = inlined_call_operand.hbm [shape: f32[2,2,14,32,128], index: 0, kind: input, shape index: {}]   ;;  %s7961_s1 = inlined_call_operand.hbm [shape: bf16[384,128], index: 1, kind: input, shape index: {}]   ;;  %s7962_s2 = inlined_call_operand.vmem [shape: f32[1,128], index: 2, kind: input, shape index: {}]   ;;  %s7963_s3 = inlined_call_operand.hbm [shape: bf16[384,128], index: 3, kind: input, shape index: {}]   ;;  %s7964_s4 = inlined_call_operand.vmem [shape: f32[1,128], index: 4, kind: input, shape index: {}]   ;;  %s7965_s5 = inlined_call_operand.vmem [shape: f32[1,128], index: 5, kind: input, shape index: {}]   ;;  %s7966_s6 = inlined_call_operand.vmem [shape: f32[1,128], index: 6, kind: input, shape index: {}]   ;;  %s7967_s7 = inlined_call_operand.hbm [shape: bf16[384,128], index: 7, kind: input, shape index: {}]   ;;  %s7968_s8 = inlined_call_operand.vmem [shape: f32[1,128], index: 8, kind: input, shape index: {}]   ;;  %s7969_s9 = inlined_call_operand.hbm [shape: bf16[384,128], index: 9, kind: input, shape index: {}]   ;;  %s7970_s10 = inlined_call_operand.vmem [shape: f32[1,128], index: 10, kind: input, shape index: {}]   ;;  %s7971_s11 = inlined_call_operand.vmem [shape: f32[1,128], index: 11, kind: input, shape index: {}]   ;;  %s7972_s12 = inlined_call_operand.vmem [shape: f32[1,128], index: 12, kind: input, shape index: {}]   ;;  %s7973_s13 = inlined_call_operand.hbm [shape: f32[2,16,16,128], index: 13, kind: output, shape index: {}]  }
   0x1   :  { %8000 = sst [smem:[#allocation50_spill]] %s7961_s1 }
   0x2   :  { %8001 = sst [smem:[#allocation51_spill]] %s7963_s3 }
   0x3   :  { %8002 = sst [smem:[#allocation52_spill]] %s7967_s7 }
   0x4   :  { %8003 = sst [smem:[#allocation53_spill]] %s7968_s8 }
   0x5   :  { %8004 = sst [smem:[#allocation54_spill]] %s7969_s9 }
   0x6   :  { %8005 = sst [smem:[#allocation55_spill]] %s7970_s10 }
   0x7   :  { %8006 = sst [smem:[#allocation56_spill]] %s7971_s11 }
   0x8   :  { %8007 = sst [smem:[#allocation57_spill]] %s7972_s12 }
   0x9   :  { %8008 = sst [smem:[#allocation58_spill]] %s7973_s13 }
   0xa   :  { %18 = vsyncpa [#allocation3], 0 }
   0xb   :  { %20 = vsyncpa [#allocation3 + $0x1], 0 }
   0xc   :  { %21 = vsyncpa [#allocation6], 0 }
   0xd   :  { %22 = vsyncpa [#allocation9], 0 }
   0xe   :  { %23 = vsyncpa [#allocation4], 0 }
   0xf   :  { %25 = vsyncpa [#allocation4 + $0x1], 0  ;;  %s5875_s25 = smov 0   ;;  %s5877_s26 = smov 0  }
  0x10   :  { %s5879_s27 = smov 0   ;;  %s5881_s28 = smov 0  }
  0x11   :  { %s5883_s29 = smov 0   ;;  %s5885_s30 = smov 0  }
  0x12   :  { %s5887_s14 = smov 0   ;;  %s5889_s15 = smov 0  }
  0x13 LB: > { %8009 = sst [smem:[#allocation16_spill]] %s5763_s25  ;;  %s4321_s16 = sadd.s32 4294967295, %s5791_s15   ;;  %s5791_s15 = sphi %s5889_s15, %s31_s15   ;;  %s5787_s14 = sphi %s5887_s14, %s8178_s14   ;;  %s5783_s30 = sphi %s5885_s30, %s8172_s30   ;;  %s5779_s29 = sphi %s5883_s29, %s8177_s29   ;;  %s5775_s28 = sphi %s5881_s28, %s8171_s28   ;;  %s5771_s27 = sphi %s5879_s27, %s8176_s27   ;;  %s5767_s26 = sphi %s5877_s26, %s8175_s26   ;;  %s5763_s25 = sphi %s5875_s25, %s8174_s25  }
  0x14   : > { %8010 = sst [smem:[#allocation17_spill]] %s5775_s28  ;;  %s4322_s17 = sadd.s32 4294967294, %s5791_s15  }
  0x15   : > { %8011 = sst [smem:[#allocation18_spill]] %s5779_s29  ;;  %p65_p0 = scmp.ne.s32.totalorder %s5767_s26, %s5763_s25 }
  0x16   : > { %8012 = sst [smem:[#allocation19_spill]] %s5783_s30  ;;  %p5919_p1 = scmp.eq.s32.totalorder %s4321_s16, 0 }
  0x17   : > { %8013 = sst [smem:[#allocation20_spill]] %s5791_s15  ;;  %p5923_p2 = scmp.eq.s32.totalorder %s4321_s16, 3 }
  0x18   : > { %p349_p3 = scmp.eq.s32.totalorder %s4322_s17, 3  ;;  %p5929_p4 = por %p5919_p1, %p65_p0 }
  0x19   : > { %p4323_p5 = scmp.ge.s32.totalorder %s5791_s15, 1  ;;  %p356_p7 = scmp.lt.s32.totalorder %s5791_s15, 5 }
  0x1a   : > { %p5934_p6 = por %p349_p3, %p65_p0  ;;  %s8019_s1 = sld [smem:[#allocation50_spill]] }
  0x1b   : > { %p5942_p8 = pnand %p4323_p5, %p356_p7  ;;  %s5793_s17 = smov [#allocation5]  }
  0x1c   : > { %s8017_s21 = scalar_select %p5934_p6, 1, 0 }
  0x1d   : > { %p5168_p9 = pneg %p5942_p8  ;;  %s369_s25 = sshll.u32 %s5793_s17, 4  ;;  %s370_s25 = int_to_ptr.vmem [resolvable:$true] %s369_s25 }
  0x1e   : > { %8018 = sst [smem:[#allocation21_spill]] %s8017_s21  ;;  %s5794_s23 = smov 64  }
  0x1f   : > { %p5950_p10 = pnand %p5168_p9, %p5919_p1  ;;  %s8022_s7 = sld [smem:[#allocation52_spill]] }
  0x20   : > { %s367_s24 = sshll.u32 %s8019_s1, 4  ;;  %s5795_s1 = smov 4   ;;  %s368_s24 = int_to_ptr.hbm [resolvable:$true] %s367_s24 }
  0x21   : > { %5171 = dma.hbm_to_vmem [thread:$0]  (!%p5950_p10), %s368_s24, 3072, %s370_s25, [#allocation6], %s5794_s23, %s5794_s23, %s5795_s1  }
  0x22   : > { %s5796_s17 = smov [#allocation8]   ;;  %s8023_s3 = sld [smem:[#allocation51_spill]] }
  0x23   : > { %s409_s12 = sshll.u32 %s5796_s17, 4  ;;  %s8024_s9 = sld [smem:[#allocation54_spill]]  ;;  %s410_s12 = int_to_ptr.vmem [resolvable:$true] %s409_s12 }
  0x24   : > { %s5797_s24 = smov [#allocation7]   ;;  %s5798_s10 = smov [#allocation10]  }
  0x25   : > { %s407_s22 = sshll.u32 %s8022_s7, 4  ;;  %s386_s17 = sshll.u32 %s5797_s24, 4  ;;  %s408_s22 = int_to_ptr.hbm [resolvable:$true] %s407_s22  ;;  %s387_s17 = int_to_ptr.vmem [resolvable:$true] %s386_s17 }
  0x26   : > { %5177 = dma.hbm_to_vmem [thread:$0]  (!%p5950_p10), %s408_s22, 3072, %s410_s12, [#allocation9], %s5794_s23, %s5794_s23, %s5795_s1  }
  0x27   : > { %s426_s11 = sshll.u32 %s5798_s10, 4  ;;  %s40_s12 = sadd.s32 1, %s5783_s30  ;;  %s427_s11 = int_to_ptr.vmem [resolvable:$true] %s426_s11 }
  0x28   : > { %s384_s8 = sshll.u32 %s8023_s3, 4  ;;  %s43_s22 = sadd.s32 1, %s5787_s14  ;;  %s385_s8 = int_to_ptr.hbm [resolvable:$true] %s384_s8 }
  0x29   : > { %s424_s25 = sshll.u32 %s8024_s9, 4  ;;  %p41_p11 = scmp.ge.s32.totalorder %s40_s12, 2  ;;  %s425_s25 = int_to_ptr.hbm [resolvable:$true] %s424_s25 }
  0x2a   : > { %5174 = dma.hbm_to_vmem [thread:$0]  (!%p5950_p10), %s385_s8, 3072, %s387_s17, [#allocation6], %s5794_s23, %s5794_s23, %s5795_s1  }
  0x2b   : > { %5180 = dma.hbm_to_vmem [thread:$0]  (!%p5950_p10), %s425_s25, 3072, %s427_s11, [#allocation9], %s5794_s23, %s5794_s23, %s5795_s1  }
  0x2c   : > { %s52_s29 = sadd.s32 1, %s5771_s27  ;;  %p59_p12 = scmp.ne.s32.totalorder %s5771_s27, %s5767_s26 }
  0x2d   : > { %p60_p13 = scmp.eq.s32.totalorder %s5791_s15, 0  ;;  %s8180_s12 = smov (%p41_p11, %s40_s12), 0 }
  0x2e   : > { %8025 = sst [smem:[#allocation22_spill]] %s8180_s12  ;;  %s8182_s22 = smov (!%p41_p11, %s43_s22), %s5787_s14 }
  0x2f   : > { %s48_s8 = ssub.s32 %s5783_s30, %s8180_s12  ;;  %p5982_p0 = por %p60_p13, %p59_p12 }
  0x30   : > { %p45_p3 = scmp.ge.s32.totalorder %s8182_s22, 2  ;;  %p5988_p5 = por %p5923_p2, %p59_p12 }
  0x31   : > { %p5193_p7 = scmp.lt.s32.totalorder %s5791_s15, 4  ;;  %s449_s13 = sand.u32 1, %s5771_s27  }
  0x32   : > { %s8027_s1 = scalar_select %p5988_p5, 1, 0 }
  0x33   : > { %s8184_s22 = smov (%p45_p3, %s8182_s22), 0  ;;  %s5144_s23 = smul.u32 448, %s449_s13 }
  0x34   : > { %8028 = sst [smem:[#allocation23_spill]] %s8027_s1  ;;  %s47_s25 = ssub.s32 %s5787_s14, %s8184_s22 }
  0x35   : > { %8029 = sst [smem:[#allocation24_spill]] %s8184_s22  ;;  %s5145_s24 = smul.u32 56, %s5783_s30 }
  0x36   : > { %s49_s17 = sor.u32 %s48_s8, %s47_s25  ;;  %s5146_s10 = smul.u32 112, %s5787_s14 }
  0x37   : > { %p50_p9 = scmp.eq.s32.totalorder %s49_s17, 0  ;;  %s453_s11 = scalar_lea.vmem [#allocation2], %s5144_s23 }
  0x38   : > { %s463_s3 = sshll.u32 %s453_s11, 4  ;;  %p5182_p10 = pnand %p5193_p7, %p5982_p0  ;;  %s464_s3 = int_to_ptr.vmem [resolvable:$true] %s463_s3 }
  0x39   : > { %s6003_s19 = scalar_select %p50_p9, %s5771_s27, %s52_s29  }
  0x3a   : > { %s458_s7 = sadd.s32 %s5146_s10, %s5145_s24  ;;  %s450_s22 = scalar_lea.sflag [#allocation3], %s449_s13 }
  0x3b   : > { %s4329_s9 = sshll.u32 %s458_s7, 3  ;;  %s5799_s30 = smov 128  }
  0x3c   : > { %s460_s1 = scalar_lea.hbm %s7960_s0, %s4329_s9  ;;  %s5800_s8 = smov 8  }
  0x3d   : > { %s461_s28 = sshll.u32 %s460_s1, 4  ;;  %475 = sbr.rel (%p5942_p8) target bundleno = 1545 (0x609), region = 72  ;;  %s462_s28 = int_to_ptr.hbm [resolvable:$true] %s461_s28 }
  0x3e   : > { %5184 = dma.hbm_to_vmem [thread:$0]  (!%p5182_p10), %s462_s28, 7168, %s464_s3, %s450_s22, %s5799_s30, %s5799_s30, %s5800_s8  }
  0x42   : > { %s6011_s29 = sand.u32 1, %s5767_s26  }
  0x43   : > { %s5147_s7 = smul.u32 448, %s6011_s29  ;;  %s478_s21 = scalar_lea.sflag [#allocation3], %s6011_s29 }
  0x45   : > { %s6015_s23 = scalar_lea.vmem [#allocation2], %s5147_s7 }
  0x46   : > { %5746 = dma.done.wait (%p5929_p4), %s478_s21, 7168  }
  0x47   : > { %5748 = vsyncadd (%p5929_p4), %s478_s21, 4294960128 }
  0x48   : > { %5750 = dma.done.wait (%p5919_p1), [#allocation6], 6144  }
  0x49   : > { %5752 = vsyncadd (%p5919_p1), [#allocation6], 4294961152 }
  0x4a   : > { %5754 = dma.done.wait (%p5919_p1), [#allocation9], 6144  }
  0x4b   : > { %5756 = vsyncadd (%p5919_p1), [#allocation9], 4294961152  ;;  %v5046_v0 = vld [vmem:[#allocation5 + $0x38] sm:$0xff]  ;;  %v5045_v2 = vld [vmem:[#allocation5 + $0x30] sm:$0xff]  ;;  %vm5801_vm3 = vmmov 1   ;;  %vm1792_vm5 = vcmask 1045504  }
  0x4c   : > { %v5054_v1 = vld [vmem:[#allocation5 + $0x78] sm:$0xff]  ;;  %826 = vmatpush.bf16.msra.mxu0 %v5046_v0  ;;  %5136 = vmatpush.bf16.msra.mxu2 %v5046_v0  ;;  %v5053_v3 = vld [vmem:[#allocation5 + $0x70] sm:$0xff]  ;;  %v5044_v4 = vld [vmem:[#allocation5 + $0x28] sm:$0xff]  ;;  %vm1671_vm6 = vcmask 1046528   ;;  %s8094_s1 = sld [smem:[#allocation17_spill]] }
  0x4d   : > { %955 = vmatpush.bf16.msra.mxu1 %v5054_v1  ;;  %v5052_v5 = vld [vmem:[#allocation5 + $0x68] sm:$0xff]  ;;  %v5043_v6 = vld [vmem:[#allocation5 + $0x20] sm:$0xff]  ;;  %v5042_v8 = vld [vmem:[#allocation5 + $0x18] sm:$0xff]  ;;  %s8153_s9 = sld [smem:[#allocation53_spill]] }
  0x4e   : > { %v5051_v7 = vld [vmem:[#allocation5 + $0x60] sm:$0xff]  ;;  %v5050_v9 = vld [vmem:[#allocation5 + $0x58] sm:$0xff]  ;;  %v5041_v10 = vld [vmem:[#allocation5 + $0x10] sm:$0xff]  ;;  %s8162_s15 = sld [smem:[#allocation55_spill]] }
  0x4f   : > { %v5049_v11 = vld [vmem:[#allocation5 + $0x50] sm:$0xff]  ;;  %v5040_v12 = vld [vmem:[#allocation5 + $0x8] sm:$0xff]  ;;  %v5039_v14 = vld [vmem:[#allocation5] sm:$0xff]  ;;  %s8163_s16 = sld [smem:[#allocation56_spill]] }
  0x50   : > { %827 = vmatpush.bf16.msra.mxu0 %v5045_v2  ;;  %5137 = vmatpush.bf16.msra.mxu2 %v5045_v2  ;;  %v5048_v13 = vld [vmem:[#allocation5 + $0x48] sm:$0xff]  ;;  %v5047_v15 = vld [vmem:[#allocation5 + $0x40] sm:$0xff]  ;;  %v588_v18 = vld [vmem:[%s6015_s23 + $0x150] sm:$0xff]  ;;  %s8166_s3 = sld [smem:[#allocation58_spill]] }
  0x51   : > { %956 = vmatpush.bf16.msra.mxu1 %v5053_v3  ;;  %v546_v16 = vld [vmem:[%s6015_s23] sm:$0xff]  ;;  %v547_v17 = vld [vmem:[%s6015_s23 + $0x8] sm:$0xff]  ;;  %v589_v19 = vld [vmem:[%s6015_s23 + $0x158] sm:$0xff] }
  0x52   : > { %v550_v20 = vld [vmem:[%s6015_s23 + $0x20] sm:$0xff]  ;;  %v551_v21 = vld [vmem:[%s6015_s23 + $0x28] sm:$0xff]  ;;  %v5062_v22 = vld [vmem:[#allocation5 + $0xb8] sm:$0xff]  ;;  %v651_v23 = vpack.c.bf16 %v547_v17, %v546_v16  ;;  %v6035_v24 = vpack.c.bf16 %v589_v19, %v588_v18  ;;  %s4666_s13 = sshll.u32 %s8094_s1, 3  ;;  %s5135_s17 = sshll.u32 %s8094_s1, 4 }
  0x53   : > { %v652_v25 = vpack.c.bf16 %v551_v21, %v550_v20  ;;  %v5061_v26 = vld [vmem:[#allocation5 + $0xb0] sm:$0xff]  ;;  %v5060_v27 = vld [vmem:[#allocation5 + $0xa8] sm:$0xff]  ;;  %v5059_v28 = vld [vmem:[#allocation5 + $0xa0] sm:$0xff]  ;;  %s4667_s25 = sadd.s32 4294967294, %s4666_s13  ;;  %s8164_s13 = sld [smem:[#allocation57_spill]] }
  0x54   : > { %828 = vmatpush.bf16.msra.mxu0 %v5044_v4  ;;  %5138 = vmatpush.bf16.msra.mxu2 %v5044_v4  ;;  %v548_v29 = vld [vmem:[%s6015_s23 + $0x10] sm:$0xff]  ;;  %v549_v30 = vld [vmem:[%s6015_s23 + $0x18] sm:$0xff]  ;;  %v590_v31 = vld [vmem:[%s6015_s23 + $0x160] sm:$0xff] }
  0x55   : > { %957 = vmatpush.bf16.msra.mxu1 %v5052_v5  ;;  %v591_v32 = vld [vmem:[%s6015_s23 + $0x168] sm:$0xff]  ;;  %v552_v33 = vld [vmem:[%s6015_s23 + $0x30] sm:$0xff]  ;;  %v553_v34 = vld [vmem:[%s6015_s23 + $0x38] sm:$0xff]  ;;  %v654_v36 = vpack.c.bf16 %v549_v30, %v548_v29 }
  0x56   : > { %v5058_v35 = vld [vmem:[#allocation5 + $0x98] sm:$0xff]  ;;  %v6044_v37 = vpack.c.bf16 %v591_v32, %v590_v31  ;;  %v655_v38 = vpack.c.bf16 %v553_v34, %v552_v33  ;;  %v5057_v39 = vld [vmem:[#allocation5 + $0x90] sm:$0xff]  ;;  %v5056_v40 = vld [vmem:[#allocation5 + $0x88] sm:$0xff]  ;;  %s5705_s22 = scalar_lea.hbm %s8166_s3, 512 }
  0x57   : > { %v5055_v41 = vld [vmem:[#allocation5 + $0x80] sm:$0xff]  ;;  %v592_v42 = vld [vmem:[%s6015_s23 + $0x170] sm:$0xff]  ;;  %v593_v43 = vld [vmem:[%s6015_s23 + $0x178] sm:$0xff] }
  0x58   : > { %829 = vmatpush.bf16.msra.mxu0 %v5043_v6  ;;  %5139 = vmatpush.bf16.msra.mxu2 %v5043_v6  ;;  %v554_v44 = vld [vmem:[%s6015_s23 + $0x40] sm:$0xff]  ;;  %v555_v45 = vld [vmem:[%s6015_s23 + $0x48] sm:$0xff]  ;;  %v6051_v46 = vpack.c.bf16 %v593_v43, %v592_v42  ;;  %v556_v48 = vld [vmem:[%s6015_s23 + $0x50] sm:$0xff] }
  0x59   : > { %958 = vmatpush.bf16.msra.mxu1 %v5051_v7  ;;  %v653_v47 = vpack.c.bf16 %v555_v45, %v554_v44  ;;  %v557_v49 = vld [vmem:[%s6015_s23 + $0x58] sm:$0xff]  ;;  %v558_v51 = vld [vmem:[%s6015_s23 + $0x60] sm:$0xff]  ;;  %v559_v52 = vld [vmem:[%s6015_s23 + $0x68] sm:$0xff] }
  0x5a   : > { %v656_v50 = vpack.c.bf16 %v557_v49, %v556_v48  ;;  %v657_v53 = vpack.c.bf16 %v559_v52, %v558_v51  ;;  %v560_v54 = vld [vmem:[%s6015_s23 + $0x70] sm:$0xff]  ;;  %v561_v55 = vld [vmem:[%s6015_s23 + $0x78] sm:$0xff]  ;;  %v562_v57 = vld [vmem:[%s6015_s23 + $0x80] sm:$0xff] }
  0x5b   : > { %v658_v56 = vpack.c.bf16 %v561_v55, %v560_v54  ;;  %v563_v58 = vld [vmem:[%s6015_s23 + $0x88] sm:$0xff]  ;;  %v564_v60 = vld [vmem:[%s6015_s23 + $0x90] sm:$0xff]  ;;  %v565_v61 = vld [vmem:[%s6015_s23 + $0x98] sm:$0xff] }
  0x5c   : > { %830 = vmatpush.bf16.msra.mxu0 %v5042_v8  ;;  %5140 = vmatpush.bf16.msra.mxu2 %v5042_v8  ;;  %v659_v59 = vpack.c.bf16 %v563_v58, %v562_v57  ;;  %v660_v62 = vpack.c.bf16 %v565_v61, %v564_v60  ;;  %v566_v63 = vld [vmem:[%s6015_s23 + $0xa0] sm:$0xff]  ;;  %v567_v0 = vld [vmem:[%s6015_s23 + $0xa8] sm:$0xff]  ;;  %v568_v7 = vld [vmem:[%s6015_s23 + $0xb0] sm:$0xff]  ;;  %v1501_v61 = vlaneseq }
  0x5d   : > { %959 = vmatpush.bf16.msra.mxu1 %v5050_v9  ;;  %v661_v2 = vpack.c.bf16 %v567_v0, %v566_v63  ;;  %v569_v8 = vld [vmem:[%s6015_s23 + $0xb8] sm:$0xff]  ;;  %v5069_v17 = vld [vmem:[#allocation7 + $0x30] sm:$0xff]  ;;  %v5068_v21 = vld [vmem:[#allocation7 + $0x28] sm:$0xff] }
  0x5e   : > { %v5066_v30 = vld [vmem:[#allocation7 + $0x18] sm:$0xff]  ;;  %v5065_v31 = vld [vmem:[#allocation7 + $0x10] sm:$0xff]  ;;  %v574_v55 = vld [vmem:[%s6015_s23 + $0xe0] sm:$0xff] }
  0x60   : > { %831 = vmatpush.bf16.msra.mxu0 %v5041_v10  ;;  %5141 = vmatpush.bf16.msra.mxu2 %v5041_v10  ;;  %v6073_v10 = vld [vmem:[%s7962_s2] ss:$0 sm:$0xff] }
  0x61   : > { %960 = vmatpush.bf16.msra.mxu1 %v5049_v11 }
  0x64   : > { %832 = vmatpush.bf16.msra.mxu0 %v5040_v12  ;;  %5142 = vmatpush.bf16.msra.mxu2 %v5040_v12  ;;  %v662_v12 = vpack.c.bf16 %v569_v8, %v568_v7 }
  0x65   : > { %961 = vmatpush.bf16.msra.mxu1 %v5048_v13 }
  0x68   : > { %833 = vmatpush.bf16.msra.mxu0 %v5039_v14  ;;  %5143 = vmatpush.bf16.msra.mxu2 %v5039_v14 }
  0x69   : > { %962 = vmatpush.bf16.msra.mxu1 %v5047_v15  ;;  %v5070_v15 = vld [vmem:[#allocation7 + $0x38] sm:$0xff] }
  0x6a   : > { %2114 = vmatpush.bf16.msra.mxu3 %v5070_v15 }
  0x6b   : > { %834 = vmatmul.bf16.vlgmr.msra.gmra.mxu0 %v651_v23  ;;  %939 = vmatmul.bf16.vlgmr.msra.gmra.mxu2 %v6035_v24  ;;  %v571_v23 = vld [vmem:[%s6015_s23 + $0xc8] sm:$0xff] }
  0x6c   : > { %1084 = vmatpush.bf16.msrb.mxu2 %v5062_v22  ;;  %963 = vmatmul.bf16.vlgmr.msra.gmra.mxu1 %v652_v25  ;;  %v570_v22 = vld [vmem:[%s6015_s23 + $0xc0] sm:$0xff] }
  0x6e   : > { %2115 = vmatpush.bf16.msra.mxu3 %v5069_v17 }
  0x70   : > { %1085 = vmatpush.bf16.msrb.mxu2 %v5061_v26 }
  0x72   : > { %2116 = vmatpush.bf16.msra.mxu3 %v5068_v21 }
  0x74   : > { %1086 = vmatpush.bf16.msrb.mxu2 %v5060_v27 }
  0x78   : > { %1087 = vmatpush.bf16.msrb.mxu2 %v5059_v28  ;;  %v663_v28 = vpack.c.bf16 %v571_v23, %v570_v22 }
  0x7b   : > { %839 = vmatmul.bf16.gmra.mxu0 %v654_v36  ;;  %944 = vmatmul.bf16.gmra.mxu2 %v6044_v37  ;;  %v572_v36 = vld [vmem:[%s6015_s23 + $0xd0] sm:$0xff] }
  0x7c   : > { %1088 = vmatpush.bf16.msrb.mxu2 %v5058_v35  ;;  %968 = vmatmul.bf16.gmra.mxu1 %v655_v38  ;;  %v5064_v35 = vld [vmem:[#allocation7 + $0x8] sm:$0xff] }
  0x80   : > { %1089 = vmatpush.bf16.msrb.mxu2 %v5057_v39  ;;  %v5063_v39 = vld [vmem:[#allocation7] sm:$0xff] }
  0x84   : > { %1090 = vmatpush.bf16.msrb.mxu2 %v5056_v40 }
  0x88   : > { %1091 = vmatpush.bf16.msrb.mxu2 %v5055_v41 }
  0x8b   : > { %844 = vmatmul.bf16.gmra.mxu0 %v652_v25  ;;  %949 = vmatmul.bf16.gmra.mxu2 %v6051_v46  ;;  %v5067_v25 = vld [vmem:[#allocation7 + $0x20] sm:$0xff] }
  0x8c   : > { %973 = vmatmul.bf16.gmra.mxu1 %v653_v47  ;;  %2117 = vmatpush.bf16.msra.mxu3 %v5067_v25 }
  0x90   : > { %2118 = vmatpush.bf16.msra.mxu3 %v5066_v30 }
  0x94   : > { %2119 = vmatpush.bf16.msra.mxu3 %v5065_v31 }
  0x98   : > { %2120 = vmatpush.bf16.msra.mxu3 %v5064_v35 }
  0x9b   : > { %849 = vmatmul.bf16.gmra.mxu0 %v655_v38  ;;  %1092 = vmatmul.bf16.vlgmr.msrb.gmra.mxu2 %v653_v47  ;;  %v573_v38 = vld [vmem:[%s6015_s23 + $0xd8] sm:$0xff] }
  0x9c   : > { %978 = vmatmul.bf16.gmra.mxu1 %v656_v50  ;;  %v6099_v43 = vpack.c.bf16 %v573_v38, %v572_v36  ;;  %2121 = vmatpush.bf16.msra.mxu3 %v5063_v39 }
  0xab   : > { %854 = vmatmul.bf16.gmra.mxu0 %v653_v47  ;;  %1097 = vmatmul.bf16.gmra.mxu2 %v656_v50 }
  0xac   : > { %983 = vmatmul.bf16.gmra.mxu1 %v657_v53 }
  0xbb   : > { %859 = vmatmul.bf16.gmra.mxu0 %v656_v50  ;;  %1102 = vmatmul.bf16.gmra.mxu2 %v657_v53 }
  0xbc   : > { %988 = vmatmul.bf16.gmra.mxu1 %v658_v56 }
  0xcb   : > { %864 = vmatmul.bf16.gmra.mxu0 %v657_v53  ;;  %1107 = vmatmul.bf16.gmra.mxu2 %v658_v56 }
  0xcc   : > { %993 = vmatmul.bf16.gmra.mxu1 %v659_v59 }
  0xdb   : > { %869 = vmatmul.bf16.gmra.mxu0 %v658_v56  ;;  %1112 = vmatmul.bf16.gmra.mxu2 %v659_v59  ;;  %v575_v56 = vld [vmem:[%s6015_s23 + $0xe8] sm:$0xff] }
  0xdc   : > { %998 = vmatmul.bf16.gmra.mxu1 %v660_v62  ;;  %v6109_v60 = vpack.c.bf16 %v575_v56, %v574_v55 }
  0xe8   : > { %v835_v1 = vpop.f32.mrf.mxu0 }
  0xe9   : > { %v964_v3 = vpop.f32.mrf.mxu1  ;;  %v836_v41 = vadd.f32 %v6073_v10, %v835_v1 }
  0xeb   : > { %874 = vmatmul.bf16.gmra.mxu0 %v659_v59  ;;  %1117 = vmatmul.bf16.gmra.mxu2 %v660_v62  ;;  %v965_v45 = vadd.f32 %v964_v3, %v836_v41  ;;  %v6115_v3 = vshrl.u32 %v1501_v61, 7 }
  0xec   : > { %1003 = vmatmul.bf16.gmra.mxu1 %v661_v2 }
  0xed   : > { %8030 = vst [vmem:[#allocation25_spill] sm:$0xff] %v6115_v3  ;;  %vm1506_vm1 = vcmp.ge.s32.totalorder %v6115_v3, 3  ;;  %v6137_v35 = vadd.s32 16, %v6115_v3 }
  0xee   : > { %v6066_v4 = vpop.f32.mrf.mxu2  ;;  %vm6132_vm4 = vmpackc.low %vm5801_vm3, %vm1506_vm1 }
  0xef   : > { %8033 = vst [vmem:[#allocation26_spill] sm:$0xff] %v6137_v35  ;;  %vm1512_vm7 = vcmp.lt.s32.totalorder %v6137_v35, 19 }
  0xf0   : > { %v837_v5 = vpop.f32.mrf.mxu0  ;;  %vm6196_vm10 = vmpackc.low %vm1506_vm1, %vm1512_vm7 }
  0xf1   : > { %v966_v6 = vpop.f32.mrf.mxu1  ;;  %v838_v50 = vadd.f32 %v6073_v10, %v837_v5  ;;  %vm6249_vm13 = vmpackc.low %vm1512_vm7, %vm5801_vm3 }
  0xf3   : > { %v967_v54 = vadd.f32 %v966_v6, %v838_v50 }
  0xf6   : > { %v942_v9 = vpop.f32.mrf.mxu2 }
  0xf8   : > { %v840_v11 = vpop.f32.mrf.mxu0 }
  0xf9   : > { %v841_v13 = vadd.f32 %v6073_v10, %v840_v11  ;;  %v969_v14 = vpop.f32.mrf.mxu1 }
  0xfb   : > { %v6076_v16 = vadd.f32 %v969_v14, %v841_v13  ;;  %879 = vmatmul.bf16.gmra.mxu0 %v660_v62  ;;  %1122 = vmatmul.bf16.gmra.mxu2 %v661_v2 }
  0xfc   : > { %1008 = vmatmul.bf16.gmra.mxu1 %v662_v12 }
  0xfe   : > { %v6078_v18 = vpop.f32.mrf.mxu2 }
 0x100   : > { %v842_v19 = vpop.f32.mrf.mxu0 }
 0x101   : > { %v971_v20 = vpop.f32.mrf.mxu1  ;;  %v577_v19 = vld [vmem:[%s6015_s23 + $0xf8] sm:$0xff] }
 0x106   : > { %v6082_v26 = vpop.f32.mrf.mxu2 }
 0x108   : > { %v6084_v27 = vpop.f32.mrf.mxu0 }
 0x109   : > { %v6086_v29 = vpop.f32.mrf.mxu1  ;;  %v846_v17 = vadd.f32 %v6073_v10, %v6084_v27 }
 0x10b   : > { %884 = vmatmul.bf16.gmra.mxu0 %v661_v2  ;;  %1127 = vmatmul.bf16.gmra.mxu2 %v662_v12 }
 0x10c   : > { %1013 = vmatmul.bf16.gmra.mxu1 %v663_v28 }
 0x10e   : > { %v6088_v32 = vpop.f32.mrf.mxu2 }
 0x110   : > { %v6090_v33 = vpop.f32.mrf.mxu0 }
 0x111   : > { %v6092_v34 = vpop.f32.mrf.mxu1  ;;  %v848_v55 = vadd.f32 %v6073_v10, %v6090_v33  ;;  %v578_v33 = vld [vmem:[%s6015_s23 + $0x100] sm:$0xff] }
 0x116   : > { %v952_v40 = vpop.f32.mrf.mxu2 }
 0x118   : > { %v6097_v42 = vpop.f32.mrf.mxu0 }
 0x119   : > { %v6101_v44 = vpop.f32.mrf.mxu1 }
 0x11b   : > { %889 = vmatmul.bf16.gmra.mxu0 %v662_v12  ;;  %1132 = vmatmul.bf16.gmra.mxu2 %v663_v28 }
 0x11c   : > { %1018 = vmatmul.bf16.gmra.mxu1 %v6099_v43 }
 0x11e   : > { %v1093_v47 = vpop.f32.mrf.mxu2 }
 0x11f   : > { %v1094_v48 = vadd.f32 %v1093_v47, %v965_v45  ;;  %v975_v47 = vadd.f32 %v6086_v29, %v846_v17 }
 0x120   : > { %v852_v49 = vpop.f32.mrf.mxu0 }
 0x121   : > { %v1261_v51 = vmin.f32 %v1094_v48, 0.0  ;;  %v981_v52 = vpop.f32.mrf.mxu1  ;;  %vm1213_vm0 = vcmp.gt.f32.partialorder %v1094_v48, 0.0 }
 0x123   : > { %v1309_v53 = vmul.f32 1.442695, %v1261_v51 }
 0x125   : > { %5283 = vpow2.f32 %v1309_v53 }
 0x126   : > { %v1095_v57 = vpop.f32.mrf.mxu2 }
 0x127   : > { %v1096_v58 = vadd.f32 %v1095_v57, %v967_v54 }
 0x128   : > { %v6107_v59 = vpop.f32.mrf.mxu0 }
 0x129   : > { %v1262_v62 = vmin.f32 %v1096_v58, 0.0  ;;  %v6111_v63 = vpop.f32.mrf.mxu1  ;;  %vm1214_vm2 = vcmp.gt.f32.partialorder %v1096_v58, 0.0 }
 0x12b   : > { %v5284_v0 = vpop.eup %5283  ;;  %v1311_v1 = vmul.f32 1.442695, %v1262_v62  ;;  %894 = vmatmul.bf16.gmra.mxu0 %v663_v28  ;;  %1137 = vmatmul.bf16.gmra.mxu2 %v6099_v43 }
 0x12c   : > { %v4432_v2 = vadd.f32 -1.0, %v5284_v0  ;;  %1023 = vmatmul.bf16.gmra.mxu1 %v6109_v60 }
 0x12d   : > { %5285 = vpow2.f32 %v1311_v1 }
 0x12e   : > { %v1098_v5 = vpop.f32.mrf.mxu2  ;;  %v1453_v8 = vsel %vm1213_vm0, %v1094_v48, %v4432_v2  ;;  %v977_v2 = vadd.f32 %v6092_v34, %v848_v55 }
 0x12f   : > { %v1099_v6 = vadd.f32 %v1098_v5, %v6076_v16  ;;  %v1526_v14 = vsel %vm1506_vm1, %v1453_v8, 0.0  ;;  %v576_v16 = vld [vmem:[%s6015_s23 + $0xf0] sm:$0xff]  ;;  %v579_v5 = vld [vmem:[%s6015_s23 + $0x108] sm:$0xff] }
 0x130   : > { %v6118_v7 = vpop.f32.mrf.mxu0  ;;  %v1672_v22 = vrot.slane %v1526_v14, 1  ;;  %v1793_v28 = vrot.slane %v1526_v14, 2  ;;  %v6139_v36 = vpack.c.bf16 %v577_v19, %v576_v16 }
 0x131   : > { %v1263_v9 = vmin.f32 %v1099_v6, 0.0  ;;  %v6121_v11 = vpop.f32.mrf.mxu1  ;;  %vm1215_vm8 = vcmp.gt.f32.partialorder %v1099_v6, 0.0 }
 0x133   : > { %v5286_v12 = vpop.eup %5285  ;;  %v1313_v13 = vmul.f32 1.442695, %v1263_v9 }
 0x134   : > { %v4433_v15 = vadd.f32 -1.0, %v5286_v12 }
 0x135   : > { %5287 = vpow2.f32 %v1313_v13  ;;  %v6184_v13 = vpack.c.bf16 %v579_v5, %v578_v33 }
 0x136   : > { %v1100_v20 = vpop.f32.mrf.mxu2  ;;  %v1454_v21 = vsel %vm1214_vm2, %v1096_v58, %v4433_v15 }
 0x137   : > { %v1673_v25 = vrot.slane %v1454_v21, 1  ;;  %v1794_v27 = vrot.slane %v1454_v21, 2  ;;  %v4577_v30 = vpack.c.bf16 %v1454_v21, %v1453_v8  ;;  %v851_v8 = vadd.f32 %v6073_v10, %v6097_v42 }
 0x138   : > { %v860_v31 = vpop.f32.mrf.mxu0 }
 0x139   : > { %v861_v38 = vadd.f32 %v6073_v10, %v860_v31  ;;  %v989_v39 = vpop.f32.mrf.mxu1  ;;  %4578 = vmatmul.msk.bf16.vlgmr.msra.gmra.mxu3 %vm6132_vm4, %v4577_v30  ;;  %v6145_v40 = vsel %vm1792_vm5, %v1793_v28, %v1794_v27  ;;  %v6148_v41 = vsel %vm1671_vm6, %v1672_v22, %v1673_v25  ;;  %v980_v16 = vadd.f32 %v6101_v44, %v851_v8 }
 0x13b   : > { %v5288_v45 = vpop.eup %5287  ;;  %v6151_v48 = vadd.f32 %v989_v39, %v861_v38  ;;  %899 = vmatmul.bf16.gmra.mxu0 %v6099_v43  ;;  %1142 = vmatmul.bf16.gmra.mxu2 %v6109_v60  ;;  %v5086_v39 = vld [vmem:[#allocation7 + $0xb8] sm:$0xff] }
 0x13c   : > { %v4434_v49 = vadd.f32 -1.0, %v5288_v45  ;;  %1028 = vmatmul.bf16.gmra.mxu1 %v6139_v36  ;;  %v580_v45 = vld [vmem:[%s6015_s23 + $0x110] sm:$0xff]  ;;  %2312 = vmatpush.bf16.msrb.mxu0 %v5086_v39 }
 0x13e   : > { %v1103_v50 = vpop.f32.mrf.mxu2  ;;  %v1455_v51 = vsel %vm1215_vm8, %v1099_v6, %v4434_v49  ;;  %v5802_v49 = vmov 0.0  }
 0x13f   : > { %v1104_v52 = vadd.f32 %v1103_v50, %v975_v47  ;;  %v6159_v29 = vsel %vm1512_vm7, %v1455_v51, 0.0  ;;  %v581_v47 = vld [vmem:[%s6015_s23 + $0x118] sm:$0xff]  ;;  %v6210_v50 = vrot.slane %v5802_v49, 2 }
 0x140   : > { %v862_v53 = vpop.f32.mrf.mxu0  ;;  %v1675_v43 = vrot.slane %v6159_v29, 1  ;;  %v1796_v54 = vrot.slane %v6159_v29, 2  ;;  %v6218_v5 = vpack.c.bf16 %v581_v47, %v580_v45 }
 0x141   : > { %v1265_v56 = vmin.f32 %v1104_v52, 0.0  ;;  %v991_v57 = vpop.f32.mrf.mxu1  ;;  %vm1217_vm9 = vcmp.gt.f32.partialorder %v1104_v52, 0.0 }
 0x142   : > { %v6166_v58 = vsel %vm1792_vm5, %v1794_v27, %v1796_v54  ;;  %v6171_v61 = vsel %vm1671_vm6, %v1673_v25, %v1675_v43  ;;  %v6224_v8 = vsel %vm1792_vm5, %v1796_v54, %v6210_v50 }
 0x143   : > { %v1317_v62 = vmul.f32 1.442695, %v1265_v56 }
 0x145   : > { %5289 = vpow2.f32 %v1317_v62 }
 0x146   : > { %v1105_v6 = vpop.f32.mrf.mxu2 }
 0x147   : > { %v1106_v9 = vadd.f32 %v1105_v6, %v977_v2 }
 0x148   : > { %v6182_v12 = vpop.f32.mrf.mxu0 }
 0x149   : > { %v1266_v14 = vmin.f32 %v1106_v9, 0.0  ;;  %v6186_v15 = vpop.f32.mrf.mxu1  ;;  %vm1218_vm11 = vcmp.gt.f32.partialorder %v1106_v9, 0.0 }
 0x14b   : > { %v5290_v17 = vpop.eup %5289  ;;  %v1319_v19 = vmul.f32 1.442695, %v1266_v14  ;;  %904 = vmatmul.bf16.gmra.mxu0 %v6109_v60  ;;  %1147 = vmatmul.bf16.gmra.mxu2 %v6139_v36 }
 0x14c   : > { %v4436_v34 = vadd.f32 -1.0, %v5290_v17  ;;  %1033 = vmatmul.bf16.gmra.mxu1 %v6184_v13 }
 0x14d   : > { %5291 = vpow2.f32 %v1319_v19 }
 0x14e   : > { %v1108_v42 = vpop.f32.mrf.mxu2  ;;  %v1457_v20 = vsel %vm1217_vm9, %v1104_v52, %v4436_v34  ;;  %v856_v52 = vadd.f32 %v6073_v10, %v6107_v59 }
 0x14f   : > { %v1109_v60 = vadd.f32 %v1108_v42, %v980_v16  ;;  %v4580_v21 = vpack.c.bf16 %v1457_v20, %v1455_v51  ;;  %v1530_v38 = vsel %vm1506_vm1, %v1457_v20, 0.0  ;;  %v6212_v51 = vrot.slane %v5802_v49, 1 }
 0x150   : > { %v6200_v22 = vpop.f32.mrf.mxu0  ;;  %v1679_v56 = vrot.slane %v1530_v38, 1  ;;  %v1800_v57 = vrot.slane %v1530_v38, 2  ;;  %v985_v19 = vadd.f32 %v6111_v63, %v856_v52 }
 0x151   : > { %v1267_v25 = vmin.f32 %v1109_v60, 0.0  ;;  %v6202_v28 = vpop.f32.mrf.mxu1  ;;  %4581 = vmatmul.msk.bf16.gmra.mxu3 %vm6196_vm10, %v4580_v21  ;;  %v6233_v59 = vsel %vm1671_vm6, %v1675_v43, %v6212_v51  ;;  %vm1219_vm12 = vcmp.gt.f32.partialorder %v1109_v60, 0.0 }
 0x153   : > { %v5292_v27 = vpop.eup %5291  ;;  %v1321_v30 = vmul.f32 1.442695, %v1267_v25 }
 0x154   : > { %v4437_v31 = vadd.f32 -1.0, %v5292_v27 }
 0x155   : > { %5293 = vpow2.f32 %v1321_v30 }
 0x156   : > { %v1110_v53 = vpop.f32.mrf.mxu2  ;;  %v1458_v55 = vsel %vm1218_vm11, %v1106_v9, %v4437_v31 }
 0x157   : > { %v1680_v62 = vrot.slane %v1458_v55, 1  ;;  %v1801_v2 = vrot.slane %v1458_v55, 2 }
 0x158   : > { %v6216_v33 = vpop.f32.mrf.mxu0 }
 0x159   : > { %v6220_v6 = vpop.f32.mrf.mxu1  ;;  %v6227_v14 = vsel %vm1792_vm5, %v1800_v57, %v1801_v2  ;;  %v6236_v9 = vsel %vm1671_vm6, %v1679_v56, %v1680_v62  ;;  %v583_v56 = vld [vmem:[%s6015_s23 + $0x128] sm:$0xff] }
 0x15b   : > { %v5294_v54 = vpop.eup %5293  ;;  %909 = vmatmul.bf16.gmra.mxu0 %v6139_v36  ;;  %1152 = vmatmul.bf16.gmra.mxu2 %v6184_v13 }
 0x15c   : > { %v4438_v29 = vadd.f32 -1.0, %v5294_v54  ;;  %1038 = vmatmul.bf16.gmra.mxu1 %v6218_v5 }
 0x15e   : > { %v1113_v43 = vpop.f32.mrf.mxu2  ;;  %v1459_v34 = vsel %vm1219_vm12, %v1109_v60, %v4438_v29  ;;  %v858_v60 = vadd.f32 %v6073_v10, %v6118_v7 }
 0x15f   : > { %v1114_v20 = vadd.f32 %v1113_v43, %v985_v19  ;;  %v1532_v63 = vsel %vm1512_vm7, %v1459_v34, 0.0  ;;  %v4583_v36 = vpack.c.bf16 %v1459_v34, %v1458_v55  ;;  %v582_v55 = vld [vmem:[%s6015_s23 + $0x120] sm:$0xff] }
 0x160   : > { %v872_v21 = vpop.f32.mrf.mxu0  ;;  %v1682_v25 = vrot.slane %v1532_v63, 1  ;;  %v1803_v27 = vrot.slane %v1532_v63, 2  ;;  %v987_v53 = vadd.f32 %v6121_v11, %v858_v60  ;;  %v6282_v54 = vpack.c.bf16 %v583_v56, %v582_v55  ;;  %v585_v55 = vld [vmem:[%s6015_s23 + $0x138] sm:$0xff] }
 0x161   : > { %v1269_v30 = vmin.f32 %v1114_v20, 0.0  ;;  %v1001_v31 = vpop.f32.mrf.mxu1  ;;  %4584 = vmatmul.msk.bf16.gmra.mxu3 %vm6249_vm13, %v4583_v36  ;;  %vm1221_vm14 = vcmp.gt.f32.partialorder %v1114_v20, 0.0  ;;  %v866_v56 = vadd.f32 %v6073_v10, %v6182_v12 }
 0x162   : > { %v6260_v38 = vsel %vm1792_vm5, %v1801_v2, %v1803_v27  ;;  %v6264_v39 = vsel %vm1792_vm5, %v1803_v27, %v6210_v50  ;;  %v6267_v45 = vsel %vm1671_vm6, %v1680_v62, %v1682_v25  ;;  %v6271_v47 = vsel %vm1671_vm6, %v1682_v25, %v6212_v51 }
 0x163   : > { %v1325_v7 = vmul.f32 1.442695, %v1269_v30 }
 0x165   : > { %5295 = vpow2.f32 %v1325_v7 }
 0x166   : > { %v1115_v57 = vpop.f32.mrf.mxu2 }
 0x167   : > { %v1116_v2 = vadd.f32 %v1115_v57, %v987_v53  ;;  %v584_v53 = vld [vmem:[%s6015_s23 + $0x130] sm:$0xff] }
 0x168   : > { %v6280_v62 = vpop.f32.mrf.mxu0 }
 0x169   : > { %v1270_v19 = vmin.f32 %v1116_v2, 0.0  ;;  %v6284_v29 = vpop.f32.mrf.mxu1  ;;  %vm1222_vm15 = vcmp.gt.f32.partialorder %v1116_v2, 0.0 }
 0x16b   : > { %v5296_v43 = vpop.eup %5295  ;;  %v1327_v34 = vmul.f32 1.442695, %v1270_v19  ;;  %914 = vmatmul.bf16.gmra.mxu0 %v6184_v13  ;;  %1157 = vmatmul.bf16.gmra.mxu2 %v6218_v5 }
 0x16c   : > { %v4440_v63 = vadd.f32 -1.0, %v5296_v43  ;;  %1043 = vmatmul.bf16.gmra.mxu1 %v6282_v54 }
 0x16d   : > { %5297 = vpow2.f32 %v1327_v34 }
 0x16e   : > { %v1118_v11 = vpop.f32.mrf.mxu2  ;;  %v1461_v25 = vsel %vm1221_vm14, %v1114_v20, %v4440_v63 }
 0x16f   : > { %v1119_v36 = vadd.f32 %v1118_v11, %v6151_v48  ;;  %v1534_v31 = vsel %vm1506_vm1, %v1461_v25, 0.0 }
 0x170   : > { %v6290_v21 = vpop.f32.mrf.mxu0  ;;  %v1686_v19 = vrot.slane %v1534_v31, 1  ;;  %v1807_v43 = vrot.slane %v1534_v31, 2  ;;  %v995_v31 = vadd.f32 %v6186_v15, %v866_v56 }
 0x171   : > { %v1271_v27 = vmin.f32 %v1119_v36, 0.0  ;;  %v6292_v60 = vpop.f32.mrf.mxu1  ;;  %vm1223_vm0 = vcmp.gt.f32.partialorder %v1119_v36, 0.0 }
 0x173   : > { %v5298_v30 = vpop.eup %5297  ;;  %v1329_v13 = vmul.f32 1.442695, %v1271_v27  ;;  %v6300_v27 = vpack.c.bf16 %v585_v55, %v584_v53  ;;  %v5078_v53 = vld [vmem:[#allocation7 + $0x78] sm:$0xff]  ;;  %v5085_v55 = vld [vmem:[#allocation7 + $0xb0] sm:$0xff] }
 0x174   : > { %v4441_v7 = vadd.f32 -1.0, %v5298_v30  ;;  %2213 = vmatpush.bf16.msrb.mxu3 %v5078_v53  ;;  %2313 = vmatpush.bf16.msrb.mxu0 %v5085_v55  ;;  %v586_v55 = vld [vmem:[%s6015_s23 + $0x140] sm:$0xff] }
 0x175   : > { %5299 = vpow2.f32 %v1329_v13 }
 0x176   : > { %v1120_v48 = vpop.f32.mrf.mxu2  ;;  %v1462_v57 = vsel %vm1222_vm15, %v1116_v2, %v4441_v7 }
 0x177   : > { %v1687_v20 = vrot.slane %v1462_v57, 1  ;;  %v1808_v34 = vrot.slane %v1462_v57, 2  ;;  %v4586_v63 = vpack.c.bf16 %v1462_v57, %v1461_v25 }
 0x178   : > { %v880_v11 = vpop.f32.mrf.mxu0 }
 0x179   : > { %v881_v52 = vadd.f32 %v6073_v10, %v880_v11  ;;  %v1009_v30 = vpop.f32.mrf.mxu1  ;;  %4587 = vmatmul.msk.bf16.gmra.mxu3 %vm6132_vm4, %v4586_v63  ;;  %v6306_v13 = vsel %vm1792_vm5, %v1807_v43, %v1808_v34  ;;  %v6309_v12 = vsel %vm1671_vm6, %v1686_v19, %v1687_v20  ;;  %v868_v43 = vadd.f32 %v6073_v10, %v6200_v22 }
 0x17b   : > { %v5300_v2 = vpop.eup %5299  ;;  %v6312_v7 = vadd.f32 %v1009_v30, %v881_v52  ;;  %919 = vmatmul.bf16.gmra.mxu0 %v6218_v5  ;;  %1162 = vmatmul.bf16.gmra.mxu2 %v6282_v54  ;;  %v997_v53 = vadd.f32 %v6202_v28, %v868_v43 }
 0x17c   : > { %v4442_v25 = vadd.f32 -1.0, %v5300_v2  ;;  %1048 = vmatmul.bf16.gmra.mxu1 %v6300_v27 }
 0x17e   : > { %v1123_v48 = vpop.f32.mrf.mxu2  ;;  %v1463_v57 = vsel %vm1223_vm0, %v1119_v36, %v4442_v25 }
 0x17f   : > { %v1124_v19 = vadd.f32 %v1123_v48, %v995_v31  ;;  %v6319_v15 = vsel %vm1512_vm7, %v1463_v57, 0.0  ;;  %v5084_v31 = vld [vmem:[#allocation7 + $0xa8] sm:$0xff] }
 0x180   : > { %v882_v5 = vpop.f32.mrf.mxu0  ;;  %v1689_v52 = vrot.slane %v6319_v15, 1  ;;  %v1810_v56 = vrot.slane %v6319_v15, 2  ;;  %v587_v48 = vld [vmem:[%s6015_s23 + $0x148] sm:$0xff]  ;;  %2314 = vmatpush.bf16.msrb.mxu0 %v5084_v31 }
 0x181   : > { %v1273_v63 = vmin.f32 %v1124_v19, 0.0  ;;  %v1011_v11 = vpop.f32.mrf.mxu1  ;;  %v871_v5 = vadd.f32 %v6073_v10, %v6216_v33  ;;  %v6346_v16 = vpack.c.bf16 %v587_v48, %v586_v55  ;;  %vm1225_vm2 = vcmp.gt.f32.partialorder %v1124_v19, 0.0 }
 0x182   : > { %v6328_v36 = vsel %vm1792_vm5, %v1808_v34, %v1810_v56  ;;  %v6333_v30 = vsel %vm1671_vm6, %v1687_v20, %v1689_v52  ;;  %v5083_v11 = vld [vmem:[#allocation7 + $0xa0] sm:$0xff] }
 0x183   : > { %v1333_v2 = vmul.f32 1.442695, %v1273_v63  ;;  %v1000_v28 = vadd.f32 %v6220_v6, %v871_v5  ;;  %v5080_v5 = vld [vmem:[#allocation7 + $0x88] sm:$0xff] }
 0x184   : > { %2315 = vmatpush.bf16.msrb.mxu0 %v5083_v11 }
 0x185   : > { %5301 = vpow2.f32 %v1333_v2  ;;  %v5082_v2 = vld [vmem:[#allocation7 + $0x98] sm:$0xff] }
 0x186   : > { %v1125_v34 = vpop.f32.mrf.mxu2 }
 0x187   : > { %v1126_v20 = vadd.f32 %v1125_v34, %v997_v53  ;;  %v5081_v34 = vld [vmem:[#allocation7 + $0x90] sm:$0xff] }
 0x188   : > { %v6344_v63 = vpop.f32.mrf.mxu0  ;;  %2316 = vmatpush.bf16.msrb.mxu0 %v5082_v2 }
 0x189   : > { %v1274_v1 = vmin.f32 %v1126_v20, 0.0  ;;  %v6348_v25 = vpop.f32.mrf.mxu1  ;;  %vm1226_vm8 = vcmp.gt.f32.partialorder %v1126_v20, 0.0 }
 0x18b   : > { %v5302_v22 = vpop.eup %5301  ;;  %v1335_v43 = vmul.f32 1.442695, %v1274_v1  ;;  %924 = vmatmul.bf16.gmra.mxu0 %v6282_v54  ;;  %1167 = vmatmul.bf16.gmra.mxu2 %v6300_v27 }
 0x18c   : > { %v4444_v33 = vadd.f32 -1.0, %v5302_v22  ;;  %1053 = vmatmul.bf16.gmra.mxu1 %v6346_v16  ;;  %2317 = vmatpush.bf16.msrb.mxu0 %v5081_v34  ;;  %v5079_v34 = vld [vmem:[#allocation7 + $0x80] sm:$0xff] }
 0x18d   : > { %5303 = vpow2.f32 %v1335_v43 }
 0x18e   : > { %v1128_v31 = vpop.f32.mrf.mxu2  ;;  %v1465_v53 = vsel %vm1225_vm2, %v1124_v19, %v4444_v33 }
 0x18f   : > { %v1129_v55 = vadd.f32 %v1128_v31, %v1000_v28  ;;  %v4589_v48 = vpack.c.bf16 %v1465_v53, %v1463_v57  ;;  %v1538_v43 = vsel %vm1506_vm1, %v1465_v53, 0.0  ;;  %v876_v57 = vadd.f32 %v6073_v10, %v6280_v62 }
 0x190   : > { %v6354_v11 = vpop.f32.mrf.mxu0  ;;  %2318 = vmatpush.bf16.msrb.mxu0 %v5080_v5  ;;  %v1693_v2 = vrot.slane %v1538_v43, 1  ;;  %v1814_v33 = vrot.slane %v1538_v43, 2  ;;  %v6372_v53 = vsel %vm1792_vm5, %v1810_v56, %v6210_v50 }
 0x191   : > { %v1275_v6 = vmin.f32 %v1129_v55, 0.0  ;;  %v6356_v1 = vpop.f32.mrf.mxu1  ;;  %4590 = vmatmul.msk.bf16.gmra.mxu3 %vm6196_vm10, %v4589_v48  ;;  %v1005_v5 = vadd.f32 %v6284_v29, %v876_v57  ;;  %vm1227_vm9 = vcmp.gt.f32.partialorder %v1129_v55, 0.0 }
 0x193   : > { %v5304_v54 = vpop.eup %5303  ;;  %v1337_v22 = vmul.f32 1.442695, %v1275_v6 }
 0x194   : > { %v4445_v49 = vadd.f32 -1.0, %v5304_v54  ;;  %2319 = vmatpush.bf16.msrb.mxu0 %v5079_v34 }
 0x195   : > { %5305 = vpow2.f32 %v1337_v22 }
 0x196   : > { %v1130_v19 = vpop.f32.mrf.mxu2  ;;  %v1466_v28 = vsel %vm1226_vm8, %v1126_v20, %v4445_v49  ;;  %v6381_v49 = vsel %vm1671_vm6, %v1689_v52, %v6212_v51  ;;  %v5077_v52 = vld [vmem:[#allocation7 + $0x70] sm:$0xff] }
 0x197   : > { %v1694_v31 = vrot.slane %v1466_v28, 1  ;;  %v1815_v48 = vrot.slane %v1466_v28, 2  ;;  %2214 = vmatpush.bf16.msrb.mxu3 %v5077_v52 }
 0x198   : > { %v6364_v17 = vpop.f32.mrf.mxu0 }
 0x199   : > { %v6366_v6 = vpop.f32.mrf.mxu1  ;;  %v6375_v62 = vsel %vm1792_vm5, %v1814_v33, %v1815_v48  ;;  %v6384_v20 = vsel %vm1671_vm6, %v1693_v2, %v1694_v31 }
 0x19b   : > { %v5306_v56 = vpop.eup %5305  ;;  %929 = vmatmul.bf16.gmra.mxu0 %v6300_v27  ;;  %1172 = vmatmul.bf16.gmra.mxu2 %v6346_v16  ;;  %v878_v27 = vadd.f32 %v6073_v10, %v6290_v21 }
 0x19c   : > { %v4446_v15 = vadd.f32 -1.0, %v5306_v56  ;;  %1058 = vmatmul.bf16.gmra.mxu1 %v6035_v24 }
 0x19e   : > { %v1133_v43 = vpop.f32.mrf.mxu2  ;;  %v1467_v19 = vsel %vm1227_vm9, %v1129_v55, %v4446_v15 }
 0x19f   : > { %v1134_v2 = vadd.f32 %v1133_v43, %v1005_v5  ;;  %v1540_v33 = vsel %vm1512_vm7, %v1467_v19, 0.0  ;;  %v4592_v34 = vpack.c.bf16 %v1467_v19, %v1466_v28 }
 0x1a0   : > { %v892_v22 = vpop.f32.mrf.mxu0  ;;  %v1696_v54 = vrot.slane %v1540_v33, 1  ;;  %v1817_v29 = vrot.slane %v1540_v33, 2 }
 0x1a1   : > { %v1277_v57 = vmin.f32 %v1134_v2, 0.0  ;;  %v1021_v56 = vpop.f32.mrf.mxu1  ;;  %4593 = vmatmul.msk.bf16.gmra.mxu3 %vm6249_vm13, %v4592_v34  ;;  %vm1229_vm11 = vcmp.gt.f32.partialorder %v1134_v2, 0.0 }
 0x1a2   : > { %v6401_v0 = vsel %vm1792_vm5, %v1815_v48, %v1817_v29  ;;  %v6405_v55 = vsel %vm1792_vm5, %v1817_v29, %v6210_v50  ;;  %v6408_v28 = vsel %vm1671_vm6, %v1694_v31, %v1696_v54  ;;  %v6412_v22 = vsel %vm1671_vm6, %v1696_v54, %v6212_v51 }
 0x1a3   : > { %8038 = vst [vmem:[#allocation27_spill] sm:$0xff] %v6408_v28  ;;  %v1341_v21 = vmul.f32 1.442695, %v1277_v57  ;;  %v1007_v48 = vadd.f32 %v6292_v60, %v878_v27 }
 0x1a4   : > { %8039 = vst [vmem:[#allocation28_spill] sm:$0xff] %v6412_v22 }
 0x1a5   : > { %5307 = vpow2.f32 %v1341_v21 }
 0x1a6   : > { %v1135_v52 = vpop.f32.mrf.mxu2 }
 0x1a7   : > { %v1136_v43 = vadd.f32 %v1135_v52, %v1007_v48 }
 0x1a8   : > { %v6419_v19 = vpop.f32.mrf.mxu0 }
 0x1a9   : > { %v1278_v31 = vmin.f32 %v1136_v43, 0.0  ;;  %v6421_v33 = vpop.f32.mrf.mxu1  ;;  %vm1230_vm12 = vcmp.gt.f32.partialorder %v1136_v43, 0.0 }
 0x1ab   : > { %v5308_v34 = vpop.eup %5307  ;;  %v1343_v54 = vmul.f32 1.442695, %v1278_v31  ;;  %934 = vmatmul.bf16.gmra.mxu0 %v6346_v16  ;;  %1177 = vmatmul.bf16.gmra.mxu2 %v6035_v24 }
 0x1ac   : > { %v4448_v29 = vadd.f32 -1.0, %v5308_v34  ;;  %1063 = vmatmul.bf16.gmra.mxu1 %v6044_v37  ;;  %v886_v34 = vadd.f32 %v6073_v10, %v6344_v63 }
 0x1ad   : > { %5309 = vpow2.f32 %v1343_v54 }
 0x1ae   : > { %v1138_v57 = vpop.f32.mrf.mxu2  ;;  %v1469_v56 = vsel %vm1229_vm11, %v1134_v2, %v4448_v29 }
 0x1af   : > { %v1139_v60 = vadd.f32 %v1138_v57, %v6312_v7  ;;  %v1542_v16 = vsel %vm1506_vm1, %v1469_v56, 0.0 }
 0x1b0   : > { %v6427_v27 = vpop.f32.mrf.mxu0  ;;  %v1700_v7 = vrot.slane %v1542_v16, 1  ;;  %v1821_v5 = vrot.slane %v1542_v16, 2 }
 0x1b1   : > { %v1279_v21 = vmin.f32 %v1139_v60, 0.0  ;;  %v6429_v48 = vpop.f32.mrf.mxu1  ;;  %vm1231_vm14 = vcmp.gt.f32.partialorder %v1139_v60, 0.0 }
 0x1b3   : > { %v5310_v52 = vpop.eup %5309  ;;  %v1345_v31 = vmul.f32 1.442695, %v1279_v21 }
 0x1b4   : > { %v4449_v24 = vadd.f32 -1.0, %v5310_v52 }
 0x1b5   : > { %5311 = vpow2.f32 %v1345_v31 }
 0x1b6   : > { %v1140_v54 = vpop.f32.mrf.mxu2  ;;  %v1470_v15 = vsel %vm1230_vm12, %v1136_v43, %v4449_v24  ;;  %v1015_v43 = vadd.f32 %v6348_v25, %v886_v34 }
 0x1b7   : > { %v1701_v57 = vrot.slane %v1470_v15, 1  ;;  %v1822_v2 = vrot.slane %v1470_v15, 2  ;;  %v4595_v29 = vpack.c.bf16 %v1470_v15, %v1469_v56  ;;  %v5094_v56 = vld [vmem:[#allocation8 + $0x38] sm:$0xff] }
 0x1b8   : > { %v900_v28 = vpop.f32.mrf.mxu0  ;;  %3031 = vmatpush.bf16.msrb.mxu1 %v5094_v56  ;;  %v594_v56 = vld [vmem:[%s6015_s23 + $0x180] sm:$0xff] }
 0x1b9   : > { %v901_v22 = vadd.f32 %v6073_v10, %v900_v28  ;;  %v1029_v21 = vpop.f32.mrf.mxu1  ;;  %4596 = vmatmul.msk.bf16.gmra.mxu3 %vm6132_vm4, %v4595_v29  ;;  %v6439_v52 = vsel %vm1792_vm5, %v1821_v5, %v1822_v2  ;;  %v6442_v31 = vsel %vm1671_vm6, %v1700_v7, %v1701_v57  ;;  %v8041_v28 = vpack.c.bf16 %v6166_v58, %v6145_v40  ;;  %v5076_v5 = vld [vmem:[#allocation7 + $0x68] sm:$0xff] }
 0x1ba   : > { %8040 = vst [vmem:[#allocation29_spill] sm:$0xff] %v6442_v31  ;;  %2215 = vmatpush.bf16.msrb.mxu3 %v5076_v5  ;;  %v888_v58 = vadd.f32 %v6073_v10, %v6354_v11  ;;  %v595_v11 = vld [vmem:[%s6015_s23 + $0x188] sm:$0xff] }
 0x1bb   : > { %v5312_v63 = vpop.eup %5311  ;;  %v6445_v24 = vadd.f32 %v1029_v21, %v901_v22  ;;  %1182 = vmatmul.bf16.gmra.mxu2 %v6044_v37  ;;  %2320 = vmatmul.bf16.vlgmr.msrb.gmra.mxu0 %v8041_v28 }
 0x1bc   : > { %v4450_v15 = vadd.f32 -1.0, %v5312_v63  ;;  %1068 = vmatmul.bf16.gmra.mxu1 %v6051_v46 }
 0x1be   : > { %v1143_v16 = vpop.f32.mrf.mxu2  ;;  %v1471_v54 = vsel %vm1231_vm14, %v1139_v60, %v4450_v15  ;;  %v1017_v15 = vadd.f32 %v6356_v1, %v888_v58  ;;  %v8043_v1 = vpack.c.bf16 %v6227_v14, %v6224_v8 }
 0x1bf   : > { %v1144_v25 = vadd.f32 %v1143_v16, %v1015_v43  ;;  %v1544_v37 = vsel %vm1512_vm7, %v1471_v54, 0.0 }
 0x1c0   : > { %v902_v22 = vpop.f32.mrf.mxu0  ;;  %v1703_v34 = vrot.slane %v1544_v37, 1  ;;  %v1824_v40 = vrot.slane %v1544_v37, 2 }
 0x1c1   : > { %v1281_v7 = vmin.f32 %v1144_v25, 0.0  ;;  %v1031_v29 = vpop.f32.mrf.mxu1  ;;  %vm1233_vm15 = vcmp.gt.f32.partialorder %v1144_v25, 0.0 }
 0x1c2   : > { %v6457_v21 = vsel %vm1792_vm5, %v1822_v2, %v1824_v40  ;;  %v6460_v60 = vsel %vm1671_vm6, %v1701_v57, %v1703_v34  ;;  %v891_v2 = vadd.f32 %v6073_v10, %v6364_v17  ;;  %v675_v57 = vpack.c.bf16 %v595_v11, %v594_v56 }
 0x1c3   : > { %8042 = vst [vmem:[#allocation30_spill] sm:$0xff] %v6460_v60  ;;  %v1349_v63 = vmul.f32 1.442695, %v1281_v7 }
 0x1c4   : > { %v1020_v43 = vadd.f32 %v6366_v6, %v891_v2 }
 0x1c5   : > { %5313 = vpow2.f32 %v1349_v63 }
 0x1c6   : > { %v1145_v5 = vpop.f32.mrf.mxu2 }
 0x1c7   : > { %v1146_v16 = vadd.f32 %v1145_v5, %v1017_v15 }
 0x1c8   : > { %v6471_v37 = vpop.f32.mrf.mxu0 }
 0x1c9   : > { %v1282_v22 = vmin.f32 %v1146_v16, 0.0  ;;  %v6473_v7 = vpop.f32.mrf.mxu1  ;;  %vm1234_vm0 = vcmp.gt.f32.partialorder %v1146_v16, 0.0 }
 0x1cb   : > { %v5314_v29 = vpop.eup %5313  ;;  %v1351_v28 = vmul.f32 1.442695, %v1282_v22  ;;  %1187 = vmatmul.bf16.gmra.mxu2 %v6051_v46  ;;  %2325 = vmatmul.bf16.gmra.mxu0 %v8043_v1 }
 0x1cc   : > { %v4452_v58 = vadd.f32 -1.0, %v5314_v29  ;;  %1073 = vmatmul.bf16.gmra.mxu1 %v675_v57 }
 0x1cd   : > { %5315 = vpow2.f32 %v1351_v28  ;;  %v596_v28 = vld [vmem:[%s6015_s23 + $0x190] sm:$0xff] }
 0x1ce   : > { %v1148_v17 = vpop.f32.mrf.mxu2  ;;  %v1473_v63 = vsel %vm1233_vm15, %v1144_v25, %v4452_v58  ;;  %v597_v25 = vld [vmem:[%s6015_s23 + $0x198] sm:$0xff] }
 0x1cf   : > { %v1149_v15 = vadd.f32 %v1148_v17, %v1020_v43  ;;  %v4598_v56 = vpack.c.bf16 %v1473_v63, %v1471_v54  ;;  %v1546_v2 = vsel %vm1506_vm1, %v1473_v63, 0.0  ;;  %v896_v54 = vadd.f32 %v6073_v10, %v6419_v19 }
 0x1d0   : > { %v6480_v11 = vpop.f32.mrf.mxu0  ;;  %v1707_v29 = vrot.slane %v1546_v2, 1  ;;  %v1828_v1 = vrot.slane %v1546_v2, 2  ;;  %v6498_v63 = vsel %vm1792_vm5, %v1824_v40, %v6210_v50  ;;  %v6505_v10 = vsel %vm1671_vm6, %v1703_v34, %v6212_v51  ;;  %v5075_v34 = vld [vmem:[#allocation7 + $0x60] sm:$0xff] }
 0x1d1   : > { %v1283_v6 = vmin.f32 %v1149_v15, 0.0  ;;  %v6482_v5 = vpop.f32.mrf.mxu1  ;;  %4599 = vmatmul.msk.bf16.gmra.mxu3 %vm6196_vm10, %v4598_v56  ;;  %8044 = vst [vmem:[#allocation31_spill] sm:$0xff] %v6505_v10  ;;  %v1025_v40 = vadd.f32 %v6421_v33, %v896_v54  ;;  %vm1235_vm2 = vcmp.gt.f32.partialorder %v1149_v15, 0.0 }
 0x1d2   : > { %2216 = vmatpush.bf16.msrb.mxu3 %v5075_v34 }
 0x1d3   : > { %v5316_v46 = vpop.eup %5315  ;;  %v1353_v8 = vmul.f32 1.442695, %v1283_v6  ;;  %v676_v6 = vpack.c.bf16 %v597_v25, %v596_v28  ;;  %v8046_v28 = vpack.c.bf16 %v6264_v39, %v6260_v38  ;;  %v6523_v38 = vld [vmem:[%s7962_s2] ss:$0 sm:$0xff] }
 0x1d4   : > { %v4453_v14 = vadd.f32 -1.0, %v5316_v46  ;;  %v898_v39 = vadd.f32 %v6523_v38, %v6427_v27 }
 0x1d5   : > { %5317 = vpow2.f32 %v1353_v8 }
 0x1d6   : > { %v1150_v43 = vpop.f32.mrf.mxu2  ;;  %v1474_v22 = vsel %vm1234_vm0, %v1146_v16, %v4453_v14 }
 0x1d7   : > { %v1708_v58 = vrot.slane %v1474_v22, 1  ;;  %v1829_v17 = vrot.slane %v1474_v22, 2 }
 0x1d8   : > { %v6492_v56 = vpop.f32.mrf.mxu0 }
 0x1d9   : > { %v6494_v46 = vpop.f32.mrf.mxu1  ;;  %v6501_v8 = vsel %vm1792_vm5, %v1828_v1, %v1829_v17  ;;  %v6508_v19 = vsel %vm1671_vm6, %v1707_v29, %v1708_v58 }
 0x1da   : > { %8045 = vst [vmem:[#allocation32_spill] sm:$0xff] %v6508_v19 }
 0x1db   : > { %v5318_v2 = vpop.eup %5317  ;;  %1192 = vmatmul.bf16.gmra.mxu2 %v675_v57  ;;  %2330 = vmatmul.bf16.gmra.mxu0 %v8046_v28 }
 0x1dc   : > { %v4454_v25 = vadd.f32 -1.0, %v5318_v2  ;;  %1078 = vmatmul.bf16.gmra.mxu1 %v676_v6 }
 0x1de   : > { %v1153_v43 = vpop.f32.mrf.mxu2  ;;  %v1475_v29 = vsel %vm1235_vm2, %v1149_v15, %v4454_v25 }
 0x1df   : > { %v1154_v1 = vadd.f32 %v1153_v43, %v1025_v40  ;;  %v1548_v16 = vsel %vm1512_vm7, %v1475_v29, 0.0  ;;  %v4601_v31 = vpack.c.bf16 %v1475_v29, %v1474_v22  ;;  %v6552_v43 = vpop.f32.mrf.mxu3 }
 0x1e0   : > { %v912_v14 = vpop.f32.mrf.mxu0  ;;  %v1710_v10 = vrot.slane %v1548_v16, 1  ;;  %v1831_v33 = vrot.slane %v1548_v16, 2  ;;  %8049 = vst [vmem:[#allocation35_spill] sm:$0xff] %v6552_v43 }
 0x1e1   : > { %v1285_v57 = vmin.f32 %v1154_v1, 0.0  ;;  %v1041_v54 = vpop.f32.mrf.mxu1  ;;  %4602 = vmatmul.msk.bf16.gmra.mxu3 %vm6249_vm13, %v4601_v31  ;;  %vm1237_vm8 = vcmp.gt.f32.partialorder %v1154_v1, 0.0 }
 0x1e2   : > { %v6530_v15 = vsel %vm1792_vm5, %v1829_v17, %v1831_v33  ;;  %v6534_v22 = vsel %vm1792_vm5, %v1831_v33, %v6210_v50  ;;  %v6537_v16 = vsel %vm1671_vm6, %v1708_v58, %v1710_v10  ;;  %v6541_v14 = vsel %vm1671_vm6, %v1710_v10, %v6212_v51 }
 0x1e3   : > { %8047 = vst [vmem:[#allocation33_spill] sm:$0xff] %v6537_v16  ;;  %v1357_v27 = vmul.f32 1.442695, %v1285_v57  ;;  %v1027_v17 = vadd.f32 %v6429_v48, %v898_v39  ;;  %v8050_v33 = vpack.c.bf16 %v6328_v36, %v6306_v13  ;;  %v5093_v39 = vld [vmem:[#allocation8 + $0x30] sm:$0xff]  ;;  %v598_v36 = vld [vmem:[%s6015_s23 + $0x1a0] sm:$0xff] }
 0x1e4   : > { %8048 = vst [vmem:[#allocation34_spill] sm:$0xff] %v6541_v14  ;;  %3032 = vmatpush.bf16.msrb.mxu1 %v5093_v39 }
 0x1e5   : > { %5319 = vpow2.f32 %v1357_v27 }
 0x1e6   : > { %v1155_v40 = vpop.f32.mrf.mxu2 }
 0x1e7   : > { %v1156_v28 = vadd.f32 %v1155_v40, %v1027_v17 }
 0x1e8   : > { %v6548_v25 = vpop.f32.mrf.mxu0 }
 0x1e9   : > { %v1286_v58 = vmin.f32 %v1156_v28, 0.0  ;;  %v6550_v34 = vpop.f32.mrf.mxu1  ;;  %vm1238_vm9 = vcmp.gt.f32.partialorder %v1156_v28, 0.0 }
 0x1eb   : > { %v5320_v10 = vpop.eup %5319  ;;  %v1359_v29 = vmul.f32 1.442695, %v1286_v58  ;;  %1197 = vmatmul.bf16.gmra.mxu2 %v676_v6  ;;  %2335 = vmatmul.bf16.gmra.mxu0 %v8050_v33  ;;  %v6566_v33 = vpop.f32.mrf.mxu3 }
 0x1ec   : > { %v4456_v48 = vadd.f32 -1.0, %v5320_v10  ;;  %v599_v10 = vld [vmem:[%s6015_s23 + $0x1a8] sm:$0xff] }
 0x1ed   : > { %5321 = vpow2.f32 %v1359_v29 }
 0x1ee   : > { %v1158_v57 = vpop.f32.mrf.mxu2  ;;  %v1477_v17 = vsel %vm1237_vm8, %v1154_v1, %v4456_v48 }
 0x1ef   : > { %v1159_v54 = vadd.f32 %v1158_v57, %v6445_v24  ;;  %v1550_v13 = vsel %vm1506_vm1, %v1477_v17, 0.0  ;;  %v906_v24 = vadd.f32 %v6523_v38, %v6471_v37  ;;  %v677_v57 = vpack.c.bf16 %v599_v10, %v598_v36 }
 0x1f0   : > { %v6558_v27 = vpop.f32.mrf.mxu0  ;;  %v1714_v48 = vrot.slane %v1550_v13, 1  ;;  %v1835_v43 = vrot.slane %v1550_v13, 2 }
 0x1f1   : > { %v1287_v40 = vmin.f32 %v1159_v54, 0.0  ;;  %v6560_v58 = vpop.f32.mrf.mxu1  ;;  %vm1239_vm11 = vcmp.gt.f32.partialorder %v1159_v54, 0.0 }
 0x1f3   : > { %v5322_v6 = vpop.eup %5321  ;;  %v1361_v31 = vmul.f32 1.442695, %v1287_v40 }
 0x1f4   : > { %v4457_v29 = vadd.f32 -1.0, %v5322_v6  ;;  %v1035_v6 = vadd.f32 %v6473_v7, %v906_v24  ;;  %v908_v24 = vadd.f32 %v6523_v38, %v6480_v11 }
 0x1f5   : > { %5323 = vpow2.f32 %v1361_v31 }
 0x1f6   : > { %v1160_v39 = vpop.f32.mrf.mxu2  ;;  %v1478_v1 = vsel %vm1238_vm9, %v1156_v28, %v4457_v29 }
 0x1f7   : > { %v1715_v2 = vrot.slane %v1478_v1, 1  ;;  %v1836_v40 = vrot.slane %v1478_v1, 2  ;;  %v4604_v16 = vpack.c.bf16 %v1478_v1, %v1477_v17  ;;  %v8051_v17 = vpack.c.bf16 %v6375_v62, %v6372_v53 }
 0x1f8   : > { %v920_v14 = vpop.f32.mrf.mxu0 }
 0x1f9   : > { %v921_v19 = vadd.f32 %v6523_v38, %v920_v14  ;;  %v1049_v60 = vpop.f32.mrf.mxu1  ;;  %4605 = vmatmul.msk.bf16.gmra.mxu3 %vm6132_vm4, %v4604_v16  ;;  %v6574_v31 = vsel %vm1792_vm5, %v1835_v43, %v1836_v40  ;;  %v6577_v37 = vsel %vm1671_vm6, %v1714_v48, %v1715_v2  ;;  %v6585_v14 = vpop.f32.mrf.mxu3 }
 0x1fa   : > { %8052 = vst [vmem:[#allocation36_spill] sm:$0xff] %v6585_v14 }
 0x1fb   : > { %v5324_v28 = vpop.eup %5323  ;;  %v6580_v36 = vadd.f32 %v1049_v60, %v921_v19  ;;  %1202 = vmatmul.bf16.gmra.mxu2 %v677_v57  ;;  %2340 = vmatmul.bf16.gmra.mxu0 %v8051_v17  ;;  %v1037_v17 = vadd.f32 %v6482_v5, %v908_v24  ;;  %v8054_v5 = vpack.c.bf16 %v6405_v55, %v6401_v0 }
 0x1fc   : > { %v4458_v13 = vadd.f32 -1.0, %v5324_v28  ;;  %v600_v28 = vld [vmem:[%s6015_s23 + $0x1b0] sm:$0xff] }
 0x1fe   : > { %v1163_v16 = vpop.f32.mrf.mxu2  ;;  %v1479_v43 = vsel %vm1239_vm11, %v1159_v54, %v4458_v13 }
 0x1ff   : > { %v1164_v10 = vadd.f32 %v1163_v16, %v1035_v6  ;;  %v1552_v29 = vsel %vm1512_vm7, %v1479_v43, 0.0  ;;  %v601_v6 = vld [vmem:[%s6015_s23 + $0x1b8] sm:$0xff] }
 0x200   : > { %v922_v7 = vpop.f32.mrf.mxu0  ;;  %v1717_v60 = vrot.slane %v1552_v29, 1  ;;  %v1838_v19 = vrot.slane %v1552_v29, 2  ;;  %v678_v16 = vpack.c.bf16 %v601_v6, %v600_v28 }
 0x201   : > { %v1289_v53 = vmin.f32 %v1164_v10, 0.0  ;;  %v1051_v62 = vpop.f32.mrf.mxu1  ;;  %v6604_v11 = vpop.f32.mrf.mxu3  ;;  %vm1241_vm12 = vcmp.gt.f32.partialorder %v1164_v10, 0.0 }
 0x202   : > { %v6592_v39 = vsel %vm1792_vm5, %v1836_v40, %v1838_v19  ;;  %v6595_v1 = vsel %vm1671_vm6, %v1715_v2, %v1717_v60  ;;  %8053 = vst [vmem:[#allocation37_spill] sm:$0xff] %v6604_v11  ;;  %v911_v40 = vadd.f32 %v6523_v38, %v6492_v56  ;;  %v5074_v11 = vld [vmem:[#allocation7 + $0x58] sm:$0xff] }
 0x203   : > { %v1365_v48 = vmul.f32 1.442695, %v1289_v53  ;;  %2217 = vmatpush.bf16.msrb.mxu3 %v5074_v11 }
 0x204   : > { %v1040_v57 = vadd.f32 %v6494_v46, %v911_v40 }
 0x205   : > { %5325 = vpow2.f32 %v1365_v48 }
 0x206   : > { %v1165_v13 = vpop.f32.mrf.mxu2 }
 0x207   : > { %v1166_v2 = vadd.f32 %v1165_v13, %v1037_v17 }
 0x208   : > { %v6608_v29 = vpop.f32.mrf.mxu0 }
 0x209   : > { %v1290_v7 = vmin.f32 %v1166_v2, 0.0  ;;  %v6610_v53 = vpop.f32.mrf.mxu1  ;;  %v6616_v17 = vpop.f32.mrf.mxu3  ;;  %vm1242_vm14 = vcmp.gt.f32.partialorder %v1166_v2, 0.0 }
 0x20b   : > { %v5326_v62 = vpop.eup %5325  ;;  %v1367_v54 = vmul.f32 1.442695, %v1290_v7  ;;  %1207 = vmatmul.bf16.gmra.mxu2 %v678_v16  ;;  %2345 = vmatmul.bf16.gmra.mxu0 %v8054_v5 }
 0x20c   : > { %v4460_v24 = vadd.f32 -1.0, %v5326_v62 }
 0x20d   : > { %5327 = vpow2.f32 %v1367_v54 }
 0x20e   : > { %v1168_v56 = vpop.f32.mrf.mxu2  ;;  %v1481_v48 = vsel %vm1241_vm12, %v1164_v10, %v4460_v24  ;;  %v6638_v24 = vsel %vm1792_vm5, %v1838_v19, %v6210_v50 }
 0x20f   : > { %v1169_v28 = vadd.f32 %v1168_v56, %v1040_v57  ;;  %v4607_v6 = vpack.c.bf16 %v1481_v48, %v1479_v43  ;;  %v1554_v10 = vsel %vm1506_vm1, %v1481_v48, 0.0  ;;  %v916_v43 = vadd.f32 %v6523_v38, %v6548_v25 }
 0x210   : > { %v6618_v13 = vpop.f32.mrf.mxu0  ;;  %v1721_v16 = vrot.slane %v1554_v10, 1  ;;  %v1842_v7 = vrot.slane %v1554_v10, 2 }
 0x211   : > { %v1291_v14 = vmin.f32 %v1169_v28, 0.0  ;;  %v6620_v46 = vpop.f32.mrf.mxu1  ;;  %4608 = vmatmul.msk.bf16.gmra.mxu3 %vm6196_vm10, %v4607_v6  ;;  %v6652_v48 = vpop.f32.mrf.mxu3  ;;  %vm1243_vm15 = vcmp.gt.f32.partialorder %v1169_v28, 0.0 }
 0x212   : > { %8055 = vst [vmem:[#allocation38_spill] sm:$0xff] %v6652_v48  ;;  %v5092_v48 = vld [vmem:[#allocation8 + $0x28] sm:$0xff] }
 0x213   : > { %v5328_v0 = vpop.eup %5327  ;;  %v1369_v55 = vmul.f32 1.442695, %v1291_v14  ;;  %3033 = vmatpush.bf16.msrb.mxu1 %v5092_v48 }
 0x214   : > { %v4461_v40 = vadd.f32 -1.0, %v5328_v0 }
 0x215   : > { %5329 = vpow2.f32 %v1369_v55  ;;  %v1045_v55 = vadd.f32 %v6550_v34, %v916_v43  ;;  %v918_v34 = vadd.f32 %v6523_v38, %v6558_v27 }
 0x216   : > { %v1170_v54 = vpop.f32.mrf.mxu2  ;;  %v6628_v57 = vsel %vm1242_vm14, %v1166_v2, %v4461_v40  ;;  %v6647_v2 = vsel %vm1671_vm6, %v1717_v60, %v6212_v51  ;;  %v8056_v40 = vpack.c.bf16 %v6457_v21, %v6439_v52 }
 0x217   : > { %v1722_v62 = vrot.slane %v6628_v57, 1  ;;  %v7993_v11 = vrot.slane %v6628_v57, 2  ;;  %v1047_v27 = vadd.f32 %v6560_v58, %v918_v34  ;;  %v5073_v58 = vld [vmem:[#allocation7 + $0x50] sm:$0xff] }
 0x218   : > { %v6632_v5 = vpop.f32.mrf.mxu0  ;;  %2218 = vmatpush.bf16.msrb.mxu3 %v5073_v58 }
 0x219   : > { %v6634_v14 = vpop.f32.mrf.mxu1  ;;  %v6643_v25 = vsel %vm1792_vm5, %v1842_v7, %v7993_v11  ;;  %v6650_v56 = vsel %vm1671_vm6, %v1721_v16, %v1722_v62 }
 0x21b   : > { %v5330_v0 = vpop.eup %5329  ;;  %2350 = vmatmul.bf16.gmra.mxu0 %v8056_v40 }
 0x21c   : > { %v4462_v60 = vadd.f32 -1.0, %v5330_v0 }
 0x21e   : > { %v1173_v10 = vpop.f32.mrf.mxu2  ;;  %v1483_v54 = vsel %vm1243_vm15, %v1169_v28, %v4462_v60  ;;  %v6672_v28 = vpop.f32.mrf.mxu3 }
 0x21f   : > { %v1174_v16 = vadd.f32 %v1173_v10, %v1045_v55  ;;  %v6664_v7 = vsel %vm1512_vm7, %v1483_v54, 0.0  ;;  %v4610_v11 = vpack.c.bf16 %v1483_v54, %v6628_v57  ;;  %8057 = vst [vmem:[#allocation39_spill] sm:$0xff] %v6672_v28 }
 0x220   : > { %v932_v6 = vpop.f32.mrf.mxu0  ;;  %v1724_v19 = vrot.slane %v6664_v7, 1 }
 0x221   : > { %v1293_v52 = vmin.f32 %v1174_v16, 0.0  ;;  %v1061_v21 = vpop.f32.mrf.mxu1  ;;  %4611 = vmatmul.msk.bf16.gmra.mxu3 %vm6249_vm13, %v4610_v11  ;;  %vm1245_vm0 = vcmp.gt.f32.partialorder %v1174_v16, 0.0 }
 0x222   : > { %v6675_v43 = vsel %vm1671_vm6, %v1722_v62, %v1724_v19  ;;  %v6679_v6 = vsel %vm1671_vm6, %v1724_v19, %v6212_v51  ;;  %v8058_v62 = vpack.c.bf16 %v6501_v8, %v6498_v63 }
 0x223   : > { %v1373_v0 = vmul.f32 1.442695, %v1293_v52 }
 0x225   : > { %5331 = vpow2.f32 %v1373_v0 }
 0x226   : > { %v1175_v40 = vpop.f32.mrf.mxu2  ;;  %v6689_v19 = vpop.f32.mrf.mxu3 }
 0x227   : > { %v1176_v60 = vadd.f32 %v1175_v40, %v1047_v27 }
 0x229   : > { %v1294_v11 = vmin.f32 %v1176_v60, 0.0  ;;  %v6684_v10 = vpop.f32.mrf.mxu1  ;;  %vm1246_vm2 = vcmp.gt.f32.partialorder %v1176_v60, 0.0 }
 0x22b   : > { %v5332_v48 = vpop.eup %5331  ;;  %v1375_v54 = vmul.f32 1.442695, %v1294_v11  ;;  %2355 = vmatmul.bf16.gmra.mxu0 %v8058_v62 }
 0x22c   : > { %v4464_v52 = vadd.f32 -1.0, %v5332_v48 }
 0x22d   : > { %5333 = vpow2.f32 %v1375_v54 }
 0x22e   : > { %v1178_v21 = vpop.f32.mrf.mxu2  ;;  %v1485_v34 = vsel %vm1245_vm0, %v1174_v16, %v4464_v52  ;;  %v6694_v28 = vpop.f32.mrf.mxu3  ;;  %v926_v16 = vadd.f32 %v6523_v38, %v6608_v29 }
 0x22f   : > { %v1179_v55 = vadd.f32 %v1178_v21, %v6580_v36  ;;  %8059 = vst [vmem:[#allocation40_spill] sm:$0xff] %v6694_v28  ;;  %v6698_v63 = vsel %vm1506_vm1, %v1485_v34, 0.0  ;;  %v941_v21 = vadd.f32 %v6523_v38, %v6066_v4 }
 0x230   : > { %v1728_v54 = vrot.slane %v6698_v63, 1  ;;  %v1055_v29 = vadd.f32 %v6610_v53, %v926_v16  ;;  %v928_v53 = vadd.f32 %v6523_v38, %v6618_v13  ;;  %v935_v13 = vpop.f32.mrf.mxu0 }
 0x231   : > { %v1295_v0 = vmin.f32 %v1179_v55, 0.0  ;;  %v6692_v27 = vpop.f32.mrf.mxu1  ;;  %vm1247_vm8 = vcmp.gt.f32.partialorder %v1179_v55, 0.0 }
 0x233   : > { %v5334_v40 = vpop.eup %5333  ;;  %v1377_v11 = vmul.f32 1.442695, %v1295_v0 }
 0x234   : > { %v4465_v8 = vadd.f32 -1.0, %v5334_v40 }
 0x235   : > { %5335 = vpow2.f32 %v1377_v11  ;;  %v8061_v11 = vpack.c.bf16 %v6534_v22, %v6530_v15 }
 0x236   : > { %v6700_v48 = vsel %vm1246_vm2, %v1176_v60, %v4465_v8  ;;  %v1180_v36 = vpop.f32.mrf.mxu2  ;;  %v6720_v8 = vpop.f32.mrf.mxu3 }
 0x237   : > { %v1729_v62 = vrot.slane %v6700_v48, 1  ;;  %v4613_v52 = vpack.c.bf16 %v6700_v48, %v1485_v34  ;;  %8062 = vst [vmem:[#allocation42_spill] sm:$0xff] %v6720_v8 }
 0x239   : > { %v1069_v58 = vpop.f32.mrf.mxu1  ;;  %4614 = vmatmul.msk.bf16.gmra.mxu3 %vm6132_vm4, %v4613_v52  ;;  %v6712_v60 = vsel %vm1671_vm6, %v1728_v54, %v1729_v62 }
 0x23a   : > { %8060 = vst [vmem:[#allocation41_spill] sm:$0xff] %v6712_v60  ;;  %v6714_v0 = vadd.f32 %v1069_v58, %v941_v21 }
 0x23b   : > { %v5336_v40 = vpop.eup %5335  ;;  %2360 = vmatmul.bf16.gmra.mxu0 %v8061_v11 }
 0x23c   : > { %v4466_v34 = vadd.f32 -1.0, %v5336_v40  ;;  %v1057_v40 = vadd.f32 %v6620_v46, %v928_v53 }
 0x23e   : > { %v1487_v4 = vsel %vm1247_vm8, %v1179_v55, %v4466_v34  ;;  %v1183_v36 = vpop.f32.mrf.mxu2  ;;  %v8064_v55 = vpack.c.bf16 %v6592_v39, %v6574_v31  ;;  %v937_v31 = vpop.f32.mrf.mxu0 }
 0x23f   : > { %v6724_v52 = vsel %vm1512_vm7, %v1487_v4, 0.0  ;;  %v1184_v54 = vadd.f32 %v1183_v36, %v1055_v29  ;;  %v931_v29 = vadd.f32 %v6523_v38, %v6632_v5  ;;  %v6737_v36 = vpop.f32.mrf.mxu3 }
 0x240   : > { %v1731_v21 = vrot.slane %v6724_v52, 1  ;;  %8063 = vst [vmem:[#allocation43_spill] sm:$0xff] %v6737_v36 }
 0x241   : > { %v1297_v16 = vmin.f32 %v1184_v54, 0.0  ;;  %v1071_v58 = vpop.f32.mrf.mxu1  ;;  %vm1249_vm9 = vcmp.gt.f32.partialorder %v1184_v54, 0.0 }
 0x242   : > { %v6730_v15 = vsel %vm1671_vm6, %v1729_v62, %v1731_v21 }
 0x243   : > { %v1381_v22 = vmul.f32 1.442695, %v1297_v16  ;;  %v1060_v16 = vadd.f32 %v6634_v14, %v931_v29  ;;  %v936_v29 = vadd.f32 %v6523_v38, %v935_v13 }
 0x245   : > { %5337 = vpow2.f32 %v1381_v22 }
 0x246   : > { %v1185_v11 = vpop.f32.mrf.mxu2 }
 0x247   : > { %v1186_v34 = vadd.f32 %v1185_v11, %v1057_v40  ;;  %v5091_v11 = vld [vmem:[#allocation8 + $0x20] sm:$0xff]  ;;  %v6749_v14 = vpop.f32.mrf.mxu3 }
 0x248   : > { %8065 = vst [vmem:[#allocation44_spill] sm:$0xff] %v6749_v14  ;;  %3034 = vmatpush.bf16.msrb.mxu1 %v5091_v11  ;;  %v1065_v11 = vadd.f32 %v6684_v10, %v936_v29  ;;  %v938_v10 = vadd.f32 %v6523_v38, %v937_v31 }
 0x249   : > { %v1298_v8 = vmin.f32 %v1186_v34, 0.0  ;;  %v6739_v58 = vpop.f32.mrf.mxu1  ;;  %vm1250_vm11 = vcmp.gt.f32.partialorder %v1186_v34, 0.0 }
 0x24a   : > { %v1067_v31 = vadd.f32 %v6692_v27, %v938_v10 }
 0x24b   : > { %v5338_v62 = vpop.eup %5337  ;;  %v1383_v28 = vmul.f32 1.442695, %v1298_v8  ;;  %2365 = vmatmul.bf16.gmra.mxu0 %v8064_v55 }
 0x24c   : > { %v4468_v46 = vadd.f32 -1.0, %v5338_v62 }
 0x24d   : > { %5339 = vpow2.f32 %v1383_v28 }
 0x24e   : > { %v1489_v53 = vsel %vm1249_vm9, %v1184_v54, %v4468_v46  ;;  %v1188_v5 = vpop.f32.mrf.mxu2  ;;  %v5072_v46 = vld [vmem:[#allocation7 + $0x48] sm:$0xff] }
 0x24f   : > { %v4616_v22 = vpack.c.bf16 %v1489_v53, %v1487_v4  ;;  %v1189_v40 = vadd.f32 %v1188_v5, %v1060_v16  ;;  %v6753_v28 = vsel %vm1506_vm1, %v1489_v53, 0.0  ;;  %2219 = vmatpush.bf16.msrb.mxu3 %v5072_v46 }
 0x250   : > { %v1735_v62 = vrot.slane %v6753_v28, 1 }
 0x251   : > { %v1299_v36 = vmin.f32 %v1189_v40, 0.0  ;;  %v6745_v60 = vpop.f32.mrf.mxu1  ;;  %4617 = vmatmul.msk.bf16.gmra.mxu3 %vm6196_vm10, %v4616_v22  ;;  %vm1251_vm12 = vcmp.gt.f32.partialorder %v1189_v40, 0.0 }
 0x253   : > { %v5340_v8 = vpop.eup %5339  ;;  %v1385_v39 = vmul.f32 1.442695, %v1299_v36  ;;  %v6764_v36 = vsel %vm1671_vm6, %v1731_v21, %v6212_v51 }
 0x254   : > { %v4469_v54 = vadd.f32 -1.0, %v5340_v8  ;;  %v8067_v8 = vpack.c.bf16 %v6643_v25, %v6638_v24  ;;  %v1845_v25 = vrot.slane %v6664_v7, 2 }
 0x255   : > { %5341 = vpow2.f32 %v1385_v39 }
 0x256   : > { %v6755_v4 = vsel %vm1250_vm11, %v1186_v34, %v4469_v54  ;;  %v1190_v55 = vpop.f32.mrf.mxu2  ;;  %v6769_v34 = vpop.f32.mrf.mxu3 }
 0x257   : > { %v1736_v16 = vrot.slane %v6755_v4, 1  ;;  %8066 = vst [vmem:[#allocation45_spill] sm:$0xff] %v6769_v34  ;;  %v6777_v54 = vpop.f32.mrf.mxu0 }
 0x259   : > { %v6760_v5 = vpop.f32.mrf.mxu1  ;;  %v6767_v53 = vsel %vm1671_vm6, %v1735_v62, %v1736_v16 }
 0x25b   : > { %v5342_v22 = vpop.eup %5341  ;;  %2370 = vmatmul.bf16.gmra.mxu0 %v8067_v8 }
 0x25c   : > { %v4470_v39 = vadd.f32 -1.0, %v5342_v22 }
 0x25e   : > { %v1491_v21 = vsel %vm1251_vm12, %v1189_v40, %v4470_v39  ;;  %v1193_v55 = vpop.f32.mrf.mxu2  ;;  %v6798_v39 = vpop.f32.mrf.mxu3 }
 0x25f   : > { %v6781_v62 = vsel %vm1512_vm7, %v1491_v21, 0.0  ;;  %v4619_v46 = vpack.c.bf16 %v1491_v21, %v6755_v4  ;;  %v1194_v13 = vadd.f32 %v1193_v55, %v1065_v11  ;;  %8069 = vst [vmem:[#allocation47_spill] sm:$0xff] %v6798_v39  ;;  %v8070_v55 = vrot.slane %v6628_v57, 2 }
 0x260   : > { %v1738_v34 = vrot.slane %v6781_v62, 1 }
 0x261   : > { %v1301_v29 = vmin.f32 %v1194_v13, 0.0  ;;  %4620 = vmatmul.msk.bf16.gmra.mxu3 %vm6249_vm13, %v4619_v46  ;;  %v1081_v24 = vpop.f32.mrf.mxu1  ;;  %v1846_v7 = vsel %vm1792_vm5, %v8070_v55, %v1845_v25  ;;  %v6806_v46 = vpop.f32.mrf.mxu0  ;;  %vm1253_vm14 = vcmp.gt.f32.partialorder %v1194_v13, 0.0 }
 0x262   : > { %v6790_v40 = vsel %vm1671_vm6, %v1736_v16, %v1738_v34  ;;  %v6794_v22 = vsel %vm1671_vm6, %v1738_v34, %v6212_v51  ;;  %v1848_v16 = vsel %vm1792_vm5, %v1845_v25, %v6210_v50 }
 0x263   : > { %8068 = vst [vmem:[#allocation46_spill] sm:$0xff] %v6790_v40  ;;  %v1389_v8 = vmul.f32 1.442695, %v1301_v29  ;;  %v1948_v24 = vpack.c.bf16 %v1848_v16, %v1846_v7  ;;  %v1852_v40 = vrot.slane %v6724_v52, 2  ;;  %v1850_v7 = vrot.slane %v6700_v48, 2 }
 0x265   : > { %5343 = vpow2.f32 %v1389_v8  ;;  %v1853_v52 = vsel %vm1792_vm5, %v1850_v7, %v1852_v40 }
 0x266   : > { %v1195_v21 = vpop.f32.mrf.mxu2  ;;  %v6808_v39 = vpop.f32.mrf.mxu3 }
 0x267   : > { %v1196_v34 = vadd.f32 %v1195_v21, %v1067_v31 }
 0x269   : > { %v1302_v29 = vmin.f32 %v1196_v34, 0.0  ;;  %v6811_v8 = vpop.f32.mrf.mxu0  ;;  %vm1254_vm15 = vcmp.gt.f32.partialorder %v1196_v34, 0.0 }
 0x26b   : > { %v5344_v14 = vpop.eup %5343  ;;  %v1391_v11 = vmul.f32 1.442695, %v1302_v29  ;;  %2375 = vmatmul.bf16.gmra.mxu0 %v1948_v24 }
 0x26c   : > { %v4472_v27 = vadd.f32 -1.0, %v5344_v14 }
 0x26d   : > { %5345 = vpow2.f32 %v1391_v11 }
 0x26e   : > { %v1198_v10 = vpop.f32.mrf.mxu2  ;;  %v1493_v55 = vsel %vm1253_vm14, %v1194_v13, %v4472_v27  ;;  %v6820_v11 = vpop.f32.mrf.mxu3 }
 0x26f   : > { %v1199_v57 = vadd.f32 %v1198_v10, %v6714_v0  ;;  %v6817_v16 = vsel %vm1506_vm1, %v1493_v55, 0.0  ;;  %v1849_v0 = vrot.slane %v6698_v63, 2  ;;  %8071 = vst [vmem:[#allocation48_spill] sm:$0xff] %v6820_v11  ;;  %v5071_v10 = vld [vmem:[#allocation7 + $0x40] sm:$0xff] }
 0x270   : > { %v1742_v24 = vrot.slane %v6817_v16, 1  ;;  %2220 = vmatpush.bf16.msrb.mxu3 %v5071_v10  ;;  %v5090_v10 = vld [vmem:[#allocation8 + $0x18] sm:$0xff] }
 0x271   : > { %v1303_v25 = vmin.f32 %v1199_v57, 0.0  ;;  %vm1255_vm0 = vcmp.gt.f32.partialorder %v1199_v57, 0.0  ;;  %3035 = vmatpush.bf16.msrb.mxu1 %v5090_v10 }
 0x273   : > { %v5346_v31 = vpop.eup %5345  ;;  %v1393_v21 = vmul.f32 1.442695, %v1303_v25  ;;  %v5102_v25 = vld [vmem:[#allocation8 + $0x78] sm:$0xff] }
 0x274   : > { %v4473_v14 = vadd.f32 -1.0, %v5346_v31  ;;  %v1851_v31 = vsel %vm1792_vm5, %v1849_v0, %v1850_v7  ;;  %3100 = vmatpush.bf16.msra.mxu2 %v5102_v25  ;;  %v1857_v25 = vrot.slane %v6755_v4, 2 }
 0x275   : > { %5347 = vpow2.f32 %v1393_v21  ;;  %v1951_v63 = vpack.c.bf16 %v1853_v52, %v1851_v31 }
 0x276   : > { %v6822_v29 = vsel %vm1254_vm15, %v1196_v34, %v4473_v14  ;;  %v1200_v13 = vpop.f32.mrf.mxu2  ;;  %v946_v14 = vadd.f32 %v6523_v38, %v6078_v18 }
 0x277   : > { %v1743_v48 = vrot.slane %v6822_v29, 1  ;;  %v4622_v27 = vpack.c.bf16 %v6822_v29, %v1493_v55  ;;  %v6836_v13 = vpop.f32.mrf.mxu0  ;;  %v1864_v42 = vrot.slane %v6822_v29, 2 }
 0x278   : > { %v1075_v11 = vadd.f32 %v6739_v58, %v946_v14  ;;  %v948_v58 = vadd.f32 %v6523_v38, %v6082_v26 }
 0x279   : > { %4623 = vmatmul.msk.bf16.gmra.mxu3 %vm6132_vm4, %v4622_v27  ;;  %v6832_v34 = vsel %vm1671_vm6, %v1742_v24, %v1743_v48  ;;  %v6843_v24 = vpop.f32.mrf.mxu3 }
 0x27a   : > { %8072 = vst [vmem:[#allocation49_spill] sm:$0xff] %v6843_v24 }
 0x27b   : > { %v5348_v21 = vpop.eup %5347  ;;  %2380 = vmatmul.bf16.gmra.mxu0 %v1951_v63 }
 0x27c   : > { %v4474_v55 = vadd.f32 -1.0, %v5348_v21  ;;  %v1077_v21 = vadd.f32 %v6745_v60, %v948_v58 }
 0x27e   : > { %v1495_v7 = vsel %vm1255_vm0, %v1199_v57, %v4474_v55  ;;  %v1203_v23 = vpop.f32.mrf.mxu2 }
 0x27f   : > { %v6841_v0 = vsel %vm1512_vm7, %v1495_v7, 0.0  ;;  %v1204_v52 = vadd.f32 %v1203_v23, %v1075_v11  ;;  %v1856_v11 = vrot.slane %v6753_v28, 2  ;;  %v6856_v14 = vpop.f32.mrf.mxu0  ;;  %v951_v28 = vadd.f32 %v6523_v38, %v6088_v32 }
 0x280   : > { %v1745_v27 = vrot.slane %v6841_v0, 1 }
 0x281   : > { %v1305_v18 = vmin.f32 %v1204_v52, 0.0  ;;  %v1858_v4 = vsel %vm1792_vm5, %v1856_v11, %v1857_v25  ;;  %v1080_v58 = vadd.f32 %v6760_v5, %v951_v28  ;;  %vm1257_vm4 = vcmp.gt.f32.partialorder %v1204_v52, 0.0 }
 0x282   : > { %v6848_v31 = vsel %vm1671_vm6, %v1743_v48, %v1745_v27  ;;  %v1855_v48 = vsel %vm1792_vm5, %v1852_v40, %v6210_v50 }
 0x283   : > { %v1397_v57 = vmul.f32 1.442695, %v1305_v18  ;;  %v1954_v26 = vpack.c.bf16 %v1858_v4, %v1855_v48  ;;  %v6861_v18 = vpop.f32.mrf.mxu3  ;;  %v1859_v4 = vrot.slane %v6781_v62, 2 }
 0x285   : > { %5349 = vpow2.f32 %v1397_v57  ;;  %v1862_v62 = vsel %vm1792_vm5, %v1859_v4, %v6210_v50 }
 0x286   : > { %v1205_v55 = vpop.f32.mrf.mxu2 }
 0x287   : > { %v1206_v23 = vadd.f32 %v1205_v55, %v1077_v21  ;;  %v6866_v21 = vpop.f32.mrf.mxu0 }
 0x289   : > { %v1306_v10 = vmin.f32 %v1206_v23, 0.0  ;;  %vm1258_vm2 = vcmp.gt.f32.partialorder %v1206_v23, 0.0 }
 0x28b   : > { %v5350_v24 = vpop.eup %5349  ;;  %v1399_v63 = vmul.f32 1.442695, %v1306_v10  ;;  %2385 = vmatmul.bf16.gmra.mxu0 %v1954_v26  ;;  %v6871_v32 = vpop.f32.mrf.mxu3  ;;  %v1866_v10 = vrot.slane %v6841_v0, 2  ;;  %v6886_v0 = vsel %vm1671_vm6, %v1745_v27, %v6212_v51 }
 0x28c   : > { %v4476_v60 = vadd.f32 -1.0, %v5350_v24 }
 0x28d   : > { %5351 = vpow2.f32 %v1399_v63 }
 0x28e   : > { %v1497_v57 = vsel %vm1257_vm4, %v1204_v52, %v4476_v60  ;;  %v1208_v11 = vpop.f32.mrf.mxu2  ;;  %v1860_v52 = vsel %vm1792_vm5, %v1857_v25, %v1859_v4 }
 0x28f   : > { %v4625_v40 = vpack.c.bf16 %v1497_v57, %v1495_v7  ;;  %v1209_v55 = vadd.f32 %v1208_v11, %v1080_v58  ;;  %v1570_v5 = vsel %vm1506_vm1, %v1497_v57, 0.0  ;;  %v1957_v11 = vpack.c.bf16 %v1862_v62, %v1860_v52 }
 0x290   : > { %v1749_v26 = vrot.slane %v1570_v5, 1  ;;  %v1870_v28 = vrot.slane %v1570_v5, 2  ;;  %v1869_v57 = vsel %vm1792_vm5, %v1866_v10, %v6210_v50 }
 0x291   : > { %v1307_v48 = vmin.f32 %v1209_v55, 0.0  ;;  %4626 = vmatmul.msk.bf16.gmra.mxu3 %vm6196_vm10, %v4625_v40  ;;  %v6879_v40 = vpop.f32.mrf.mxu0  ;;  %vm1259_vm1 = vcmp.gt.f32.partialorder %v1209_v55, 0.0 }
 0x293   : > { %v5352_v38 = vpop.eup %5351  ;;  %v1401_v24 = vmul.f32 1.442695, %v1307_v48 }
 0x294   : > { %v4477_v63 = vadd.f32 -1.0, %v5352_v38 }
 0x295   : > { %5353 = vpow2.f32 %v1401_v24  ;;  %v6893_v24 = vpop.f32.mrf.mxu3 }
 0x296   : > { %v1498_v7 = vsel %vm1258_vm2, %v1206_v23, %v4477_v63  ;;  %v1210_v44 = vpop.f32.mrf.mxu2  ;;  %v5101_v63 = vld [vmem:[#allocation8 + $0x70] sm:$0xff] }
 0x297   : > { %v1750_v60 = vrot.slane %v1498_v7, 1  ;;  %v1871_v58 = vrot.slane %v1498_v7, 2  ;;  %3101 = vmatpush.bf16.msra.mxu2 %v5101_v63 }
 0x299   : > { %v1872_v25 = vsel %vm1792_vm5, %v1870_v28, %v1871_v58  ;;  %v6889_v4 = vsel %vm1671_vm6, %v1749_v26, %v1750_v60 }
 0x29a   : > { %v1963_v23 = vpack.c.bf16 %v1872_v25, %v1869_v57  ;;  %v6909_v25 = vpop.f32.mrf.mxu0 }
 0x29b   : > { %v5354_v38 = vpop.eup %5353  ;;  %2390 = vmatmul.bf16.gmra.mxu0 %v1957_v11 }
 0x29c   : > { %v4478_v5 = vadd.f32 -1.0, %v5354_v38 }
 0x29e   : > { %v1499_v52 = vsel %vm1259_vm1, %v1209_v55, %v4478_v5  ;;  %v6914_v5 = vpop.f32.mrf.mxu3 }
 0x29f   : > { %v1572_v62 = vsel %vm1512_vm7, %v1499_v52, 0.0  ;;  %v4628_v27 = vpack.c.bf16 %v1499_v52, %v1498_v7 }
 0x2a0   : > { %v1752_v44 = vrot.slane %v1572_v62, 1  ;;  %v1873_v26 = vrot.slane %v1572_v62, 2 }
 0x2a1   : > { %4629 = vmatmul.msk.bf16.gmra.mxu3 %vm6249_vm13, %v4628_v27  ;;  %v8073_v27 = vpack.c.bf16 %v6171_v61, %v6148_v41  ;;  %v5100_v41 = vld [vmem:[#allocation8 + $0x68] sm:$0xff]  ;;  %v8075_v61 = vpack.c.bf16 %v6271_v47, %v6267_v45  ;;  %v5099_v47 = vld [vmem:[#allocation8 + $0x60] sm:$0xff] }
 0x2a2   : > { %v1874_v28 = vsel %vm1792_vm5, %v1871_v58, %v1873_v26  ;;  %v1876_v11 = vsel %vm1792_vm5, %v1873_v26, %v6210_v50  ;;  %v6903_v57 = vsel %vm1671_vm6, %v1750_v60, %v1752_v44  ;;  %v6907_v55 = vsel %vm1671_vm6, %v1752_v44, %v6212_v51  ;;  %v5089_v58 = vld [vmem:[#allocation8 + $0x10] sm:$0xff]  ;;  %v6919_v52 = vpop.f32.mrf.mxu0  ;;  %3102 = vmatpush.bf16.msra.mxu2 %v5100_v41  ;;  %v8082_v41 = vld [vmem:[#allocation29_spill] sm:$0xff] }
 0x2a3   : > { %v1966_v7 = vpack.c.bf16 %v1876_v11, %v1874_v28  ;;  %v1863_v50 = vrot.slane %v6817_v16, 2  ;;  %v1867_v60 = vsel %vm1792_vm5, %v1864_v42, %v1866_v10  ;;  %3036 = vmatpush.bf16.msrb.mxu1 %v5089_v58  ;;  %v8074_v10 = vpack.c.bf16 %v6236_v9, %v6233_v59 }
 0x2a4   : > { %v8076_v59 = vpack.c.bf16 %v6333_v30, %v6309_v12  ;;  %v5087_v12 = vld [vmem:[#allocation8] sm:$0xff] }
 0x2a5   : > { %v1865_v63 = vsel %vm1792_vm5, %v1863_v50, %v1864_v42 }
 0x2a6   : > { %v1960_v51 = vpack.c.bf16 %v1867_v60, %v1865_v63  ;;  %v6921_v62 = vpop.f32.mrf.mxu3  ;;  %3103 = vmatpush.bf16.msra.mxu2 %v5099_v47  ;;  %v8078_v60 = vld [vmem:[#allocation28_spill] sm:$0xff]  ;;  %v8079_v63 = vld [vmem:[#allocation27_spill] sm:$0xff] }
 0x2aa   : > { %v6926_v29 = vpop.f32.mrf.mxu0 }
 0x2ab   : > { %2395 = vmatmul.bf16.gmra.mxu0 %v1960_v51  ;;  %v8080_v51 = vpack.c.bf16 %v8078_v60, %v8079_v63  ;;  %v6984_v63 = vld [vmem:[%s7964_s4] ss:$0 sm:$0xff] }
 0x2ae   : > { %v6928_v44 = vpop.f32.mrf.mxu3 }
 0x2b1   : > { %2221 = vmatmul.bf16.vlgmr.msrb.gmra.mxu3 %v8073_v27 }
 0x2b2   : > { %v6930_v16 = vpop.f32.mrf.mxu0 }
 0x2b6   : > { %v6935_v26 = vpop.f32.mrf.mxu3 }
 0x2ba   : > { %v6939_v11 = vpop.f32.mrf.mxu0 }
 0x2bb   : > { %2400 = vmatmul.bf16.gmra.mxu0 %v1963_v23  ;;  %v5088_v23 = vld [vmem:[#allocation8 + $0x8] sm:$0xff] }
 0x2bc   : > { %3037 = vmatpush.bf16.msrb.mxu1 %v5088_v23  ;;  %v8085_v23 = vld [vmem:[#allocation32_spill] sm:$0xff] }
 0x2be   : > { %v6937_v28 = vpop.f32.mrf.mxu3 }
 0x2c0   : > { %3038 = vmatpush.bf16.msrb.mxu1 %v5087_v12  ;;  %v8091_v12 = vld [vmem:[#allocation33_spill] sm:$0xff] }
 0x2c1   : > { %2226 = vmatmul.bf16.gmra.mxu3 %v8074_v10  ;;  %v8081_v10 = vld [vmem:[#allocation30_spill] sm:$0xff] }
 0x2c6   : > { %v6944_v42 = vpop.f32.mrf.mxu3 }
 0x2cb   : > { %2405 = vmatmul.bf16.gmra.mxu0 %v1966_v7  ;;  %v8077_v7 = vpack.c.bf16 %v6384_v20, %v6381_v49 }
 0x2d1   : > { %2231 = vmatmul.bf16.gmra.mxu3 %v8075_v61  ;;  %v8083_v61 = vpack.c.bf16 %v8081_v10, %v8082_v41  ;;  %v8093_v41 = vld [vmem:[#allocation35_spill] sm:$0xff] }
 0x2d4   : > { %v6946_v58 = vpop.f32.mrf.mxu3 }
 0x2dc   : > { %v6951_v9 = vpop.f32.mrf.mxu3 }
 0x2e1   : > { %2236 = vmatmul.bf16.gmra.mxu3 %v8076_v59  ;;  %v8086_v59 = vld [vmem:[#allocation31_spill] sm:$0xff] }
 0x2e4   : > { %v6953_v50 = vpop.f32.mrf.mxu3 }
 0x2ec   : > { %v6958_v45 = vpop.f32.mrf.mxu3 }
 0x2f1   : > { %2241 = vmatmul.bf16.gmra.mxu3 %v8077_v7  ;;  %v8087_v7 = vpack.c.bf16 %v8085_v23, %v8086_v59  ;;  %v6994_v23 = vld [vmem:[%s7965_s5] ss:$0 sm:$0xff] }
 0x2fc   : > { %v6963_v27 = vpop.f32.mrf.mxu3 }
 0x301   : > { %2246 = vmatmul.bf16.gmra.mxu3 %v8080_v51  ;;  %v8090_v51 = vld [vmem:[#allocation34_spill] sm:$0xff] }
 0x302   : > { %v8092_v10 = vpack.c.bf16 %v8090_v51, %v8091_v12  ;;  %v5098_v12 = vld [vmem:[#allocation8 + $0x58] sm:$0xff] }
 0x303   : > { %3104 = vmatpush.bf16.msra.mxu2 %v5098_v12 }
 0x304   : > { %v6965_v30 = vpop.f32.mrf.mxu3 }
 0x311   : > { %2251 = vmatmul.bf16.gmra.mxu3 %v8083_v61  ;;  %v2124_v61 = vadd.f32 %v6984_v63, %v8093_v41 }
 0x314   : > { %v6970_v49 = vpop.f32.mrf.mxu3 }
 0x31c   : > { %v6972_v20 = vpop.f32.mrf.mxu3 }
 0x31d   : > { %8084 = vst [vmem:[#allocation28_spill] sm:$0xff] %v6972_v20 }
 0x321   : > { %2256 = vmatmul.bf16.gmra.mxu3 %v8087_v7  ;;  %v7000_v7 = vld [vmem:[%s7966_s6] ss:$0 sm:$0xff] }
 0x324   : > { %v6977_v47 = vpop.f32.mrf.mxu3 }
 0x325   : > { %8088 = vst [vmem:[#allocation27_spill] sm:$0xff] %v6977_v47  ;;  %v8096_v47 = vld [vmem:[#allocation36_spill] sm:$0xff] }
 0x326   : > { %v2129_v20 = vadd.f32 %v6984_v63, %v8096_v47 }
 0x32c   : > { %v6979_v60 = vpop.f32.mrf.mxu3 }
 0x32d   : > { %8089 = vst [vmem:[#allocation30_spill] sm:$0xff] %v6979_v60  ;;  %v8095_v60 = vpack.c.bf16 %v6595_v1, %v6577_v37  ;;  %v7017_v1 = vstv %s4667_s25  ;;  %s4335_s25 = sshll.u32 %s6011_s29, 7 }
 0x32e   : > { %vm2721_vm6 = vcmp.ge.s32.totalorder %v7017_v1, 0  ;;  %vm2733_vm7 = vcmp.lt.s32.totalorder %v7017_v1, 16  ;;  %s7815_s24 = scalar_lea.vmem [#allocation11], %s4335_s25 }
 0x32f   : > { %vm7025_vm10 = vmand %vm2721_vm6, %vm2733_vm7  ;;  %s4190_s1 = sshll.u32 %s7815_s24, 4  ;;  %s4191_s1 = int_to_ptr.vmem [resolvable:$true] %s4190_s1 }
 0x330   : > { %vm4764_vm9 = vmpackc.low %vm7025_vm10, %vm7025_vm10 }
 0x331   : > { %2261 = vmatmul.bf16.gmra.mxu3 %v8092_v10  ;;  %v2126_v10 = vadd.f32 %v6984_v63, %v6566_v33 }
 0x334   : > { %v2222_v38 = vpop.f32.mrf.mxu3 }
 0x335   : > { %v2223_v48 = vadd.f32 %v2222_v38, %v2124_v61 }
 0x337   : > { %v2322_v59 = vadd.f32 %v6777_v54, %v2223_v48 }
 0x339   : > { %v2415_v51 = vmul.f32 %v6994_v23, %v2322_v59  ;;  %v5110_v59 = vld [vmem:[#allocation8 + $0xb8] sm:$0xff] }
 0x33a   : > { %3169 = vmatpush.bf16.msra.mxu1 %v5110_v59 }
 0x33b   : > { %v2455_v38 = vadd.f32 %v7000_v7, %v2415_v51 }
 0x33c   : > { %v2224_v41 = vpop.f32.mrf.mxu3 }
 0x33d   : > { %v2527_v61 = vmin.f32 %v2455_v38, 0.0  ;;  %v2225_v35 = vadd.f32 %v2224_v41, %v2126_v10  ;;  %v8097_v41 = vld [vmem:[#allocation37_spill] sm:$0xff]  ;;  %vm2491_vm13 = vcmp.gt.f32.partialorder %v2455_v38, 0.0 }
 0x33e   : > { %v2131_v47 = vadd.f32 %v6984_v63, %v8097_v41 }
 0x33f   : > { %v2324_v54 = vadd.f32 %v6806_v46, %v2225_v35  ;;  %v2563_v48 = vmul.f32 1.442695, %v2527_v61 }
 0x341   : > { %v2416_v3 = vmul.f32 %v6994_v23, %v2324_v54  ;;  %2266 = vmatmul.bf16.gmra.mxu3 %v8095_v60  ;;  %5355 = vpow2.f32 %v2563_v48 }
 0x343   : > { %v2456_v33 = vadd.f32 %v7000_v7, %v2416_v3 }
 0x344   : > { %v2227_v51 = vpop.f32.mrf.mxu3 }
 0x345   : > { %v2528_v12 = vmin.f32 %v2456_v33, 0.0  ;;  %v2228_v10 = vadd.f32 %v2227_v51, %v2129_v20  ;;  %vm2492_vm8 = vcmp.gt.f32.partialorder %v2456_v33, 0.0 }
 0x347   : > { %v2565_v35 = vmul.f32 1.442695, %v2528_v12  ;;  %v2327_v46 = vadd.f32 %v6811_v8, %v2228_v10  ;;  %v5356_v60 = vpop.eup %5355 }
 0x348   : > { %v4630_v48 = vadd.f32 -1.0, %v5356_v60 }
 0x349   : > { %5357 = vpow2.f32 %v2565_v35  ;;  %v2417_v37 = vmul.f32 %v6994_v23, %v2327_v46  ;;  %v8100_v46 = vpack.c.bf16 %v6650_v56, %v6647_v2  ;;  %v2710_v56 = vadd.s32 1, %v7017_v1 }
 0x34b   : > { %v2457_v3 = vadd.f32 %v7000_v7, %v2417_v37  ;;  %v2671_v37 = vsel %vm2491_vm13, %v2455_v38, %v4630_v48  ;;  %v5097_v48 = vld [vmem:[#allocation8 + $0x50] sm:$0xff]  ;;  %vm2722_vm11 = vcmp.ge.s32.totalorder %v2710_v56, 0  ;;  %vm2734_vm12 = vcmp.lt.s32.totalorder %v2710_v56, 16  ;;  %v5095_v56 = vld [vmem:[#allocation8 + $0x40] sm:$0xff] }
 0x34c   : > { %v2229_v61 = vpop.f32.mrf.mxu3  ;;  %3105 = vmatpush.bf16.msra.mxu2 %v5097_v48  ;;  %vm7046_vm14 = vmand %vm2722_vm11, %vm2734_vm12 }
 0x34d   : > { %v2529_v20 = vmin.f32 %v2457_v3, 0.0  ;;  %v2230_v54 = vadd.f32 %v2229_v61, %v2131_v47  ;;  %vm2493_vm15 = vcmp.gt.f32.partialorder %v2457_v3, 0.0  ;;  %vm4767_vm4 = vmpackc.low %vm7046_vm14, %vm7025_vm10 }
 0x34e   : > { %vm4770_vm6 = vmpackc.low %vm7046_vm14, %vm7046_vm14 }
 0x34f   : > { %v5358_v8 = vpop.eup %5357  ;;  %v2329_v59 = vadd.f32 %v6836_v13, %v2230_v54  ;;  %v2567_v10 = vmul.f32 1.442695, %v2529_v20  ;;  %v2134_v13 = vadd.f32 %v6984_v63, %v6616_v17  ;;  %v8101_v17 = vld [vmem:[#allocation38_spill] sm:$0xff] }
 0x350   : > { %v4631_v12 = vadd.f32 -1.0, %v5358_v8 }
 0x351   : > { %v2418_v35 = vmul.f32 %v6994_v23, %v2329_v59  ;;  %2271 = vmatmul.bf16.gmra.mxu3 %v8100_v46  ;;  %5359 = vpow2.f32 %v2567_v10 }
 0x352   : > { %v2672_v41 = vsel %vm2492_vm8, %v2456_v33, %v4631_v12  ;;  %v5109_v33 = vld [vmem:[#allocation8 + $0xb0] sm:$0xff]  ;;  %v2136_v12 = vadd.f32 %v6984_v63, %v8101_v17 }
 0x353   : > { %v2458_v60 = vadd.f32 %v7000_v7, %v2418_v35  ;;  %v4765_v47 = vpack.c.bf16 %v2672_v41, %v2671_v37  ;;  %3170 = vmatpush.bf16.msra.mxu1 %v5109_v33  ;;  %v5096_v37 = vld [vmem:[#allocation8 + $0x48] sm:$0xff] }
 0x354   : > { %v2232_v61 = vpop.f32.mrf.mxu3  ;;  %3106 = vmatpush.bf16.msra.mxu2 %v5096_v37 }
 0x355   : > { %v2530_v20 = vmin.f32 %v2458_v60, 0.0  ;;  %v2233_v54 = vadd.f32 %v2232_v61, %v2134_v13  ;;  %4766 = vmatmul.msk.bf16.vlgmr.msrb.gmra.mxu1 %vm4764_vm9, %v4765_v47  ;;  %vm2494_vm0 = vcmp.gt.f32.partialorder %v2458_v60, 0.0 }
 0x357   : > { %v2569_v8 = vmul.f32 1.442695, %v2530_v20  ;;  %v2332_v2 = vadd.f32 %v6856_v14, %v2233_v54  ;;  %v5360_v59 = vpop.eup %5359 }
 0x358   : > { %v4632_v41 = vadd.f32 -1.0, %v5360_v59  ;;  %3107 = vmatpush.bf16.msra.mxu2 %v5095_v56 }
 0x359   : > { %5361 = vpow2.f32 %v2569_v8  ;;  %v2419_v38 = vmul.f32 %v6994_v23, %v2332_v2  ;;  %v8104_v2 = vpack.c.bf16 %v6679_v6, %v6675_v43 }
 0x35b   : > { %v2459_v35 = vadd.f32 %v7000_v7, %v2419_v38  ;;  %v2673_v38 = vsel %vm2493_vm15, %v2457_v3, %v4632_v41 }
 0x35c   : > { %v2234_v10 = vpop.f32.mrf.mxu3 }
 0x35d   : > { %v2531_v46 = vmin.f32 %v2459_v35, 0.0  ;;  %v2235_v14 = vadd.f32 %v2234_v10, %v2136_v12  ;;  %vm2495_vm2 = vcmp.gt.f32.partialorder %v2459_v35, 0.0 }
 0x35f   : > { %v5362_v13 = vpop.eup %5361  ;;  %v2334_v47 = vadd.f32 %v6866_v21, %v2235_v14  ;;  %v2571_v54 = vmul.f32 1.442695, %v2531_v46  ;;  %v8105_v21 = vld [vmem:[#allocation39_spill] sm:$0xff]  ;;  %v2141_v14 = vadd.f32 %v6984_v63, %v6689_v19  ;;  %v5108_v19 = vld [vmem:[#allocation8 + $0xa8] sm:$0xff] }
 0x360   : > { %v4633_v20 = vadd.f32 -1.0, %v5362_v13  ;;  %v2139_v48 = vadd.f32 %v6984_v63, %v8105_v21  ;;  %3171 = vmatpush.bf16.msra.mxu1 %v5108_v19 }
 0x361   : > { %v2420_v8 = vmul.f32 %v6994_v23, %v2334_v47  ;;  %2276 = vmatmul.bf16.gmra.mxu3 %v8104_v2  ;;  %5363 = vpow2.f32 %v2571_v54 }
 0x362   : > { %v2674_v33 = vsel %vm2494_vm0, %v2458_v60, %v4633_v20  ;;  %v7062_v60 = vpop.f32.mrf.mxu0 }
 0x363   : > { %v2460_v59 = vadd.f32 %v7000_v7, %v2420_v8  ;;  %v4768_v17 = vpack.c.bf16 %v2674_v33, %v2673_v38  ;;  %v8106_v38 = vld [vmem:[#allocation41_spill] sm:$0xff] }
 0x364   : > { %v2237_v12 = vpop.f32.mrf.mxu3  ;;  %v8107_v33 = vpack.c.bf16 %v6730_v15, %v8106_v38 }
 0x365   : > { %v2532_v43 = vmin.f32 %v2460_v59, 0.0  ;;  %v2238_v6 = vadd.f32 %v2237_v12, %v2139_v48  ;;  %4769 = vmatmul.msk.bf16.gmra.mxu1 %vm4767_vm4, %v4768_v17  ;;  %vm2496_vm1 = vcmp.gt.f32.partialorder %v2460_v59, 0.0 }
 0x367   : > { %v2573_v10 = vmul.f32 1.442695, %v2532_v43  ;;  %v2337_v3 = vadd.f32 %v6879_v40, %v2238_v6  ;;  %v5364_v46 = vpop.eup %5363 }
 0x368   : > { %v4634_v20 = vadd.f32 -1.0, %v5364_v46 }
 0x369   : > { %5365 = vpow2.f32 %v2573_v10  ;;  %v2421_v51 = vmul.f32 %v6994_v23, %v2337_v3 }
 0x36a   : > { %v7073_v21 = vpop.f32.mrf.mxu0  ;;  %v2675_v48 = vsel %vm2495_vm2, %v2459_v35, %v4634_v20 }
 0x36b   : > { %v2461_v37 = vadd.f32 %v7000_v7, %v2421_v51 }
 0x36c   : > { %v2239_v41 = vpop.f32.mrf.mxu3 }
 0x36d   : > { %v2533_v13 = vmin.f32 %v2461_v37, 0.0  ;;  %v2240_v47 = vadd.f32 %v2239_v41, %v2141_v14  ;;  %v8109_v14 = vld [vmem:[#allocation42_spill] sm:$0xff]  ;;  %vm2497_vm8 = vcmp.gt.f32.partialorder %v2461_v37, 0.0 }
 0x36e   : > { %v2146_v41 = vadd.f32 %v6984_v63, %v8109_v14 }
 0x36f   : > { %v5366_v54 = vpop.eup %5365  ;;  %v2339_v8 = vadd.f32 %v6909_v25, %v2240_v47  ;;  %v2575_v40 = vmul.f32 1.442695, %v2533_v13  ;;  %v8108_v25 = vld [vmem:[#allocation40_spill] sm:$0xff] }
 0x370   : > { %v4635_v2 = vadd.f32 -1.0, %v5366_v54  ;;  %v2144_v12 = vadd.f32 %v6984_v63, %v8108_v25 }
 0x371   : > { %v2422_v56 = vmul.f32 %v6994_v23, %v2339_v8  ;;  %2281 = vmatmul.bf16.gmra.mxu3 %v8107_v33  ;;  %5367 = vpow2.f32 %v2575_v40 }
 0x372   : > { %v2676_v17 = vsel %vm2496_vm1, %v2460_v59, %v4635_v2  ;;  %v2711_v59 = vadd.s32 2, %v7017_v1  ;;  %v7087_v47 = vpop.f32.mrf.mxu0 }
 0x373   : > { %v2462_v43 = vadd.f32 %v7000_v7, %v2422_v56  ;;  %v4771_v6 = vpack.c.bf16 %v2676_v17, %v2675_v48  ;;  %v8112_v48 = vpack.c.bf16 %v6767_v53, %v6764_v36 }
 0x374   : > { %v2242_v15 = vpop.f32.mrf.mxu3  ;;  %vm2723_vm7 = vcmp.ge.s32.totalorder %v2711_v59, 0  ;;  %vm2735_vm10 = vcmp.lt.s32.totalorder %v2711_v59, 16  ;;  %v5107_v59 = vld [vmem:[#allocation8 + $0xa0] sm:$0xff] }
 0x375   : > { %v2534_v10 = vmin.f32 %v2462_v43, 0.0  ;;  %v2243_v3 = vadd.f32 %v2242_v15, %v2144_v12  ;;  %4772 = vmatmul.msk.bf16.gmra.mxu1 %vm4770_vm6, %v4771_v6  ;;  %vm7090_vm13 = vmand %vm2723_vm7, %vm2735_vm10  ;;  %vm2498_vm9 = vcmp.gt.f32.partialorder %v2462_v43, 0.0 }
 0x376   : > { %vm4773_vm11 = vmpackc.low %vm7090_vm13, %vm7090_vm13  ;;  %3172 = vmatpush.bf16.msra.mxu1 %v5107_v59 }
 0x377   : > { %v2577_v51 = vmul.f32 1.442695, %v2534_v10  ;;  %v2342_v35 = vadd.f32 %v6919_v52, %v2243_v3  ;;  %v5368_v46 = vpop.eup %5367 }
 0x378   : > { %v4636_v2 = vadd.f32 -1.0, %v5368_v46  ;;  %v8114_v46 = vld [vmem:[#allocation44_spill] sm:$0xff] }
 0x379   : > { %5369 = vpow2.f32 %v2577_v51  ;;  %v2423_v61 = vmul.f32 %v6994_v23, %v2342_v35  ;;  %v2151_v14 = vadd.f32 %v6984_v63, %v8114_v46 }
 0x37a   : > { %v2677_v17 = vsel %vm2497_vm8, %v2461_v37, %v4636_v2  ;;  %v7104_v36 = vpop.f32.mrf.mxu0 }
 0x37b   : > { %v2463_v13 = vadd.f32 %v7000_v7, %v2423_v61 }
 0x37c   : > { %v2244_v20 = vpop.f32.mrf.mxu3 }
 0x37d   : > { %v2535_v54 = vmin.f32 %v2463_v13, 0.0  ;;  %v2245_v8 = vadd.f32 %v2244_v20, %v2146_v41  ;;  %vm2499_vm0 = vcmp.gt.f32.partialorder %v2463_v13, 0.0 }
 0x37f   : > { %v5370_v52 = vpop.eup %5369  ;;  %v2344_v40 = vadd.f32 %v6926_v29, %v2245_v8  ;;  %v2579_v33 = vmul.f32 1.442695, %v2535_v54  ;;  %v8113_v29 = vld [vmem:[#allocation43_spill] sm:$0xff] }
 0x380   : > { %v4637_v38 = vadd.f32 -1.0, %v5370_v52  ;;  %v2149_v12 = vadd.f32 %v6984_v63, %v8113_v29 }
 0x381   : > { %v2424_v19 = vmul.f32 %v6994_v23, %v2344_v40  ;;  %2286 = vmatmul.bf16.gmra.mxu3 %v8112_v48  ;;  %5371 = vpow2.f32 %v2579_v33 }
 0x382   : > { %v2678_v25 = vsel %vm2498_vm9, %v2462_v43, %v4637_v38  ;;  %v2712_v43 = vadd.s32 3, %v7017_v1  ;;  %v7117_v38 = vpop.f32.mrf.mxu0 }
 0x383   : > { %v2464_v6 = vadd.f32 %v7000_v7, %v2424_v19  ;;  %v4774_v15 = vpack.c.bf16 %v2678_v25, %v2677_v17  ;;  %v8117_v17 = vld [vmem:[#allocation46_spill] sm:$0xff] }
 0x384   : > { %v2247_v10 = vpop.f32.mrf.mxu3  ;;  %vm2724_vm12 = vcmp.ge.s32.totalorder %v2712_v43, 0  ;;  %vm2736_vm14 = vcmp.lt.s32.totalorder %v2712_v43, 16  ;;  %v8118_v25 = vpack.c.bf16 %v6794_v22, %v8117_v17 }
 0x385   : > { %v2536_v3 = vmin.f32 %v2464_v6, 0.0  ;;  %v2248_v51 = vadd.f32 %v2247_v10, %v2149_v12  ;;  %4775 = vmatmul.msk.bf16.gmra.mxu1 %vm4773_vm11, %v4774_v15  ;;  %4802 = vmatmul.msk.bf16.vlgmr.msra.gmra.mxu2 %vm4773_vm11, %v4774_v15  ;;  %vm7113_vm15 = vmand %vm2724_vm12, %vm2736_vm14  ;;  %vm2500_vm4 = vcmp.gt.f32.partialorder %v2464_v6, 0.0 }
 0x386   : > { %vm4776_vm2 = vmpackc.low %vm7113_vm15, %vm7090_vm13 }
 0x387   : > { %v2581_v53 = vmul.f32 1.442695, %v2536_v3  ;;  %v2347_v37 = vadd.f32 %v6930_v16, %v2248_v51  ;;  %v5372_v61 = vpop.eup %5371  ;;  %vm4779_vm7 = vmpackc.low %vm7113_vm15, %vm7113_vm15 }
 0x388   : > { %v4638_v2 = vadd.f32 -1.0, %v5372_v61 }
 0x389   : > { %5373 = vpow2.f32 %v2581_v53  ;;  %v2425_v35 = vmul.f32 %v6994_v23, %v2347_v37 }
 0x38a   : > { %v2679_v29 = vsel %vm2499_vm0, %v2463_v13, %v4638_v2 }
 0x38b   : > { %v2465_v41 = vadd.f32 %v7000_v7, %v2425_v35  ;;  %v8120_v35 = vld [vmem:[#allocation47_spill] sm:$0xff] }
 0x38c   : > { %v2249_v20 = vpop.f32.mrf.mxu3  ;;  %v2156_v59 = vadd.f32 %v6984_v63, %v8120_v35 }
 0x38d   : > { %v2537_v54 = vmin.f32 %v2465_v41, 0.0  ;;  %v2250_v8 = vadd.f32 %v2249_v20, %v2151_v14  ;;  %vm2501_vm1 = vcmp.gt.f32.partialorder %v2465_v41, 0.0 }
 0x38f   : > { %v5374_v16 = vpop.eup %5373  ;;  %v2349_v52 = vadd.f32 %v6939_v11, %v2250_v8  ;;  %v2583_v19 = vmul.f32 1.442695, %v2537_v54  ;;  %v8119_v11 = vld [vmem:[#allocation45_spill] sm:$0xff] }
 0x390   : > { %v4639_v33 = vadd.f32 -1.0, %v5374_v16  ;;  %v2154_v15 = vadd.f32 %v6984_v63, %v8119_v11 }
 0x391   : > { %v2426_v48 = vmul.f32 %v6994_v23, %v2349_v52  ;;  %2291 = vmatmul.bf16.gmra.mxu3 %v8118_v25  ;;  %5375 = vpow2.f32 %v2583_v19  ;;  %v5106_v19 = vld [vmem:[#allocation8 + $0x98] sm:$0xff] }
 0x392   : > { %v2680_v12 = vsel %vm2500_vm4, %v2464_v6, %v4639_v33  ;;  %v7132_v6 = vpop.f32.mrf.mxu0  ;;  %v8121_v33 = vpack.c.bf16 %v6848_v31, %v6832_v34  ;;  %3173 = vmatpush.bf16.msra.mxu1 %v5106_v19 }
 0x393   : > { %v2466_v10 = vadd.f32 %v7000_v7, %v2426_v48  ;;  %v4777_v3 = vpack.c.bf16 %v2680_v12, %v2679_v29 }
 0x394   : > { %v2252_v51 = vpop.f32.mrf.mxu3 }
 0x395   : > { %v2538_v53 = vmin.f32 %v2466_v10, 0.0  ;;  %v2253_v22 = vadd.f32 %v2252_v51, %v2154_v15  ;;  %4778 = vmatmul.msk.bf16.gmra.mxu1 %vm4776_vm2, %v4777_v3  ;;  %4805 = vmatmul.msk.bf16.gmra.mxu2 %vm4776_vm2, %v4777_v3  ;;  %vm2502_vm6 = vcmp.gt.f32.partialorder %v2466_v10, 0.0  ;;  %v2713_v15 = vadd.s32 4, %v7017_v1  ;;  %v8122_v3 = vld [vmem:[#allocation48_spill] sm:$0xff] }
 0x396   : > { %v2161_v51 = vadd.f32 %v6984_v63, %v8122_v3 }
 0x397   : > { %v2585_v37 = vmul.f32 1.442695, %v2538_v53  ;;  %v2352_v13 = vadd.f32 %v7062_v60, %v2253_v22  ;;  %v5376_v43 = vpop.eup %5375  ;;  %vm2725_vm10 = vcmp.ge.s32.totalorder %v2713_v15, 0  ;;  %vm2737_vm13 = vcmp.lt.s32.totalorder %v2713_v15, 16 }
 0x398   : > { %v4640_v54 = vadd.f32 -1.0, %v5376_v43  ;;  %vm7159_vm8 = vmand %vm2725_vm10, %vm2737_vm13 }
 0x399   : > { %5377 = vpow2.f32 %v2585_v37  ;;  %v2427_v56 = vmul.f32 %v6994_v23, %v2352_v13  ;;  %vm7170_vm12 = vmpackc.low %vm7159_vm8, %vm7159_vm8 }
 0x39a   : > { %v2681_v48 = vsel %vm2501_vm1, %v2465_v41, %v4640_v54  ;;  %v7148_v12 = vpop.f32.mrf.mxu0  ;;  %v8125_v54 = vpack.c.bf16 %v6889_v4, %v6886_v0 }
 0x39b   : > { %v2467_v61 = vadd.f32 %v7000_v7, %v2427_v56 }
 0x39c   : > { %v2254_v46 = vpop.f32.mrf.mxu3 }
 0x39d   : > { %v2539_v14 = vmin.f32 %v2467_v61, 0.0  ;;  %v2255_v20 = vadd.f32 %v2254_v46, %v2156_v59  ;;  %vm2503_vm9 = vcmp.gt.f32.partialorder %v2467_v61, 0.0 }
 0x39f   : > { %v5378_v8 = vpop.eup %5377  ;;  %v2354_v2 = vadd.f32 %v7073_v21, %v2255_v20  ;;  %v2587_v60 = vmul.f32 1.442695, %v2539_v14  ;;  %v2159_v21 = vadd.f32 %v6984_v63, %v6808_v39 }
 0x3a0   : > { %v4641_v16 = vadd.f32 -1.0, %v5378_v8 }
 0x3a1   : > { %v2428_v52 = vmul.f32 %v6994_v23, %v2354_v2  ;;  %2296 = vmatmul.bf16.gmra.mxu3 %v8121_v33  ;;  %5379 = vpow2.f32 %v2587_v60 }
 0x3a2   : > { %v2682_v17 = vsel %vm2502_vm6, %v2466_v10, %v4641_v16  ;;  %v7156_v56 = vpop.f32.mrf.mxu0  ;;  %v8128_v16 = vld [vmem:[#allocation49_spill] sm:$0xff] }
 0x3a3   : > { %v2468_v25 = vadd.f32 %v7000_v7, %v2428_v52  ;;  %v4780_v29 = vpack.c.bf16 %v2682_v17, %v2681_v48  ;;  %v2164_v60 = vadd.f32 %v6984_v63, %v8128_v16  ;;  %v2171_v16 = vadd.f32 %v6984_v63, %v6893_v24 }
 0x3a4   : > { %v2257_v34 = vpop.f32.mrf.mxu3 }
 0x3a5   : > { %v2540_v31 = vmin.f32 %v2468_v25, 0.0  ;;  %v2258_v11 = vadd.f32 %v2257_v34, %v2159_v21  ;;  %4781 = vmatmul.msk.bf16.gmra.mxu1 %vm4779_vm7, %v4780_v29  ;;  %4808 = vmatmul.msk.bf16.gmra.mxu2 %vm4779_vm7, %v4780_v29  ;;  %vm2504_vm11 = vcmp.gt.f32.partialorder %v2468_v25, 0.0  ;;  %v2714_v21 = vadd.s32 5, %v7017_v1  ;;  %v5105_v29 = vld [vmem:[#allocation8 + $0x90] sm:$0xff]  ;;  %v5126_v34 = vld [vmem:[#allocation10 + $0x78] sm:$0xff] }
 0x3a6   : > { %3174 = vmatpush.bf16.msra.mxu1 %v5105_v29  ;;  %3827 = vmatpush.bf16.msra.mxu3 %v5126_v34  ;;  %v5104_v34 = vld [vmem:[#allocation8 + $0x88] sm:$0xff] }
 0x3a7   : > { %v2589_v41 = vmul.f32 1.442695, %v2540_v31  ;;  %v2357_v40 = vadd.f32 %v7087_v47, %v2258_v11  ;;  %v5380_v10 = vpop.eup %5379  ;;  %v2166_v11 = vadd.f32 %v6984_v63, %v6861_v18  ;;  %vm2726_vm14 = vcmp.ge.s32.totalorder %v2714_v21, 0 }
 0x3a8   : > { %v4642_v43 = vadd.f32 -1.0, %v5380_v10  ;;  %vm2738_vm15 = vcmp.lt.s32.totalorder %v2714_v21, 16 }
 0x3a9   : > { %5381 = vpow2.f32 %v2589_v41  ;;  %v2429_v39 = vmul.f32 %v6994_v23, %v2357_v40  ;;  %vm7194_vm0 = vmand %vm2726_vm14, %vm2738_vm15 }
 0x3aa   : > { %v2683_v8 = vsel %vm2503_vm9, %v2467_v61, %v4642_v43  ;;  %v7186_v17 = vpop.f32.mrf.mxu0  ;;  %v5134_v43 = vld [vmem:[#allocation10 + $0xb8] sm:$0xff]  ;;  %vm7208_vm1 = vmpackc.low %vm7194_vm0, %vm7159_vm8  ;;  %3175 = vmatpush.bf16.msra.mxu1 %v5104_v34 }
 0x3ab   : > { %v2469_v53 = vadd.f32 %v7000_v7, %v2429_v39  ;;  %3876 = vmatpush.bf16.msra.mxu0 %v5134_v43  ;;  %vm7237_vm10 = vmpackc.low %vm7194_vm0, %vm7194_vm0  ;;  %v2176_v43 = vadd.f32 %v6984_v63, %v6921_v62 }
 0x3ac   : > { %v2259_v22 = vpop.f32.mrf.mxu3 }
 0x3ad   : > { %v2541_v37 = vmin.f32 %v2469_v53, 0.0  ;;  %v2260_v13 = vadd.f32 %v2259_v22, %v2161_v51  ;;  %vm2505_vm4 = vcmp.gt.f32.partialorder %v2469_v53, 0.0 }
 0x3af   : > { %v5382_v47 = vpop.eup %5381  ;;  %v2359_v35 = vadd.f32 %v7104_v36, %v2260_v13  ;;  %v2591_v14 = vmul.f32 1.442695, %v2541_v37  ;;  %v8131_v13 = vpack.c.bf16 %v6907_v55, %v6903_v57  ;;  %v7393_v36 = vld [vmem:[%s7964_s4] ss:$0 sm:$0xff] }
 0x3b0   : > { %v4643_v46 = vadd.f32 -1.0, %v5382_v47 }
 0x3b1   : > { %v2430_v20 = vmul.f32 %v6994_v23, %v2359_v35  ;;  %2301 = vmatmul.bf16.gmra.mxu3 %v8125_v54  ;;  %5383 = vpow2.f32 %v2591_v14  ;;  %v2169_v14 = vadd.f32 %v6984_v63, %v6871_v32 }
 0x3b2   : > { %v2684_v2 = vsel %vm2504_vm11, %v2468_v25, %v4643_v46  ;;  %v7202_v47 = vpop.f32.mrf.mxu0 }
 0x3b3   : > { %v2470_v52 = vadd.f32 %v7000_v7, %v2430_v20  ;;  %v7177_v33 = vpack.c.bf16 %v2684_v2, %v2683_v8 }
 0x3b4   : > { %v2262_v0 = vpop.f32.mrf.mxu3 }
 0x3b5   : > { %v2542_v4 = vmin.f32 %v2470_v52, 0.0  ;;  %v2263_v19 = vadd.f32 %v2262_v0, %v2164_v60  ;;  %4784 = vmatmul.msk.bf16.gmra.mxu1 %vm7170_vm12, %v7177_v33  ;;  %4811 = vmatmul.msk.bf16.gmra.mxu2 %vm7170_vm12, %v7177_v33  ;;  %vm2506_vm2 = vcmp.gt.f32.partialorder %v2470_v52, 0.0 }
 0x3b7   : > { %v2593_v61 = vmul.f32 1.442695, %v2542_v4  ;;  %v2362_v48 = vadd.f32 %v7117_v38, %v2263_v19  ;;  %v5384_v31 = vpop.eup %5383 }
 0x3b8   : > { %v4644_v39 = vadd.f32 -1.0, %v5384_v31 }
 0x3b9   : > { %5385 = vpow2.f32 %v2593_v61  ;;  %v2431_v25 = vmul.f32 %v6994_v23, %v2362_v48 }
 0x3ba   : > { %v2685_v35 = vsel %vm2505_vm4, %v2469_v53, %v4644_v39 }
 0x3bb   : > { %v2471_v41 = vadd.f32 %v7000_v7, %v2431_v25 }
 0x3bc   : > { %v2264_v40 = vpop.f32.mrf.mxu3 }
 0x3bd   : > { %v2543_v38 = vmin.f32 %v2471_v41, 0.0  ;;  %v2265_v15 = vadd.f32 %v2264_v40, %v2166_v11  ;;  %vm2507_vm6 = vcmp.gt.f32.partialorder %v2471_v41, 0.0 }
 0x3bf   : > { %v5386_v10 = vpop.eup %5385  ;;  %v2364_v3 = vadd.f32 %v7132_v6, %v2265_v15  ;;  %v2595_v37 = vmul.f32 1.442695, %v2543_v38 }
 0x3c0   : > { %v4645_v22 = vadd.f32 -1.0, %v5386_v10 }
 0x3c1   : > { %v2432_v18 = vmul.f32 %v6994_v23, %v2364_v3  ;;  %2306 = vmatmul.bf16.gmra.mxu3 %v8131_v13  ;;  %5387 = vpow2.f32 %v2595_v37 }
 0x3c2   : > { %v2686_v46 = vsel %vm2506_vm2, %v2470_v52, %v4645_v22  ;;  %v7228_v52 = vpop.f32.mrf.mxu0  ;;  %v2715_v22 = vadd.s32 6, %v7017_v1 }
 0x3c3   : > { %v2472_v57 = vadd.f32 %v7000_v7, %v2432_v18  ;;  %v7215_v55 = vpack.c.bf16 %v2686_v46, %v2685_v35 }
 0x3c4   : > { %v2267_v20 = vpop.f32.mrf.mxu3  ;;  %vm2727_vm13 = vcmp.ge.s32.totalorder %v2715_v22, 0  ;;  %vm2739_vm8 = vcmp.lt.s32.totalorder %v2715_v22, 16 }
 0x3c5   : > { %v2544_v53 = vmin.f32 %v2472_v57, 0.0  ;;  %v2268_v54 = vadd.f32 %v2267_v20, %v2169_v14  ;;  %4787 = vmatmul.msk.bf16.gmra.mxu1 %vm7208_vm1, %v7215_v55  ;;  %4814 = vmatmul.msk.bf16.gmra.mxu2 %vm7208_vm1, %v7215_v55  ;;  %vm2508_vm7 = vcmp.gt.f32.partialorder %v2472_v57, 0.0  ;;  %vm7261_vm9 = vmand %vm2727_vm13, %vm2739_vm8 }
 0x3c6   : > { %vm7273_vm15 = vmpackc.low %vm7261_vm9, %vm7261_vm9 }
 0x3c7   : > { %v2597_v59 = vmul.f32 1.442695, %v2544_v53  ;;  %v2367_v32 = vadd.f32 %v7148_v12, %v2268_v54  ;;  %v5388_v2 = vpop.eup %5387 }
 0x3c8   : > { %v4646_v61 = vadd.f32 -1.0, %v5388_v2  ;;  %v5125_v2 = vld [vmem:[#allocation10 + $0x70] sm:$0xff] }
 0x3c9   : > { %5389 = vpow2.f32 %v2597_v59  ;;  %v2433_v8 = vmul.f32 %v6994_v23, %v2367_v32  ;;  %3828 = vmatpush.bf16.msra.mxu3 %v5125_v2 }
 0x3ca   : > { %v2687_v24 = vsel %vm2507_vm6, %v2471_v41, %v4646_v61  ;;  %v2378_v3 = vpop.f32.mrf.mxu0 }
 0x3cb   : > { %v2473_v60 = vadd.f32 %v7000_v7, %v2433_v8 }
 0x3cc   : > { %v2269_v0 = vpop.f32.mrf.mxu3 }
 0x3cd   : > { %v2545_v4 = vmin.f32 %v2473_v60, 0.0  ;;  %v2270_v19 = vadd.f32 %v2269_v0, %v2171_v16  ;;  %vm2509_vm11 = vcmp.gt.f32.partialorder %v2473_v60, 0.0 }
 0x3cf   : > { %v5390_v48 = vpop.eup %5389  ;;  %v2369_v21 = vadd.f32 %v7156_v56, %v2270_v19  ;;  %v2599_v12 = vmul.f32 1.442695, %v2545_v4  ;;  %v2174_v56 = vadd.f32 %v6984_v63, %v6914_v5  ;;  %v2179_v19 = vadd.f32 %v6984_v63, %v6928_v44 }
 0x3d0   : > { %v4647_v25 = vadd.f32 -1.0, %v5390_v48 }
 0x3d1   : > { %v2434_v29 = vmul.f32 %v6994_v23, %v2369_v21  ;;  %5391 = vpow2.f32 %v2599_v12 }
 0x3d2   : > { %v7232_v31 = vpop.f32.mrf.mxu1  ;;  %v2688_v11 = vsel %vm2508_vm7, %v2472_v57, %v4647_v25  ;;  %v7265_v59 = vpop.f32.mrf.mxu0 }
 0x3d3   : > { %v2474_v38 = vadd.f32 %v7000_v7, %v2434_v29  ;;  %v7244_v15 = vpack.c.bf16 %v2688_v11, %v2687_v24  ;;  %v2716_v29 = vadd.s32 7, %v7017_v1  ;;  %v5103_v24 = vld [vmem:[#allocation8 + $0x80] sm:$0xff]  ;;  %v5133_v11 = vld [vmem:[#allocation10 + $0xb0] sm:$0xff] }
 0x3d4   : > { %v2272_v39 = vpop.f32.mrf.mxu3  ;;  %3176 = vmatpush.bf16.msra.mxu1 %v5103_v24  ;;  %3877 = vmatpush.bf16.msra.mxu0 %v5133_v11 }
 0x3d5   : > { %v2546_v10 = vmin.f32 %v2474_v38, 0.0  ;;  %v2273_v41 = vadd.f32 %v2272_v39, %v2174_v56  ;;  %4790 = vmatmul.msk.bf16.gmra.mxu1 %vm7237_vm10, %v7244_v15  ;;  %4817 = vmatmul.msk.bf16.gmra.mxu2 %vm7237_vm10, %v7244_v15  ;;  %vm2510_vm14 = vcmp.gt.f32.partialorder %v2474_v38, 0.0  ;;  %vm2728_vm0 = vcmp.ge.s32.totalorder %v2716_v29, 0 }
 0x3d6   : > { %vm2740_vm4 = vcmp.lt.s32.totalorder %v2716_v29, 16 }
 0x3d7   : > { %v2601_v51 = vmul.f32 1.442695, %v2546_v10  ;;  %v2372_v5 = vadd.f32 %v7186_v17, %v2273_v41  ;;  %v5392_v13 = vpop.eup %5391  ;;  %v2181_v10 = vadd.f32 %v6984_v63, %v6935_v26  ;;  %vm7296_vm2 = vmand %vm2728_vm0, %vm2740_vm4 }
 0x3d8   : > { %v4648_v20 = vadd.f32 -1.0, %v5392_v13  ;;  %vm7307_vm13 = vmpackc.low %vm7296_vm2, %vm7261_vm9 }
 0x3d9   : > { %5393 = vpow2.f32 %v2601_v51  ;;  %v2435_v37 = vmul.f32 %v6994_v23, %v2372_v5 }
 0x3da   : > { %v7255_v18 = vpop.f32.mrf.mxu1  ;;  %v2689_v0 = vsel %vm2509_vm11, %v2473_v60, %v4648_v20  ;;  %v2383_v56 = vpop.f32.mrf.mxu0  ;;  %vm7335_vm11 = vmpackc.low %vm7296_vm2, %vm7296_vm2 }
 0x3db   : > { %v2475_v35 = vadd.f32 %v7000_v7, %v2435_v37 }
 0x3dc   : > { %v2274_v46 = vpop.f32.mrf.mxu3 }
 0x3dd   : > { %v2547_v14 = vmin.f32 %v2475_v35, 0.0  ;;  %v2275_v57 = vadd.f32 %v2274_v46, %v2176_v43  ;;  %vm2511_vm6 = vcmp.gt.f32.partialorder %v2475_v35, 0.0 }
 0x3df   : > { %v5394_v17 = vpop.eup %5393  ;;  %v2374_v53 = vadd.f32 %v7202_v47, %v2275_v57  ;;  %v2603_v8 = vmul.f32 1.442695, %v2547_v14 }
 0x3e0   : > { %v4649_v32 = vadd.f32 -1.0, %v5394_v17 }
 0x3e1   : > { %v2436_v62 = vmul.f32 %v6994_v23, %v2374_v53  ;;  %5395 = vpow2.f32 %v2603_v8  ;;  %v2184_v53 = vadd.f32 %v6984_v63, %v6937_v28 }
 0x3e2   : > { %v7268_v16 = vpop.f32.mrf.mxu1  ;;  %v2690_v4 = vsel %vm2510_vm14, %v2474_v38, %v4649_v32 }
 0x3e3   : > { %v2476_v61 = vadd.f32 %v7000_v7, %v2436_v62  ;;  %v7280_v48 = vpack.c.bf16 %v2690_v4, %v2689_v0  ;;  %v2386_v62 = vpop.f32.mrf.mxu0 }
 0x3e4   : > { %v2277_v21 = vpop.f32.mrf.mxu3 }
 0x3e5   : > { %v2548_v25 = vmin.f32 %v2476_v61, 0.0  ;;  %v2278_v60 = vadd.f32 %v2277_v21, %v2179_v19  ;;  %4793 = vmatmul.msk.bf16.gmra.mxu1 %vm7273_vm15, %v7280_v48  ;;  %4820 = vmatmul.msk.bf16.gmra.mxu2 %vm7273_vm15, %v7280_v48  ;;  %vm2512_vm7 = vcmp.gt.f32.partialorder %v2476_v61, 0.0  ;;  %v2186_v21 = vadd.f32 %v6984_v63, %v6944_v42 }
 0x3e7   : > { %v2605_v12 = vmul.f32 1.442695, %v2548_v25  ;;  %v2377_v44 = vadd.f32 %v7228_v52, %v2278_v60  ;;  %v5396_v39 = vpop.eup %5395 }
 0x3e8   : > { %v4650_v22 = vadd.f32 -1.0, %v5396_v39 }
 0x3e9   : > { %5397 = vpow2.f32 %v2605_v12  ;;  %v2437_v34 = vmul.f32 %v6994_v23, %v2377_v44 }
 0x3ea   : > { %v7291_v38 = vpop.f32.mrf.mxu1  ;;  %v2691_v20 = vsel %vm2511_vm6, %v2475_v35, %v4650_v22 }
 0x3eb   : > { %v2477_v41 = vadd.f32 %v7000_v7, %v2437_v34  ;;  %v2388_v29 = vpop.f32.mrf.mxu0 }
 0x3ec   : > { %v2279_v51 = vpop.f32.mrf.mxu3 }
 0x3ed   : > { %v2549_v52 = vmin.f32 %v2477_v41, 0.0  ;;  %v2280_v5 = vadd.f32 %v2279_v51, %v2181_v10  ;;  %vm2513_vm8 = vcmp.gt.f32.partialorder %v2477_v41, 0.0  ;;  %v5124_v51 = vld [vmem:[#allocation10 + $0x68] sm:$0xff] }
 0x3ee   : > { %3829 = vmatpush.bf16.msra.mxu3 %v5124_v51 }
 0x3ef   : > { %v5398_v37 = vpop.eup %5397  ;;  %v2379_v13 = vadd.f32 %v2378_v3, %v2280_v5  ;;  %v2607_v14 = vmul.f32 1.442695, %v2549_v52 }
 0x3f0   : > { %v4651_v46 = vadd.f32 -1.0, %v5398_v37 }
 0x3f1   : > { %v2438_v26 = vmul.f32 %v6994_v23, %v2379_v13  ;;  %5399 = vpow2.f32 %v2607_v14 }
 0x3f2   : > { %v7301_v57 = vpop.f32.mrf.mxu1  ;;  %v2692_v17 = vsel %vm2512_vm7, %v2476_v61, %v4651_v46 }
 0x3f3   : > { %v2478_v32 = vadd.f32 %v7000_v7, %v2438_v26  ;;  %v7314_v8 = vpack.c.bf16 %v2692_v17, %v2691_v20  ;;  %v2717_v20 = vadd.s32 8, %v7017_v1 }
 0x3f4   : > { %v2282_v2 = vpop.f32.mrf.mxu3 }
 0x3f5   : > { %v2550_v35 = vmin.f32 %v2478_v32, 0.0  ;;  %v2283_v0 = vadd.f32 %v2282_v2, %v2184_v53  ;;  %4796 = vmatmul.msk.bf16.gmra.mxu1 %vm7307_vm13, %v7314_v8  ;;  %4823 = vmatmul.msk.bf16.gmra.mxu2 %vm7307_vm13, %v7314_v8  ;;  %vm2514_vm9 = vcmp.gt.f32.partialorder %v2478_v32, 0.0  ;;  %v5132_v53 = vld [vmem:[#allocation10 + $0xa8] sm:$0xff]  ;;  %vm2729_vm14 = vcmp.ge.s32.totalorder %v2717_v20, 0 }
 0x3f6   : > { %3878 = vmatpush.bf16.msra.mxu0 %v5132_v53  ;;  %vm2741_vm0 = vcmp.lt.s32.totalorder %v2717_v20, 16 }
 0x3f7   : > { %v2609_v54 = vmul.f32 1.442695, %v2550_v35  ;;  %v2382_v28 = vadd.f32 %v7265_v59, %v2283_v0  ;;  %v5400_v61 = vpop.eup %5399  ;;  %v2191_v35 = vadd.f32 %v6984_v63, %v6951_v9  ;;  %vm7357_vm4 = vmand %vm2729_vm14, %vm2741_vm0 }
 0x3f8   : > { %v4652_v34 = vadd.f32 -1.0, %v5400_v61  ;;  %vm4827_vm7 = vmpackc.low %vm7357_vm4, %vm7357_vm4 }
 0x3f9   : > { %5401 = vpow2.f32 %v2609_v54  ;;  %v2439_v4 = vmul.f32 %v6994_v23, %v2382_v28 }
 0x3fa   : > { %v7324_v19 = vpop.f32.mrf.mxu1  ;;  %v2693_v5 = vsel %vm2513_vm8, %v2477_v41, %v4652_v34 }
 0x3fb   : > { %v2479_v25 = vadd.f32 %v7000_v7, %v2439_v4 }
 0x3fc   : > { %v2284_v60 = vpop.f32.mrf.mxu3 }
 0x3fd   : > { %v2551_v12 = vmin.f32 %v2479_v25, 0.0  ;;  %v2285_v44 = vadd.f32 %v2284_v60, %v2186_v21  ;;  %vm2515_vm2 = vcmp.gt.f32.partialorder %v2479_v25, 0.0 }
 0x3ff   : > { %v5402_v24 = vpop.eup %5401  ;;  %v2384_v11 = vadd.f32 %v2383_v56, %v2285_v44  ;;  %v2611_v59 = vmul.f32 1.442695, %v2551_v12  ;;  %v2189_v56 = vadd.f32 %v6984_v63, %v6946_v58  ;;  %v2391_v58 = vpop.f32.mrf.mxu0 }
 0x400   : > { %v4653_v39 = vadd.f32 -1.0, %v5402_v24 }
 0x401   : > { %v2440_v10 = vmul.f32 %v6994_v23, %v2384_v11  ;;  %5403 = vpow2.f32 %v2611_v59 }
 0x402   : > { %v7330_v52 = vpop.f32.mrf.mxu1  ;;  %v2694_v42 = vsel %vm2514_vm9, %v2478_v32, %v4653_v39 }
 0x403   : > { %v2480_v37 = vadd.f32 %v7000_v7, %v2440_v10  ;;  %v7342_v13 = vpack.c.bf16 %v2694_v42, %v2693_v5 }
 0x404   : > { %v2287_v46 = vpop.f32.mrf.mxu3 }
 0x405   : > { %v2552_v14 = vmin.f32 %v2480_v37, 0.0  ;;  %v2288_v41 = vadd.f32 %v2287_v46, %v2189_v56  ;;  %4799 = vmatmul.msk.bf16.gmra.mxu1 %vm7335_vm11, %v7342_v13  ;;  %4826 = vmatmul.msk.bf16.gmra.mxu2 %vm7335_vm11, %v7342_v13  ;;  %vm2516_vm6 = vcmp.gt.f32.partialorder %v2480_v37, 0.0  ;;  %v5118_v56 = vld [vmem:[#allocation10 + $0x38] sm:$0xff] }
 0x406   : > { %3778 = vmatpush.bf16.msrb.mxu2 %v5118_v56 }
 0x407   : > { %v2613_v43 = vmul.f32 1.442695, %v2552_v14  ;;  %v2387_v26 = vadd.f32 %v2386_v62, %v2288_v41  ;;  %v5404_v2 = vpop.eup %5403  ;;  %v2393_v9 = vpop.f32.mrf.mxu0  ;;  %v7400_v14 = vld [vmem:[%s7966_s6] ss:$0 sm:$0xff] }
 0x408   : > { %v4654_v4 = vadd.f32 -1.0, %v5404_v2 }
 0x409   : > { %5405 = vpow2.f32 %v2613_v43  ;;  %v2441_v17 = vmul.f32 %v6994_v23, %v2387_v26 }
 0x40a   : > { %v7352_v32 = vpop.f32.mrf.mxu1  ;;  %v2695_v11 = vsel %vm2515_vm2, %v2479_v25, %v4654_v4  ;;  %v7385_v25 = vld [vmem:[%s7965_s5] ss:$0 sm:$0xff] }
 0x40b   : > { %v2481_v0 = vadd.f32 %v7000_v7, %v2441_v17 }
 0x40c   : > { %v2289_v54 = vpop.f32.mrf.mxu3 }
 0x40d   : > { %v2553_v62 = vmin.f32 %v2481_v0, 0.0  ;;  %v2290_v28 = vadd.f32 %v2289_v54, %v2191_v35  ;;  %vm2517_vm14 = vcmp.gt.f32.partialorder %v2481_v0, 0.0 }
 0x40f   : > { %v5406_v61 = vpop.eup %5405  ;;  %v2389_v21 = vadd.f32 %v2388_v29, %v2290_v28  ;;  %v2615_v44 = vmul.f32 1.442695, %v2553_v62  ;;  %v2194_v29 = vadd.f32 %v6984_v63, %v6953_v50  ;;  %v2396_v43 = vpop.f32.mrf.mxu0 }
 0x410   : > { %v4655_v12 = vadd.f32 -1.0, %v5406_v61 }
 0x411   : > { %v2442_v34 = vmul.f32 %v6994_v23, %v2389_v21  ;;  %5407 = vpow2.f32 %v2615_v44  ;;  %v2199_v21 = vadd.f32 %v7393_v36, %v6963_v27 }
 0x412   : > { %v7362_v24 = vpop.f32.mrf.mxu1  ;;  %v2696_v39 = vsel %vm2516_vm6, %v2480_v37, %v4655_v12 }
 0x413   : > { %v2482_v59 = vadd.f32 %v7000_v7, %v2442_v34  ;;  %v7370_v10 = vpack.c.bf16 %v2696_v39, %v2695_v11  ;;  %v2718_v7 = vadd.s32 9, %v7017_v1 }
 0x414   : > { %v2292_v51 = vpop.f32.mrf.mxu3 }
 0x415   : > { %v2554_v23 = vmin.f32 %v2482_v59, 0.0  ;;  %v2293_v5 = vadd.f32 %v2292_v51, %v2194_v29  ;;  %4829 = vmatmul.msk.bf16.gmra.mxu2 %vm4827_vm7, %v7370_v10  ;;  %4838 = vmatmul.msk.bf16.vlgmr.msra.gmra.mxu1 %vm7170_vm12, %v7177_v33  ;;  %v2196_v33 = vadd.f32 %v7393_v36, %v6958_v45  ;;  %vm2730_vm12 = vcmp.ge.s32.totalorder %v2718_v7, 0 }
 0x416   : > { %vm2742_vm8 = vcmp.lt.s32.totalorder %v2718_v7, 16  ;;  %vm2518_vm0 = vcmp.gt.f32.partialorder %v2482_v59, 0.0 }
 0x417   : > { %v2617_v50 = vmul.f32 1.442695, %v2554_v23  ;;  %v2392_v63 = vadd.f32 %v2391_v58, %v2293_v5  ;;  %v5408_v46 = vpop.eup %5407  ;;  %vm7403_vm9 = vmand %vm2730_vm12, %vm2742_vm8  ;;  %v2398_v27 = vpop.f32.mrf.mxu0  ;;  %v2201_v5 = vadd.f32 %v7393_v36, %v6965_v30 }
 0x418   : > { %v4656_v17 = vadd.f32 -1.0, %v5408_v46  ;;  %vm4830_vm2 = vmpackc.low %vm7403_vm9, %vm7357_vm4 }
 0x419   : > { %5409 = vpow2.f32 %v2617_v50  ;;  %v2443_v42 = vmul.f32 %v7385_v25, %v2392_v63  ;;  %vm4833_vm12 = vmpackc.low %vm7403_vm9, %vm7403_vm9 }
 0x41a   : > { %v7388_v37 = vpop.f32.mrf.mxu1  ;;  %v2697_v4 = vsel %vm2517_vm14, %v2481_v0, %v4656_v17 }
 0x41b   : > { %v2483_v41 = vadd.f32 %v7400_v14, %v2443_v42 }
 0x41c   : > { %v2294_v26 = vpop.f32.mrf.mxu3 }
 0x41d   : > { %v2555_v58 = vmin.f32 %v2483_v41, 0.0  ;;  %v2295_v20 = vadd.f32 %v2294_v26, %v2196_v33 }
 0x41f   : > { %v5410_v53 = vpop.eup %5409  ;;  %v2394_v2 = vadd.f32 %v2393_v9, %v2295_v20  ;;  %v2619_v54 = vmul.f32 1.442695, %v2555_v58  ;;  %v2401_v46 = vpop.f32.mrf.mxu0  ;;  %v5131_v58 = vld [vmem:[#allocation10 + $0xa0] sm:$0xff]  ;;  %v5117_v20 = vld [vmem:[#allocation10 + $0x30] sm:$0xff] }
 0x420   : > { %v4657_v45 = vadd.f32 -1.0, %v5410_v53  ;;  %3879 = vmatpush.bf16.msra.mxu0 %v5131_v58  ;;  %3779 = vmatpush.bf16.msrb.mxu2 %v5117_v20 }
 0x421   : > { %v2444_v62 = vmul.f32 %v7385_v25, %v2394_v2  ;;  %5411 = vpow2.f32 %v2619_v54  ;;  %v2204_v2 = vadd.f32 %v7393_v36, %v6970_v49 }
 0x422   : > { %v7408_v28 = vpop.f32.mrf.mxu1  ;;  %v2698_v61 = vsel %vm2518_vm0, %v2482_v59, %v4657_v45  ;;  %v5123_v59 = vld [vmem:[#allocation10 + $0x60] sm:$0xff] }
 0x423   : > { %v2484_v12 = vadd.f32 %v7400_v14, %v2444_v62  ;;  %v7417_v44 = vpack.c.bf16 %v2698_v61, %v2697_v4  ;;  %3830 = vmatpush.bf16.msra.mxu3 %v5123_v59 }
 0x424   : > { %v2297_v34 = vpop.f32.mrf.mxu3 }
 0x425   : > { %v2556_v9 = vmin.f32 %v2484_v12, 0.0  ;;  %v2298_v11 = vadd.f32 %v2297_v34, %v2199_v21  ;;  %4832 = vmatmul.msk.bf16.gmra.mxu2 %vm4830_vm2, %v7417_v44  ;;  %4841 = vmatmul.msk.bf16.gmra.mxu1 %vm7208_vm1, %v7215_v55  ;;  %vm2519_vm1 = vcmp.gt.f32.partialorder %v2483_v41, 0.0  ;;  %vm2520_vm6 = vcmp.gt.f32.partialorder %v2484_v12, 0.0 }
 0x427   : > { %v2621_v0 = vmul.f32 1.442695, %v2556_v9  ;;  %v2397_v39 = vadd.f32 %v2396_v43, %v2298_v11  ;;  %v5412_v23 = vpop.eup %5411  ;;  %v8150_v11 = vld [vmem:[#allocation28_spill] sm:$0xff] }
 0x428   : > { %v4658_v55 = vadd.f32 -1.0, %v5412_v23 }
 0x429   : > { %5413 = vpow2.f32 %v2621_v0  ;;  %v2445_v29 = vmul.f32 %v7385_v25, %v2397_v39  ;;  %v5116_v39 = vld [vmem:[#allocation10 + $0x28] sm:$0xff] }
 0x42a   : > { %v7429_v51 = vpop.f32.mrf.mxu1  ;;  %v2699_v30 = vsel %vm2519_vm1, %v2483_v41, %v4658_v55  ;;  %3780 = vmatpush.bf16.msrb.mxu2 %v5116_v39  ;;  %v5122_v55 = vld [vmem:[#allocation10 + $0x58] sm:$0xff] }
 0x42b   : > { %v2485_v50 = vadd.f32 %v7400_v14, %v2445_v29  ;;  %3831 = vmatpush.bf16.msra.mxu3 %v5122_v55 }
 0x42c   : > { %v2299_v63 = vpop.f32.mrf.mxu3 }
 0x42d   : > { %v2557_v7 = vmin.f32 %v2485_v50, 0.0  ;;  %v2300_v6 = vadd.f32 %v2299_v63, %v2201_v5 }
 0x42f   : > { %v5414_v42 = vpop.eup %5413  ;;  %v2399_v56 = vadd.f32 %v2398_v27, %v2300_v6  ;;  %v2623_v43 = vmul.f32 1.442695, %v2557_v7  ;;  %v2206_v27 = vadd.f32 %v7393_v36, %v8150_v11 }
 0x430   : > { %v4659_v33 = vadd.f32 -1.0, %v5414_v42 }
 0x431   : > { %v2446_v26 = vmul.f32 %v7385_v25, %v2399_v56  ;;  %5415 = vpow2.f32 %v2623_v43 }
 0x432   : > { %v7435_v17 = vpop.f32.mrf.mxu1  ;;  %v2700_v53 = vsel %vm2520_vm6, %v2484_v12, %v4659_v33  ;;  %v2403_v12 = vpop.f32.mrf.mxu0  ;;  %v8151_v33 = vld [vmem:[#allocation27_spill] sm:$0xff] }
 0x433   : > { %v2486_v45 = vadd.f32 %v7400_v14, %v2446_v26  ;;  %v7443_v54 = vpack.c.bf16 %v2700_v53, %v2699_v30  ;;  %v2209_v43 = vadd.f32 %v7393_v36, %v8151_v33 }
 0x434   : > { %v2302_v62 = vpop.f32.mrf.mxu3 }
 0x435   : > { %v2558_v4 = vmin.f32 %v2486_v45, 0.0  ;;  %v2303_v61 = vadd.f32 %v2302_v62, %v2204_v2  ;;  %4835 = vmatmul.msk.bf16.gmra.mxu2 %vm4833_vm12, %v7443_v54  ;;  %4844 = vmatmul.msk.bf16.gmra.mxu1 %vm7237_vm10, %v7244_v15  ;;  %vm2521_vm10 = vcmp.gt.f32.partialorder %v2485_v50, 0.0  ;;  %vm2522_vm8 = vcmp.gt.f32.partialorder %v2486_v45, 0.0  ;;  %v7475_v62 = vpop.f32.mrf.mxu2 }
 0x437   : > { %v2625_v49 = vmul.f32 1.442695, %v2558_v4  ;;  %v2402_v41 = vadd.f32 %v2401_v46, %v2303_v61  ;;  %v5416_v9 = vpop.eup %5415  ;;  %v5130_v61 = vld [vmem:[#allocation10 + $0x98] sm:$0xff] }
 0x438   : > { %v4660_v40 = vadd.f32 -1.0, %v5416_v9  ;;  %3880 = vmatpush.bf16.msra.mxu0 %v5130_v61 }
 0x439   : > { %5417 = vpow2.f32 %v2625_v49  ;;  %v2447_v21 = vmul.f32 %v7385_v25, %v2402_v41 }
 0x43a   : > { %v7455_v34 = vpop.f32.mrf.mxu1  ;;  %v7463_v56 = vsel %vm2521_vm10, %v2485_v50, %v4660_v40  ;;  %v2406_v20 = vpop.f32.mrf.mxu0  ;;  %vm3550_vm10 = vcmask 1043456  }
 0x43b   : > { %v2487_v0 = vadd.f32 %v7400_v14, %v2447_v21  ;;  %v8152_v21 = vld [vmem:[#allocation30_spill] sm:$0xff] }
 0x43c   : > { %v2304_v29 = vpop.f32.mrf.mxu3 }
 0x43d   : > { %v2559_v59 = vmin.f32 %v2487_v0, 0.0  ;;  %v2305_v23 = vadd.f32 %v2304_v29, %v2206_v27 }
 0x43f   : > { %v5418_v15 = vpop.eup %5417  ;;  %v2404_v5 = vadd.f32 %v2403_v12, %v2305_v23  ;;  %v2627_v7 = vmul.f32 1.442695, %v2559_v59  ;;  %v2211_v12 = vadd.f32 %v7393_v36, %v8152_v21  ;;  %v5114_v21 = vld [vmem:[#allocation10 + $0x18] sm:$0xff] }
 0x440   : > { %v4661_v63 = vadd.f32 -1.0, %v5418_v15 }
 0x441   : > { %v2448_v6 = vmul.f32 %v7385_v25, %v2404_v5  ;;  %5419 = vpow2.f32 %v2627_v7  ;;  %v7484_v5 = vpop.f32.mrf.mxu2 }
 0x442   : > { %v7461_v42 = vpop.f32.mrf.mxu1  ;;  %v7465_v46 = vsel %vm2522_vm8, %v2486_v45, %v4661_v63  ;;  %v2408_v27 = vpop.f32.mrf.mxu0 }
 0x443   : > { %v2488_v26 = vadd.f32 %v7400_v14, %v2448_v6  ;;  %v4864_v58 = vpack.c.bf16 %v7465_v46, %v7463_v56 }
 0x444   : > { %v2307_v30 = vpop.f32.mrf.mxu3 }
 0x445   : > { %v2560_v53 = vmin.f32 %v2488_v26, 0.0  ;;  %v2308_v2 = vadd.f32 %v2307_v30, %v2209_v43  ;;  %4847 = vmatmul.msk.bf16.gmra.mxu1 %vm7273_vm15, %v7280_v48  ;;  %vm2523_vm15 = vcmp.gt.f32.partialorder %v2487_v0, 0.0  ;;  %vm2524_vm14 = vcmp.gt.f32.partialorder %v2488_v26, 0.0 }
 0x447   : > { %v2629_v50 = vmul.f32 1.442695, %v2560_v53  ;;  %v2407_v45 = vadd.f32 %v2406_v20, %v2308_v2  ;;  %v5420_v41 = vpop.eup %5419 }
 0x448   : > { %v4662_v39 = vadd.f32 -1.0, %v5420_v41  ;;  %v5129_v41 = vld [vmem:[#allocation10 + $0x90] sm:$0xff] }
 0x449   : > { %5421 = vpow2.f32 %v2629_v50  ;;  %v2449_v4 = vmul.f32 %v7385_v25, %v2407_v45  ;;  %v5121_v45 = vld [vmem:[#allocation10 + $0x50] sm:$0xff]  ;;  %3881 = vmatpush.bf16.msra.mxu0 %v5129_v41 }
 0x44a   : > { %v7478_v49 = vpop.f32.mrf.mxu1  ;;  %v7488_v36 = vsel %vm2523_vm15, %v2487_v0, %v4662_v39  ;;  %3832 = vmatpush.bf16.msra.mxu3 %v5121_v45 }
 0x44b   : > { %v2489_v9 = vadd.f32 %v7400_v14, %v2449_v4 }
 0x44c   : > { %v2309_v11 = vpop.f32.mrf.mxu3 }
 0x44d   : > { %v2561_v47 = vmin.f32 %v2489_v9, 0.0  ;;  %v2310_v48 = vadd.f32 %v2309_v11, %v2211_v12  ;;  %vm2525_vm0 = vcmp.gt.f32.partialorder %v2489_v9, 0.0  ;;  %v5113_v11 = vld [vmem:[#allocation10 + $0x10] sm:$0xff] }
 0x44f   : > { %v5422_v29 = vpop.eup %5421  ;;  %v2409_v59 = vadd.f32 %v2408_v27, %v2310_v48  ;;  %v2631_v40 = vmul.f32 1.442695, %v2561_v47  ;;  %v5112_v27 = vld [vmem:[#allocation10 + $0x8] sm:$0xff] }
 0x450   : > { %v4663_v23 = vadd.f32 -1.0, %v5422_v29  ;;  %v7546_v29 = vld [vmem:[%s8153_s9] ss:$0 sm:$0xff] }
 0x451   : > { %v2450_v15 = vmul.f32 %v7385_v25, %v2409_v59  ;;  %5423 = vpow2.f32 %v2631_v40  ;;  %v5115_v25 = vld [vmem:[#allocation10 + $0x20] sm:$0xff]  ;;  %v5120_v40 = vld [vmem:[#allocation10 + $0x48] sm:$0xff]  ;;  %v3046_v41 = vadd.f32 %v7546_v29, %v7268_v16 }
 0x452   : > { %v7486_v63 = vpop.f32.mrf.mxu1  ;;  %v7490_v7 = vsel %vm2524_vm14, %v2488_v26, %v4663_v23  ;;  %3781 = vmatpush.bf16.msrb.mxu2 %v5115_v25  ;;  %v7500_v26 = vpop.f32.mrf.mxu2  ;;  %v3041_v23 = vadd.f32 %v7546_v29, %v7232_v31  ;;  %3833 = vmatpush.bf16.msra.mxu3 %v5120_v40  ;;  %v5119_v25 = vld [vmem:[#allocation10 + $0x40] sm:$0xff]  ;;  %v3043_v31 = vadd.f32 %v7546_v29, %v7255_v18 }
 0x453   : > { %v2490_v6 = vadd.f32 %v7400_v14, %v2450_v15  ;;  %v4867_v55 = vpack.c.bf16 %v7490_v7, %v7488_v36 }
 0x454   : > { %v3110_v60 = vadd.f32 %v7475_v62, %v3041_v23 }
 0x455   : > { %v2562_v33 = vmin.f32 %v2490_v6, 0.0  ;;  %4850 = vmatmul.msk.bf16.gmra.mxu1 %vm7307_vm13, %v7314_v8  ;;  %vm2526_vm1 = vcmp.gt.f32.partialorder %v2490_v6, 0.0 }
 0x456   : > { %3782 = vmatpush.bf16.msrb.mxu2 %v5114_v21  ;;  %3834 = vmatpush.bf16.msra.mxu3 %v5119_v25 }
 0x457   : > { %v2633_v43 = vmul.f32 1.442695, %v2562_v33  ;;  %v5424_v0 = vpop.eup %5423 }
 0x458   : > { %v4664_v30 = vadd.f32 -1.0, %v5424_v0 }
 0x459   : > { %5425 = vpow2.f32 %v2633_v43  ;;  %v5127_v43 = vld [vmem:[#allocation10 + $0x80] sm:$0xff] }
 0x45a   : > { %v7498_v20 = vpop.f32.mrf.mxu1  ;;  %v7504_v50 = vsel %vm2525_vm0, %v2489_v9, %v4664_v30  ;;  %v7513_v4 = vpop.f32.mrf.mxu2  ;;  %3783 = vmatpush.bf16.msrb.mxu2 %v5113_v11  ;;  %v2719_v30 = vadd.s32 10, %v7017_v1 }
 0x45c   : > { %vm2731_vm13 = vcmp.ge.s32.totalorder %v2719_v30, 0 }
 0x45e   : > { %3784 = vmatpush.bf16.msrb.mxu2 %v5112_v27  ;;  %v3115_v27 = vadd.f32 %v7500_v26, %v3046_v41  ;;  %v3048_v26 = vadd.f32 %v7546_v29, %v7291_v38 }
 0x45f   : > { %v5426_v14 = vpop.eup %5425 }
 0x460   : > { %v4665_v53 = vadd.f32 -1.0, %v5426_v14  ;;  %v3112_v14 = vadd.f32 %v7484_v5, %v3043_v31  ;;  %v3117_v31 = vadd.f32 %v7513_v4, %v3048_v26 }
 0x462   : > { %v7502_v2 = vpop.f32.mrf.mxu1  ;;  %v7506_v3 = vsel %vm2526_vm1, %v2490_v6, %v4665_v53  ;;  %v7517_v12 = vpop.f32.mrf.mxu2 }
 0x463   : > { %v4870_v8 = vpack.c.bf16 %v7506_v3, %v7504_v50 }
 0x465   : > { %4853 = vmatmul.msk.bf16.gmra.mxu1 %vm7335_vm11, %v7342_v13  ;;  %vm2743_vm11 = vcmp.lt.s32.totalorder %v2719_v30, 16 }
 0x466   : > { %vm7567_vm4 = vmand %vm2731_vm13, %vm2743_vm11 }
 0x46a   : > { %v7515_v61 = vpop.f32.mrf.mxu1  ;;  %v7527_v22 = vpop.f32.mrf.mxu2 }
 0x472   : > { %v7519_v9 = vpop.f32.mrf.mxu1  ;;  %v7533_v48 = vpop.f32.mrf.mxu2 }
 0x475   : > { %4856 = vmatmul.msk.bf16.gmra.mxu1 %vm4827_vm7, %v7370_v10  ;;  %v5111_v10 = vld [vmem:[#allocation10] sm:$0xff]  ;;  %vm4863_vm7 = vmpackc.low %vm7567_vm4, %vm7567_vm4 }
 0x476   : > { %3785 = vmatpush.bf16.msrb.mxu2 %v5111_v10 }
 0x47a   : > { %v7529_v13 = vpop.f32.mrf.mxu1  ;;  %v7548_v59 = vpop.f32.mrf.mxu2 }
 0x482   : > { %v7531_v47 = vpop.f32.mrf.mxu1  ;;  %v7561_v0 = vpop.f32.mrf.mxu2 }
 0x485   : > { %4859 = vmatmul.msk.bf16.gmra.mxu1 %vm4830_vm2, %v7417_v44  ;;  %v5128_v44 = vld [vmem:[#allocation10 + $0x88] sm:$0xff] }
 0x486   : > { %3882 = vmatpush.bf16.msra.mxu0 %v5128_v44 }
 0x48a   : > { %v7541_v39 = vpop.f32.mrf.mxu1  ;;  %3883 = vmatpush.bf16.msra.mxu0 %v5127_v43  ;;  %v7572_v5 = vpop.f32.mrf.mxu2  ;;  %v2720_v43 = vadd.s32 11, %v7017_v1 }
 0x48c   : > { %vm2732_vm8 = vcmp.ge.s32.totalorder %v2720_v43, 0  ;;  %vm2744_vm15 = vcmp.lt.s32.totalorder %v2720_v43, 16 }
 0x492   : > { %v3178_v15 = vpop.f32.mrf.mxu1 }
 0x493   : > { %v3179_v6 = vadd.f32 %v3178_v15, %v3110_v60  ;;  %v8156_v60 = vld [vmem:[#allocation25_spill] sm:$0xff] }
 0x494   : > { %vm3382_vm2 = vcmp.ge.s32.totalorder %v8156_v60, 2 }
 0x495   : > { %v3262_v33 = vmin.f32 %v3179_v6, 0.0  ;;  %4862 = vmatmul.msk.bf16.gmra.mxu1 %vm4833_vm12, %v7443_v54  ;;  %vm3238_vm9 = vcmp.gt.f32.partialorder %v3179_v6, 0.0  ;;  %vm7590_vm12 = vmpackc.low %vm5801_vm3, %vm3382_vm2 }
 0x496   : > { %vm7602_vm3 = vmand %vm2732_vm8, %vm2744_vm15 }
 0x497   : > { %v3286_v62 = vmul.f32 1.442695, %v3262_v33  ;;  %vm4866_vm1 = vmpackc.low %vm7602_vm3, %vm7567_vm4 }
 0x498   : > { %vm4869_vm4 = vmpackc.low %vm7602_vm3, %vm7602_vm3 }
 0x499   : > { %5427 = vpow2.f32 %v3286_v62 }
 0x49a   : > { %v3180_v53 = vpop.f32.mrf.mxu1 }
 0x49b   : > { %v3181_v45 = vadd.f32 %v3180_v53, %v3112_v14  ;;  %v7594_v53 = vpop.f32.mrf.mxu2 }
 0x49d   : > { %v3263_v35 = vmin.f32 %v3181_v45, 0.0  ;;  %vm3239_vm6 = vcmp.gt.f32.partialorder %v3181_v45, 0.0 }
 0x49f   : > { %v5428_v54 = vpop.eup %5427  ;;  %v3288_v18 = vmul.f32 1.442695, %v3263_v35 }
 0x4a0   : > { %v4872_v11 = vadd.f32 -1.0, %v5428_v54 }
 0x4a1   : > { %5429 = vpow2.f32 %v3288_v18 }
 0x4a2   : > { %v3183_v10 = vpop.f32.mrf.mxu1  ;;  %v3358_v16 = vsel %vm3238_vm9, %v3179_v6, %v4872_v11  ;;  %v3058_v11 = vadd.f32 %v7546_v29, %v7352_v32 }
 0x4a3   : > { %v3184_v23 = vadd.f32 %v3183_v10, %v3115_v27  ;;  %v3397_v15 = vsel %vm3382_vm2, %v3358_v16, 0.0  ;;  %v8161_v10 = vld [vmem:[#allocation26_spill] sm:$0xff] }
 0x4a4   : > { %v3494_v46 = vrot.slane %v3397_v15, 2  ;;  %v3551_v38 = vrot.slane %v3397_v15, 4  ;;  %vm3387_vm14 = vcmp.lt.s32.totalorder %v8161_v10, 18 }
 0x4a5   : > { %v3264_v40 = vmin.f32 %v3184_v23, 0.0  ;;  %4865 = vmatmul.msk.bf16.gmra.mxu1 %vm4863_vm7, %v4864_v58  ;;  %vm3240_vm0 = vcmp.gt.f32.partialorder %v3184_v23, 0.0 }
 0x4a7   : > { %v5430_v44 = vpop.eup %5429  ;;  %v3290_v33 = vmul.f32 1.442695, %v3264_v40 }
 0x4a8   : > { %v4873_v25 = vadd.f32 -1.0, %v5430_v44 }
 0x4a9   : > { %5431 = vpow2.f32 %v3290_v33 }
 0x4aa   : > { %v3359_v58 = vsel %vm3239_vm6, %v3181_v45, %v4873_v25  ;;  %v3185_v6 = vpop.f32.mrf.mxu1  ;;  %v3051_v45 = vadd.f32 %v7546_v29, %v7301_v57 }
 0x4ab   : > { %v3495_v62 = vrot.slane %v3359_v58, 2  ;;  %v3552_v30 = vrot.slane %v3359_v58, 4  ;;  %v4993_v14 = vpack.c.bf16 %v3359_v58, %v3358_v16  ;;  %v3186_v1 = vadd.f32 %v3185_v6, %v3117_v31 }
 0x4ac   : > { %v3120_v16 = vadd.f32 %v7517_v12, %v3051_v45  ;;  %v7617_v12 = vpop.f32.mrf.mxu2  ;;  %v3053_v31 = vadd.f32 %v7546_v29, %v7324_v19 }
 0x4ad   : > { %v3496_v4 = vsel %vm1792_vm5, %v3494_v46, %v3495_v62  ;;  %v3553_v35 = vsel %vm3550_vm10, %v3551_v38, %v3552_v30  ;;  %v3265_v54 = vmin.f32 %v3186_v1, 0.0  ;;  %4994 = vmatmul.msk.bf16.vlgmr.msrb.gmra.mxu2 %vm7590_vm12, %v4993_v14  ;;  %vm3241_vm13 = vcmp.gt.f32.partialorder %v3186_v1, 0.0 }
 0x4ae   : > { %v3122_v14 = vadd.f32 %v7527_v22, %v3053_v31 }
 0x4af   : > { %v5432_v41 = vpop.eup %5431  ;;  %v3292_v18 = vmul.f32 1.442695, %v3265_v54 }
 0x4b0   : > { %v4874_v27 = vadd.f32 -1.0, %v5432_v41 }
 0x4b1   : > { %5433 = vpow2.f32 %v3292_v18 }
 0x4b2   : > { %v3360_v40 = vsel %vm3240_vm0, %v3184_v23, %v4874_v27  ;;  %v3188_v44 = vpop.f32.mrf.mxu1 }
 0x4b3   : > { %v3399_v57 = vsel %vm3387_vm14, %v3360_v40, 0.0  ;;  %v3189_v26 = vadd.f32 %v3188_v44, %v3120_v16 }
 0x4b4   : > { %v3497_v15 = vrot.slane %v3399_v57, 2  ;;  %v3554_v33 = vrot.slane %v3399_v57, 4 }
 0x4b5   : > { %v3266_v25 = vmin.f32 %v3189_v26, 0.0  ;;  %4868 = vmatmul.msk.bf16.gmra.mxu1 %vm4866_vm1, %v4867_v55  ;;  %vm3242_vm11 = vcmp.gt.f32.partialorder %v3189_v26, 0.0 }
 0x4b6   : > { %v3498_v23 = vsel %vm1792_vm5, %v3495_v62, %v3497_v15  ;;  %v3555_v21 = vsel %vm3550_vm10, %v3552_v30, %v3554_v33  ;;  %v3056_v30 = vadd.f32 %v7546_v29, %v7330_v52 }
 0x4b7   : > { %v5434_v43 = vpop.eup %5433  ;;  %v3294_v46 = vmul.f32 1.442695, %v3266_v25  ;;  %v3608_v38 = vpack.c.bf16 %v3498_v23, %v3496_v4  ;;  %v3609_v58 = vpack.c.bf16 %v3555_v21, %v3553_v35  ;;  %v7628_v35 = vpop.f32.mrf.mxu2  ;;  %v3127_v23 = vadd.f32 %v7548_v59, %v3058_v11 }
 0x4b8   : > { %v4875_v6 = vadd.f32 -1.0, %v5434_v43  ;;  %v3125_v22 = vadd.f32 %v7533_v48, %v3056_v30  ;;  %v3061_v59 = vadd.f32 %v7546_v29, %v7362_v24  ;;  %v3063_v24 = vadd.f32 %v7546_v29, %v7388_v37 }
 0x4b9   : > { %5435 = vpow2.f32 %v3294_v46  ;;  %3835 = vmatmul.bf16.vlgmr.msra.gmra.mxu3 %v3608_v38  ;;  %3884 = vmatmul.bf16.vlgmr.msra.gmra.mxu0 %v3609_v58 }
 0x4ba   : > { %v3190_v36 = vpop.f32.mrf.mxu1  ;;  %v3361_v55 = vsel %vm3241_vm13, %v3186_v1, %v4875_v6 }
 0x4bb   : > { %v3191_v7 = vadd.f32 %v3190_v36, %v3122_v14  ;;  %v3400_v19 = vsel %vm3382_vm2, %v3361_v55, 0.0 }
 0x4bc   : > { %v3499_v45 = vrot.slane %v3400_v19, 2  ;;  %v3556_v18 = vrot.slane %v3400_v19, 4 }
 0x4bd   : > { %v3267_v62 = vmin.f32 %v3191_v7, 0.0  ;;  %vm3243_vm7 = vcmp.gt.f32.partialorder %v3191_v7, 0.0 }
 0x4bf   : > { %v5436_v54 = vpop.eup %5435  ;;  %v3296_v4 = vmul.f32 1.442695, %v3267_v62  ;;  %v7644_v21 = vpop.f32.mrf.mxu2  ;;  %v3130_v62 = vadd.f32 %v7561_v0, %v3061_v59  ;;  %v3132_v0 = vadd.f32 %v7572_v5, %v3063_v24 }
 0x4c0   : > { %v4876_v41 = vadd.f32 -1.0, %v5436_v54 }
 0x4c1   : > { %5437 = vpow2.f32 %v3296_v4 }
 0x4c2   : > { %v3362_v27 = vsel %vm3242_vm11, %v3189_v26, %v4876_v41  ;;  %v3193_v1 = vpop.f32.mrf.mxu1 }
 0x4c3   : > { %v3500_v52 = vrot.slane %v3362_v27, 2  ;;  %v3557_v16 = vrot.slane %v3362_v27, 4  ;;  %v4996_v40 = vpack.c.bf16 %v3362_v27, %v3361_v55  ;;  %v3194_v44 = vadd.f32 %v3193_v1, %v3125_v22 }
 0x4c5   : > { %v3268_v57 = vmin.f32 %v3194_v44, 0.0  ;;  %4871 = vmatmul.msk.bf16.gmra.mxu1 %vm4869_vm4, %v4870_v8  ;;  %4997 = vmatmul.msk.bf16.gmra.mxu2 %vm7590_vm12, %v4996_v40  ;;  %v3501_v48 = vsel %vm1792_vm5, %v3499_v45, %v3500_v52  ;;  %v3558_v26 = vsel %vm3550_vm10, %v3556_v18, %v3557_v16  ;;  %vm3244_vm9 = vcmp.gt.f32.partialorder %v3194_v44, 0.0 }
 0x4c7   : > { %v5438_v15 = vpop.eup %5437  ;;  %v3298_v33 = vmul.f32 1.442695, %v3268_v57  ;;  %v7653_v19 = vpop.f32.mrf.mxu2 }
 0x4c8   : > { %v4877_v25 = vadd.f32 -1.0, %v5438_v15 }
 0x4c9   : > { %5439 = vpow2.f32 %v3298_v33 }
 0x4ca   : > { %v3363_v50 = vsel %vm3243_vm7, %v3191_v7, %v4877_v25  ;;  %v3195_v3 = vpop.f32.mrf.mxu1  ;;  %v3066_v25 = vadd.f32 %v7546_v29, %v7408_v28 }
 0x4cb   : > { %v3402_v8 = vsel %vm3387_vm14, %v3363_v50, 0.0  ;;  %v3196_v43 = vadd.f32 %v3195_v3, %v3127_v23 }
 0x4cc   : > { %v3502_v31 = vrot.slane %v3402_v8, 2  ;;  %v3559_v46 = vrot.slane %v3402_v8, 4  ;;  %v3135_v3 = vadd.f32 %v7594_v53, %v3066_v25 }
 0x4cd   : > { %v3269_v38 = vmin.f32 %v3196_v43, 0.0  ;;  %vm3245_vm6 = vcmp.gt.f32.partialorder %v3196_v43, 0.0 }
 0x4ce   : > { %v3503_v58 = vsel %vm1792_vm5, %v3500_v52, %v3502_v31  ;;  %v3560_v32 = vsel %vm3550_vm10, %v3557_v16, %v3559_v46 }
 0x4cf   : > { %v5440_v6 = vpop.eup %5439  ;;  %v3300_v14 = vmul.f32 1.442695, %v3269_v38  ;;  %v3611_v36 = vpack.c.bf16 %v3503_v58, %v3501_v48  ;;  %v3612_v55 = vpack.c.bf16 %v3560_v32, %v3558_v26  ;;  %v7664_v33 = vpop.f32.mrf.mxu2 }
 0x4d0   : > { %v4878_v7 = vadd.f32 -1.0, %v5440_v6 }
 0x4d1   : > { %5441 = vpow2.f32 %v3300_v14  ;;  %3840 = vmatmul.bf16.gmra.mxu3 %v3611_v36  ;;  %3889 = vmatmul.bf16.gmra.mxu0 %v3612_v55  ;;  %v3068_v14 = vadd.f32 %v7546_v29, %v7429_v51  ;;  %v3071_v51 = vadd.f32 %v7546_v29, %v7435_v17 }
 0x4d2   : > { %v3198_v54 = vpop.f32.mrf.mxu1  ;;  %v3364_v4 = vsel %vm3244_vm9, %v3194_v44, %v4878_v7  ;;  %vm3989_vm9 = vcmask 1044480  }
 0x4d3   : > { %v3199_v30 = vadd.f32 %v3198_v54, %v3130_v62  ;;  %v3403_v45 = vsel %vm3382_vm2, %v3364_v4, 0.0  ;;  %v3137_v54 = vadd.f32 %v7617_v12, %v3068_v14 }
 0x4d4   : > { %v3504_v1 = vrot.slane %v3403_v45, 2  ;;  %v3561_v52 = vrot.slane %v3403_v45, 4 }
 0x4d5   : > { %v3270_v41 = vmin.f32 %v3199_v30, 0.0  ;;  %vm3246_vm8 = vcmp.gt.f32.partialorder %v3199_v30, 0.0 }
 0x4d7   : > { %v5442_v22 = vpop.eup %5441  ;;  %v3302_v18 = vmul.f32 1.442695, %v3270_v41  ;;  %v7675_v7 = vpop.f32.mrf.mxu2 }
 0x4d8   : > { %v4879_v27 = vadd.f32 -1.0, %v5442_v22 }
 0x4d9   : > { %5443 = vpow2.f32 %v3302_v18 }
 0x4da   : > { %v3365_v16 = vsel %vm3245_vm6, %v3196_v43, %v4879_v27  ;;  %v3200_v40 = vpop.f32.mrf.mxu1 }
 0x4db   : > { %v3505_v57 = vrot.slane %v3365_v16, 2  ;;  %v3562_v44 = vrot.slane %v3365_v16, 4  ;;  %v4999_v48 = vpack.c.bf16 %v3365_v16, %v3364_v4  ;;  %v3201_v26 = vadd.f32 %v3200_v40, %v3132_v0 }
 0x4dc   : > { %v3140_v0 = vadd.f32 %v7628_v35, %v3071_v51 }
 0x4dd   : > { %v3271_v15 = vmin.f32 %v3201_v26, 0.0  ;;  %5000 = vmatmul.msk.bf16.gmra.mxu2 %vm7590_vm12, %v4999_v48  ;;  %v3506_v37 = vsel %vm1792_vm5, %v3504_v1, %v3505_v57  ;;  %v3563_v11 = vsel %vm3550_vm10, %v3561_v52, %v3562_v44  ;;  %vm3247_vm15 = vcmp.gt.f32.partialorder %v3201_v26, 0.0 }
 0x4df   : > { %v5444_v5 = vpop.eup %5443  ;;  %v3304_v23 = vmul.f32 1.442695, %v3271_v15  ;;  %v7683_v12 = vpop.f32.mrf.mxu2 }
 0x4e0   : > { %v4880_v50 = vadd.f32 -1.0, %v5444_v5 }
 0x4e1   : > { %5445 = vpow2.f32 %v3304_v23 }
 0x4e2   : > { %v3366_v8 = vsel %vm3246_vm8, %v3199_v30, %v4880_v50  ;;  %v3203_v43 = vpop.f32.mrf.mxu1 }
 0x4e3   : > { %v3405_v31 = vsel %vm3387_vm14, %v3366_v8, 0.0  ;;  %v3204_v46 = vadd.f32 %v3203_v43, %v3135_v3 }
 0x4e4   : > { %v3507_v38 = vrot.slane %v3405_v31, 2  ;;  %v3564_v58 = vrot.slane %v3405_v31, 4 }
 0x4e5   : > { %v3272_v32 = vmin.f32 %v3204_v46, 0.0  ;;  %vm3248_vm3 = vcmp.gt.f32.partialorder %v3204_v46, 0.0 }
 0x4e6   : > { %v3508_v6 = vsel %vm1792_vm5, %v3505_v57, %v3507_v38  ;;  %v3565_v59 = vsel %vm3550_vm10, %v3562_v44, %v3564_v58 }
 0x4e7   : > { %v5446_v28 = vpop.eup %5445  ;;  %v3306_v53 = vmul.f32 1.442695, %v3272_v32  ;;  %v3614_v36 = vpack.c.bf16 %v3508_v6, %v3506_v37  ;;  %v3615_v55 = vpack.c.bf16 %v3565_v59, %v3563_v11  ;;  %v3073_v11 = vadd.f32 %v7546_v29, %v7455_v34  ;;  %v7694_v31 = vpop.f32.mrf.mxu2 }
 0x4e8   : > { %v4881_v62 = vadd.f32 -1.0, %v5446_v28 }
 0x4e9   : > { %5447 = vpow2.f32 %v3306_v53  ;;  %3845 = vmatmul.bf16.gmra.mxu3 %v3614_v36  ;;  %3894 = vmatmul.bf16.gmra.mxu0 %v3615_v55  ;;  %v3142_v23 = vadd.f32 %v7644_v21, %v3073_v11  ;;  %v3076_v21 = vadd.f32 %v7546_v29, %v7461_v42  ;;  %v3078_v42 = vadd.f32 %v7546_v29, %v7478_v49 }
 0x4ea   : > { %v3205_v30 = vpop.f32.mrf.mxu1  ;;  %v3367_v41 = vsel %vm3247_vm15, %v3201_v26, %v4881_v62 }
 0x4eb   : > { %v3206_v4 = vadd.f32 %v3205_v30, %v3137_v54  ;;  %v3406_v45 = vsel %vm3382_vm2, %v3367_v41, 0.0  ;;  %v3145_v36 = vadd.f32 %v7653_v19, %v3076_v21  ;;  %v3147_v19 = vadd.f32 %v7664_v33, %v3078_v42 }
 0x4ec   : > { %v3509_v1 = vrot.slane %v3406_v45, 2  ;;  %v3566_v52 = vrot.slane %v3406_v45, 4  ;;  %v3081_v33 = vadd.f32 %v7546_v29, %v7486_v63 }
 0x4ed   : > { %v3273_v22 = vmin.f32 %v3206_v4, 0.0  ;;  %vm3249_vm0 = vcmp.gt.f32.partialorder %v3206_v4, 0.0 }
 0x4ef   : > { %v5448_v24 = vpop.eup %5447  ;;  %v3308_v18 = vmul.f32 1.442695, %v3273_v22 }
 0x4f0   : > { %v4882_v27 = vadd.f32 -1.0, %v5448_v24 }
 0x4f1   : > { %5449 = vpow2.f32 %v3308_v18 }
 0x4f2   : > { %v3368_v16 = vsel %vm3248_vm3, %v3204_v46, %v4882_v27  ;;  %v3208_v40 = vpop.f32.mrf.mxu1 }
 0x4f3   : > { %v3510_v57 = vrot.slane %v3368_v16, 2  ;;  %v3567_v44 = vrot.slane %v3368_v16, 4  ;;  %v5002_v48 = vpack.c.bf16 %v3368_v16, %v3367_v41  ;;  %v3209_v26 = vadd.f32 %v3208_v40, %v3140_v0 }
 0x4f5   : > { %v3274_v17 = vmin.f32 %v3209_v26, 0.0  ;;  %5003 = vmatmul.msk.bf16.gmra.mxu2 %vm7590_vm12, %v5002_v48  ;;  %v3511_v15 = vsel %vm1792_vm5, %v3509_v1, %v3510_v57  ;;  %v3568_v35 = vsel %vm3550_vm10, %v3566_v52, %v3567_v44  ;;  %vm3250_vm1 = vcmp.gt.f32.partialorder %v3209_v26, 0.0 }
 0x4f7   : > { %v5450_v37 = vpop.eup %5449  ;;  %v3310_v5 = vmul.f32 1.442695, %v3274_v17 }
 0x4f8   : > { %v4883_v25 = vadd.f32 -1.0, %v5450_v37 }
 0x4f9   : > { %5451 = vpow2.f32 %v3310_v5 }
 0x4fa   : > { %v3369_v50 = vsel %vm3249_vm0, %v3206_v4, %v4883_v25  ;;  %v3210_v3 = vpop.f32.mrf.mxu1  ;;  %v7701_v4 = vpop.f32.mrf.mxu2 }
 0x4fb   : > { %v3408_v8 = vsel %vm3387_vm14, %v3369_v50, 0.0  ;;  %v3211_v43 = vadd.f32 %v3210_v3, %v3142_v23 }
 0x4fc   : > { %v3512_v46 = vrot.slane %v3408_v8, 2  ;;  %v3569_v38 = vrot.slane %v3408_v8, 4 }
 0x4fd   : > { %v3275_v58 = vmin.f32 %v3211_v43, 0.0  ;;  %vm3251_vm13 = vcmp.gt.f32.partialorder %v3211_v43, 0.0 }
 0x4fe   : > { %v3513_v32 = vsel %vm1792_vm5, %v3510_v57, %v3512_v46  ;;  %v3570_v34 = vsel %vm3550_vm10, %v3567_v44, %v3569_v38  ;;  %v3083_v46 = vadd.f32 %v7546_v29, %v7498_v20  ;;  %v3086_v20 = vadd.f32 %v7546_v29, %v7502_v2 }
 0x4ff   : > { %v5452_v6 = vpop.eup %5451  ;;  %v3312_v59 = vmul.f32 1.442695, %v3275_v58  ;;  %v3617_v28 = vpack.c.bf16 %v3513_v32, %v3511_v15  ;;  %v3618_v14 = vpack.c.bf16 %v3570_v34, %v3568_v35  ;;  %v3150_v35 = vadd.f32 %v7675_v7, %v3081_v33 }
 0x500   : > { %v4884_v53 = vadd.f32 -1.0, %v5452_v6  ;;  %v3152_v34 = vadd.f32 %v7683_v12, %v3083_v46 }
 0x501   : > { %5453 = vpow2.f32 %v3312_v59  ;;  %3850 = vmatmul.bf16.gmra.mxu3 %v3617_v28  ;;  %3899 = vmatmul.bf16.gmra.mxu0 %v3618_v14 }
 0x502   : > { %v3213_v55 = vpop.f32.mrf.mxu1  ;;  %v3370_v54 = vsel %vm3250_vm1, %v3209_v26, %v4884_v53  ;;  %v7714_v17 = vpop.f32.mrf.mxu2 }
 0x503   : > { %v3214_v62 = vadd.f32 %v3213_v55, %v3145_v36  ;;  %v3409_v22 = vsel %vm3382_vm2, %v3370_v54, 0.0 }
 0x504   : > { %v3514_v45 = vrot.slane %v3409_v22, 2  ;;  %v3571_v18 = vrot.slane %v3409_v22, 4 }
 0x505   : > { %v3276_v30 = vmin.f32 %v3214_v62, 0.0  ;;  %vm3252_vm11 = vcmp.gt.f32.partialorder %v3214_v62, 0.0 }
 0x507   : > { %v5454_v41 = vpop.eup %5453  ;;  %v3314_v24 = vmul.f32 1.442695, %v3276_v30  ;;  %v3155_v30 = vadd.f32 %v7694_v31, %v3086_v20 }
 0x508   : > { %v4885_v51 = vadd.f32 -1.0, %v5454_v41  ;;  %v5512_v41 = vld [vmem:[%s6015_s23 + $0x68] sm:$0xff] }
 0x509   : > { %5455 = vpow2.f32 %v3314_v24  ;;  %v3991_v42 = vrot.slane %v5512_v41, 3 }
 0x50a   : > { %v3371_v27 = vsel %vm3251_vm13, %v3211_v43, %v4885_v51  ;;  %v3215_v0 = vpop.f32.mrf.mxu1  ;;  %v7724_v6 = vpop.f32.mrf.mxu2 }
 0x50b   : > { %v3515_v1 = vrot.slane %v3371_v27, 2  ;;  %v3572_v52 = vrot.slane %v3371_v27, 4  ;;  %v5005_v16 = vpack.c.bf16 %v3371_v27, %v3370_v54  ;;  %v3216_v40 = vadd.f32 %v3215_v0, %v3147_v19 }
 0x50d   : > { %v3277_v57 = vmin.f32 %v3216_v40, 0.0  ;;  %5006 = vmatmul.msk.bf16.gmra.mxu2 %vm7590_vm12, %v5005_v16  ;;  %v3516_v49 = vsel %vm1792_vm5, %v3514_v45, %v3515_v1  ;;  %v3573_v44 = vsel %vm3550_vm10, %v3571_v18, %v3572_v52  ;;  %vm3253_vm4 = vcmp.gt.f32.partialorder %v3216_v40, 0.0 }
 0x50f   : > { %v5456_v48 = vpop.eup %5455  ;;  %v3316_v26 = vmul.f32 1.442695, %v3277_v57  ;;  %v3088_v57 = vadd.f32 %v7546_v29, %v7515_v61 }
 0x510   : > { %v4886_v15 = vadd.f32 -1.0, %v5456_v48  ;;  %v5513_v48 = vld [vmem:[%s6015_s23 + $0x70] sm:$0xff] }
 0x511   : > { %5457 = vpow2.f32 %v3316_v26  ;;  %v3993_v33 = vrot.slane %v5513_v48, 3  ;;  %v3157_v26 = vadd.f32 %v7701_v4, %v3088_v57 }
 0x512   : > { %v3372_v37 = vsel %vm3252_vm11, %v3214_v62, %v4886_v15  ;;  %v3218_v11 = vpop.f32.mrf.mxu1  ;;  %v5511_v62 = vld [vmem:[%s6015_s23 + $0x60] sm:$0xff]  ;;  %v7733_v0 = vpop.f32.mrf.mxu2 }
 0x513   : > { %v3411_v5 = vsel %vm3387_vm14, %v3372_v37, 0.0  ;;  %v3219_v25 = vadd.f32 %v3218_v11, %v3150_v35  ;;  %v3990_v54 = vrot.slane %v5511_v62, 3 }
 0x514   : > { %v3517_v23 = vrot.slane %v3411_v5, 2  ;;  %v3574_v50 = vrot.slane %v3411_v5, 4 }
 0x515   : > { %v3278_v3 = vmin.f32 %v3219_v25, 0.0  ;;  %vm3254_vm7 = vcmp.gt.f32.partialorder %v3219_v25, 0.0  ;;  %v7740_v16 = vsel %vm3989_vm9, %v3990_v54, %v3991_v42  ;;  %v5515_v54 = vld [vmem:[%s6015_s23 + $0x88] sm:$0xff] }
 0x516   : > { %v3518_v8 = vsel %vm1792_vm5, %v3515_v1, %v3517_v23  ;;  %v3575_v63 = vsel %vm3550_vm10, %v3572_v52, %v3574_v50  ;;  %v7749_v50 = vsel %vm3989_vm9, %v3991_v42, %v3993_v33 }
 0x517   : > { %v5458_v43 = vpop.eup %5457  ;;  %v3318_v7 = vmul.f32 1.442695, %v3278_v3  ;;  %v3620_v38 = vpack.c.bf16 %v3518_v8, %v3516_v49  ;;  %v3621_v58 = vpack.c.bf16 %v3575_v63, %v3573_v44  ;;  %v3091_v63 = vadd.f32 %v7546_v29, %v7519_v9  ;;  %v7761_v9 = vld [vmem:[%s8162_s15] ss:$0 sm:$0xff]  ;;  %s4175_s15 = scalar_lea.sflag [#allocation4], %s6011_s29 }
 0x518   : > { %v4887_v32 = vadd.f32 -1.0, %v5458_v43 }
 0x519   : > { %5459 = vpow2.f32 %v3318_v7  ;;  %3855 = vmatmul.bf16.gmra.mxu3 %v3620_v38  ;;  %3904 = vmatmul.bf16.gmra.mxu0 %v3621_v58  ;;  %v3160_v58 = vadd.f32 %v7714_v17, %v3091_v63  ;;  %v3093_v17 = vadd.f32 %v7546_v29, %v7529_v13 }
 0x51a   : > { %v3220_v21 = vpop.f32.mrf.mxu1  ;;  %v3373_v28 = vsel %vm3253_vm4, %v3216_v40, %v4887_v32  ;;  %v7751_v61 = vpop.f32.mrf.mxu2 }
 0x51b   : > { %v3221_v59 = vadd.f32 %v3220_v21, %v3152_v34  ;;  %v3412_v36 = vsel %vm3382_vm2, %v3373_v28, 0.0  ;;  %v3162_v62 = vadd.f32 %v7724_v6, %v3093_v17  ;;  %v7774_v6 = vld [vmem:[%s8163_s16] ss:$0 sm:$0xff] }
 0x51c   : > { %v3519_v22 = vrot.slane %v3412_v36, 2  ;;  %v3576_v24 = vrot.slane %v3412_v36, 4 }
 0x51d   : > { %v3279_v14 = vmin.f32 %v3221_v59, 0.0  ;;  %vm3255_vm6 = vcmp.gt.f32.partialorder %v3221_v59, 0.0 }
 0x51f   : > { %v5460_v53 = vpop.eup %5459  ;;  %v3320_v55 = vmul.f32 1.442695, %v3279_v14 }
 0x520   : > { %v4888_v12 = vadd.f32 -1.0, %v5460_v53 }
 0x521   : > { %5461 = vpow2.f32 %v3320_v55  ;;  %v5514_v55 = vld [vmem:[%s6015_s23 + $0x80] sm:$0xff] }
 0x522   : > { %v3374_v51 = vsel %vm3254_vm7, %v3219_v25, %v4888_v12  ;;  %v3223_v19 = vpop.f32.mrf.mxu1  ;;  %v3995_v12 = vrot.slane %v5514_v55, 3 }
 0x523   : > { %v3520_v45 = vrot.slane %v3374_v51, 2  ;;  %v3577_v2 = vrot.slane %v3374_v51, 4  ;;  %v5008_v18 = vpack.c.bf16 %v3374_v51, %v3373_v28  ;;  %v3224_v27 = vadd.f32 %v3223_v19, %v3155_v30 }
 0x524   : > { %v3996_v30 = vrot.slane %v5515_v54, 3 }
 0x525   : > { %v3280_v1 = vmin.f32 %v3224_v27, 0.0  ;;  %5009 = vmatmul.msk.bf16.gmra.mxu2 %vm7590_vm12, %v5008_v18  ;;  %v3521_v31 = vsel %vm1792_vm5, %v3519_v22, %v3520_v45  ;;  %v3578_v52 = vsel %vm3550_vm10, %v3576_v24, %v3577_v2  ;;  %vm3256_vm8 = vcmp.gt.f32.partialorder %v3224_v27, 0.0 }
 0x526   : > { %v7781_v57 = vsel %vm3989_vm9, %v3995_v12, %v3996_v30 }
 0x527   : > { %v5462_v40 = vpop.eup %5461  ;;  %v3322_v49 = vmul.f32 1.442695, %v3280_v1 }
 0x528   : > { %v4889_v44 = vadd.f32 -1.0, %v5462_v40 }
 0x529   : > { %5463 = vpow2.f32 %v3322_v49 }
 0x52a   : > { %v3375_v15 = vsel %vm3255_vm6, %v3221_v59, %v4889_v44  ;;  %v3225_v35 = vpop.f32.mrf.mxu1  ;;  %v3096_v44 = vadd.f32 %v7546_v29, %v7531_v47 }
 0x52b   : > { %v3414_v37 = vsel %vm3387_vm14, %v3375_v15, 0.0  ;;  %v3226_v11 = vadd.f32 %v3225_v35, %v3157_v26  ;;  %v7788_v26 = vld [vmem:[%s8164_s13] ss:$0 sm:$0xff] }
 0x52c   : > { %v3522_v5 = vrot.slane %v3414_v37, 2  ;;  %v3579_v25 = vrot.slane %v3414_v37, 4  ;;  %v3165_v37 = vadd.f32 %v7733_v0, %v3096_v44 }
 0x52d   : > { %v3281_v23 = vmin.f32 %v3226_v11, 0.0  ;;  %vm3257_vm15 = vcmp.gt.f32.partialorder %v3226_v11, 0.0 }
 0x52e   : > { %v3523_v3 = vsel %vm1792_vm5, %v3520_v45, %v3522_v5  ;;  %v3580_v4 = vsel %vm3550_vm10, %v3577_v2, %v3579_v25  ;;  %v5516_v5 = vld [vmem:[%s6015_s23 + $0x90] sm:$0xff] }
 0x52f   : > { %v5464_v8 = vpop.eup %5463  ;;  %v3324_v43 = vmul.f32 1.442695, %v3281_v23  ;;  %v3623_v46 = vpack.c.bf16 %v3523_v3, %v3521_v31  ;;  %v3624_v7 = vpack.c.bf16 %v3580_v4, %v3578_v52  ;;  %v3998_v25 = vrot.slane %v5516_v5, 3 }
 0x530   : > { %v4890_v38 = vadd.f32 -1.0, %v5464_v8  ;;  %v3787_v28 = vpop.f32.mrf.mxu2 }
 0x531   : > { %5465 = vpow2.f32 %v3324_v43  ;;  %3860 = vmatmul.bf16.gmra.mxu3 %v3623_v46  ;;  %3909 = vmatmul.bf16.gmra.mxu0 %v3624_v7  ;;  %v3788_v22 = vadd.f32 %v7761_v9, %v3787_v28 }
 0x532   : > { %v3228_v32 = vpop.f32.mrf.mxu1  ;;  %v3376_v21 = vsel %vm3256_vm8, %v3224_v27, %v4890_v38 }
 0x533   : > { %v3229_v34 = vadd.f32 %v3228_v32, %v3160_v58  ;;  %v3415_v53 = vsel %vm3382_vm2, %v3376_v21, 0.0 }
 0x534   : > { %v3524_v41 = vrot.slane %v3415_v53, 2  ;;  %v3581_v2 = vrot.slane %v3415_v53, 4 }
 0x535   : > { %v3282_v59 = vmin.f32 %v3229_v34, 0.0  ;;  %vm3258_vm3 = vcmp.gt.f32.partialorder %v3229_v34, 0.0 }
 0x536   : > { %v3885_v18 = vpop.f32.mrf.mxu0 }
 0x537   : > { %v5466_v14 = vpop.eup %5465  ;;  %v3326_v20 = vmul.f32 1.442695, %v3282_v59  ;;  %v7801_v59 = vsel %vm3989_vm9, %v3996_v30, %v3998_v25 }
 0x538   : > { %v4891_v36 = vadd.f32 -1.0, %v5466_v14  ;;  %v3789_v35 = vpop.f32.mrf.mxu2  ;;  %v3098_v14 = vadd.f32 %v7546_v29, %v7541_v39 }
 0x539   : > { %5467 = vpow2.f32 %v3326_v20  ;;  %v3790_v4 = vadd.f32 %v7761_v9, %v3789_v35 }
 0x53a   : > { %v3377_v42 = vsel %vm3257_vm15, %v3226_v11, %v4891_v36  ;;  %v3230_v24 = vpop.f32.mrf.mxu1  ;;  %v3167_v12 = vadd.f32 %v7751_v61, %v3098_v14 }
 0x53b   : > { %v3525_v51 = vrot.slane %v3377_v42, 2  ;;  %v3582_v13 = vrot.slane %v3377_v42, 4  ;;  %v5011_v19 = vpack.c.bf16 %v3377_v42, %v3376_v21  ;;  %v3231_v45 = vadd.f32 %v3230_v24, %v3162_v62 }
 0x53c   : > { %v3836_v27 = vpop.f32.mrf.mxu3 }
 0x53d   : > { %v3283_v1 = vmin.f32 %v3231_v45, 0.0  ;;  %v3837_v31 = vadd.f32 %v3836_v27, %v3788_v22  ;;  %5012 = vmatmul.msk.bf16.gmra.mxu2 %vm7590_vm12, %v5011_v19  ;;  %v3526_v52 = vsel %vm1792_vm5, %v3524_v41, %v3525_v51  ;;  %v3583_v40 = vsel %vm3550_vm10, %v3581_v2, %v3582_v13  ;;  %v5517_v2 = vld [vmem:[%s6015_s23 + $0xa0] sm:$0xff]  ;;  %v5518_v27 = vld [vmem:[%s6015_s23 + $0xa8] sm:$0xff] }
 0x53e   : > { %v3887_v32 = vpop.f32.mrf.mxu0  ;;  %vm3259_vm0 = vcmp.gt.f32.partialorder %v3231_v45, 0.0 }
 0x53f   : > { %v5468_v49 = vpop.eup %5467  ;;  %v3328_v48 = vmul.f32 1.442695, %v3283_v1  ;;  %v3886_v33 = vadd.f32 %v3885_v18, %v3837_v31  ;;  %v4000_v18 = vrot.slane %v5517_v2, 3  ;;  %v4001_v1 = vrot.slane %v5518_v27, 3 }
 0x540   : > { %v4892_v15 = vadd.f32 -1.0, %v5468_v49 }
 0x541   : > { %5469 = vpow2.f32 %v3328_v48  ;;  %v3929_v11 = vmul.f32 %v7774_v6, %v3886_v33 }
 0x542   : > { %v3378_v23 = vsel %vm3258_vm3, %v3229_v34, %v4892_v15  ;;  %v3233_v3 = vpop.f32.mrf.mxu1 }
 0x543   : > { %v3417_v47 = vsel %vm3387_vm14, %v3378_v23, 0.0  ;;  %v3949_v8 = vadd.f32 %v7788_v26, %v3929_v11  ;;  %v3234_v63 = vadd.f32 %v3233_v3, %v3165_v37  ;;  %v7823_v3 = vsel %vm3989_vm9, %v4000_v18, %v4001_v1 }
 0x544   : > { %v3527_v43 = vrot.slane %v3417_v47, 2  ;;  %v3584_v46 = vrot.slane %v3417_v47, 4  ;;  %v3838_v7 = vpop.f32.mrf.mxu3 }
 0x545   : > { %v4046_v0 = vadd.f32 %v7740_v16, %v3949_v8  ;;  %v3284_v38 = vmin.f32 %v3234_v63, 0.0  ;;  %v3839_v58 = vadd.f32 %v3838_v7, %v3790_v4  ;;  %vm3260_vm1 = vcmp.gt.f32.partialorder %v3234_v63, 0.0 }
 0x546   : > { %v3528_v21 = vsel %vm1792_vm5, %v3525_v51, %v3527_v43  ;;  %v3585_v34 = vsel %vm3550_vm10, %v3582_v13, %v3584_v46  ;;  %v5519_v46 = vld [vmem:[%s6015_s23 + $0xb0] sm:$0xff] }
 0x547   : > { %v5470_v28 = vpop.eup %5469  ;;  %v4078_v17 = vmin.f32 %v4046_v0, 0.0  ;;  %v3330_v53 = vmul.f32 1.442695, %v3284_v38  ;;  %v3888_v20 = vadd.f32 %v3887_v32, %v3839_v58  ;;  %v3626_v55 = vpack.c.bf16 %v3528_v21, %v3526_v52 }
 0x548   : > { %v4893_v36 = vadd.f32 -1.0, %v5470_v28  ;;  %v3627_v16 = vpack.c.bf16 %v3585_v34, %v3583_v40  ;;  %v3792_v61 = vpop.f32.mrf.mxu2  ;;  %vm4062_vm13 = vcmp.gt.f32.partialorder %v4046_v0, 0.0  ;;  %v4003_v7 = vrot.slane %v5519_v46, 3 }
 0x549   : > { %v4094_v62 = vmul.f32 1.442695, %v4078_v17  ;;  %5471 = vpow2.f32 %v3330_v53  ;;  %v3930_v54 = vmul.f32 %v7774_v6, %v3888_v20  ;;  %3865 = vmatmul.bf16.gmra.mxu3 %v3626_v55 }
 0x54a   : > { %3914 = vmatmul.bf16.gmra.mxu0 %v3627_v16  ;;  %v3235_v30 = vpop.f32.mrf.mxu1  ;;  %v3379_v41 = vsel %vm3259_vm0, %v3231_v45, %v4893_v36  ;;  %v4004_v36 = vsel %vm3989_vm9, %v4001_v1, %v4003_v7 }
 0x54b   : > { %5473 = vpow2.f32 %v4094_v62  ;;  %v3950_v39 = vadd.f32 %v7788_v26, %v3930_v54  ;;  %v3236_v29 = vadd.f32 %v3235_v30, %v3167_v12  ;;  %v3418_v51 = vsel %vm3382_vm2, %v3379_v41, 0.0 }
 0x54c   : > { %v3529_v40 = vrot.slane %v3418_v51, 2  ;;  %v3586_v49 = vrot.slane %v3418_v51, 4 }
 0x54d   : > { %v4047_v42 = vadd.f32 %v7749_v50, %v3950_v39  ;;  %v3285_v22 = vmin.f32 %v3236_v29, 0.0  ;;  %v3793_v50 = vadd.f32 %v7761_v9, %v3792_v61  ;;  %vm3261_vm2 = vcmp.gt.f32.partialorder %v3236_v29, 0.0 }
 0x54e   : > { %v3890_v37 = vpop.f32.mrf.mxu0 }
 0x54f   : > { %v5472_v24 = vpop.eup %5471  ;;  %v4079_v13 = vmin.f32 %v4047_v42, 0.0  ;;  %v3332_v19 = vmul.f32 1.442695, %v3285_v22 }
 0x550   : > { %v4894_v31 = vadd.f32 -1.0, %v5472_v24  ;;  %v5520_v24 = vld [vmem:[%s6015_s23 + $0xc0] sm:$0xff] }
 0x551   : > { %v5474_v52 = vpop.eup %5473  ;;  %v4096_v45 = vmul.f32 1.442695, %v4079_v13  ;;  %5475 = vpow2.f32 %v3332_v19  ;;  %v4005_v51 = vrot.slane %v5520_v24, 3  ;;  %v5521_v13 = vld [vmem:[%s6015_s23 + $0xc8] sm:$0xff] }
 0x552   : > { %v5016_v44 = vadd.f32 -1.0, %v5474_v52  ;;  %v3380_v60 = vsel %vm3260_vm1, %v3234_v63, %v4894_v31  ;;  %v3794_v63 = vpop.f32.mrf.mxu2  ;;  %v4006_v19 = vrot.slane %v5521_v13, 3 }
 0x553   : > { %v3530_v48 = vrot.slane %v3380_v60, 2  ;;  %v3587_v33 = vrot.slane %v3380_v60, 4  ;;  %v5014_v15 = vpack.c.bf16 %v3380_v60, %v3379_v41  ;;  %5477 = vpow2.f32 %v4096_v45 }
 0x554   : > { %v4142_v35 = vsel %vm4062_vm13, %v4046_v0, %v5016_v44  ;;  %v3841_v11 = vpop.f32.mrf.mxu3  ;;  %v3795_v32 = vadd.f32 %v7761_v9, %v3794_v63  ;;  %v4007_v45 = vsel %vm3989_vm9, %v4005_v51, %v4006_v19  ;;  %v5522_v44 = vld [vmem:[%s6015_s23 + $0xd0] sm:$0xff] }
 0x555   : > { %4158 = vst [vmem:[%s7815_s24] sm:$0xff] %v4142_v35  ;;  %v3842_v5 = vadd.f32 %v3841_v11, %v3793_v50  ;;  %5015 = vmatmul.msk.bf16.gmra.mxu2 %vm7590_vm12, %v5014_v15  ;;  %v3531_v25 = vsel %vm1792_vm5, %v3529_v40, %v3530_v48  ;;  %v3588_v23 = vsel %vm3550_vm10, %v3586_v49, %v3587_v33  ;;  %vm4063_vm12 = vcmp.gt.f32.partialorder %v4047_v42, 0.0 }
 0x556   : > { %v3892_v55 = vpop.f32.mrf.mxu0  ;;  %v4008_v60 = vrot.slane %v5522_v44, 3 }
 0x557   : > { %v5476_v47 = vpop.eup %5475  ;;  %v3891_v4 = vadd.f32 %v3890_v37, %v3842_v5 }
 0x558   : > { %v4895_v8 = vadd.f32 -1.0, %v5476_v47 }
 0x559   : > { %v5478_v43 = vpop.eup %5477  ;;  %v3931_v0 = vmul.f32 %v7774_v6, %v3891_v4 }
 0x55a   : > { %v5017_v56 = vadd.f32 -1.0, %v5478_v43  ;;  %v3381_v38 = vsel %vm3261_vm2, %v3236_v29, %v4895_v8 }
 0x55b   : > { %v3420_v58 = vsel %vm3387_vm14, %v3381_v38, 0.0  ;;  %v3951_v21 = vadd.f32 %v7788_v26, %v3931_v0 }
 0x55c   : > { %v4143_v34 = vsel %vm4063_vm12, %v4047_v42, %v5017_v56  ;;  %v3532_v28 = vrot.slane %v3420_v58, 2  ;;  %v3589_v14 = vrot.slane %v3420_v58, 4  ;;  %v3843_v17 = vpop.f32.mrf.mxu3  ;;  %v5523_v58 = vld [vmem:[%s6015_s23 + $0xe0] sm:$0xff] }
 0x55d   : > { %4159 = vst [vmem:[%s7815_s24 + $0x8] sm:$0xff] %v4143_v34  ;;  %v4048_v53 = vadd.f32 %v7781_v57, %v3951_v21  ;;  %v3844_v20 = vadd.f32 %v3843_v17, %v3795_v32  ;;  %v5524_v32 = vld [vmem:[%s6015_s23 + $0xe8] sm:$0xff] }
 0x55e   : > { %v3533_v16 = vsel %vm1792_vm5, %v3530_v48, %v3532_v28  ;;  %v3590_v10 = vsel %vm3550_vm10, %v3587_v33, %v3589_v14  ;;  %v4011_v21 = vrot.slane %v5524_v32, 3 }
 0x55f   : > { %v4080_v12 = vmin.f32 %v4048_v53, 0.0  ;;  %v3893_v62 = vadd.f32 %v3892_v55, %v3844_v20  ;;  %v3629_v54 = vpack.c.bf16 %v3533_v16, %v3531_v25  ;;  %v3630_v30 = vpack.c.bf16 %v3590_v10, %v3588_v23 }
 0x560   : > { %v3797_v42 = vpop.f32.mrf.mxu2  ;;  %vm4064_vm5 = vcmp.gt.f32.partialorder %v4048_v53, 0.0  ;;  %v4009_v23 = vsel %vm3989_vm9, %v4006_v19, %v4008_v60 }
 0x561   : > { %v4098_v39 = vmul.f32 1.442695, %v4080_v12  ;;  %v3932_v29 = vmul.f32 %v7774_v6, %v3893_v62  ;;  %3870 = vmatmul.bf16.gmra.mxu3 %v3629_v54  ;;  %3919 = vmatmul.bf16.gmra.mxu0 %v3630_v30  ;;  %v3798_v27 = vadd.f32 %v7761_v9, %v3797_v42  ;;  %v5525_v62 = vld [vmem:[%s6015_s23 + $0xf0] sm:$0xff] }
 0x562   : > { %v4013_v54 = vrot.slane %v5525_v62, 3 }
 0x563   : > { %5479 = vpow2.f32 %v4098_v39  ;;  %v3952_v57 = vadd.f32 %v7788_v26, %v3932_v29 }
 0x564   : > { %v4014_v24 = vsel %vm3989_vm9, %v4011_v21, %v4013_v54 }
 0x565   : > { %v4049_v41 = vadd.f32 %v7801_v59, %v3952_v57 }
 0x566   : > { %v3895_v31 = vpop.f32.mrf.mxu0 }
 0x567   : > { %v4081_v22 = vmin.f32 %v4049_v41, 0.0  ;;  %vm4065_vm10 = vcmp.gt.f32.partialorder %v4049_v41, 0.0 }
 0x568   : > { %v3799_v40 = vpop.f32.mrf.mxu2 }
 0x569   : > { %v5480_v61 = vpop.eup %5479  ;;  %v4100_v2 = vmul.f32 1.442695, %v4081_v22  ;;  %v3800_v15 = vadd.f32 %v7761_v9, %v3799_v40  ;;  %v5527_v40 = vld [vmem:[%s6015_s23 + $0x108] sm:$0xff] }
 0x56a   : > { %v5018_v18 = vadd.f32 -1.0, %v5480_v61 }
 0x56b   : > { %5481 = vpow2.f32 %v4100_v2 }
 0x56c   : > { %v4144_v1 = vsel %vm4064_vm5, %v4048_v53, %v5018_v18  ;;  %v3846_v52 = vpop.f32.mrf.mxu3 }
 0x56d   : > { %4160 = vst [vmem:[%s7815_s24 + $0x10] sm:$0xff] %v4144_v1  ;;  %v3847_v59 = vadd.f32 %v3846_v52, %v3798_v27 }
 0x56e   : > { %v3897_v47 = vpop.f32.mrf.mxu0 }
 0x56f   : > { %v3896_v50 = vadd.f32 %v3895_v31, %v3847_v59 }
 0x571   : > { %v5482_v49 = vpop.eup %5481  ;;  %v3933_v48 = vmul.f32 %v7774_v6, %v3896_v50  ;;  %v5526_v50 = vld [vmem:[%s6015_s23 + $0x100] sm:$0xff] }
 0x572   : > { %v5019_v33 = vadd.f32 -1.0, %v5482_v49  ;;  %v4016_v49 = vrot.slane %v5527_v40, 3 }
 0x573   : > { %v3953_v35 = vadd.f32 %v7788_v26, %v3933_v48 }
 0x574   : > { %v4145_v37 = vsel %vm4065_vm10, %v4049_v41, %v5019_v33  ;;  %v3848_v11 = vpop.f32.mrf.mxu3 }
 0x575   : > { %4161 = vst [vmem:[%s7815_s24 + $0x18] sm:$0xff] %v4145_v37  ;;  %v4050_v5 = vadd.f32 %v7823_v3, %v3953_v35  ;;  %v3849_v25 = vadd.f32 %v3848_v11, %v3800_v15  ;;  %v4010_v3 = vrot.slane %v5523_v58, 3 }
 0x577   : > { %v4082_v4 = vmin.f32 %v4050_v5, 0.0  ;;  %v3898_v8 = vadd.f32 %v3897_v47, %v3849_v25  ;;  %vm4066_vm14 = vcmp.gt.f32.partialorder %v4050_v5, 0.0  ;;  %v4012_v55 = vsel %vm3989_vm9, %v4010_v3, %v4011_v21  ;;  %v5528_v47 = vld [vmem:[%s6015_s23 + $0x110] sm:$0xff] }
 0x578   : > { %v3802_v0 = vpop.f32.mrf.mxu2 }
 0x579   : > { %v4102_v63 = vmul.f32 1.442695, %v4082_v4  ;;  %v3934_v43 = vmul.f32 %v7774_v6, %v3898_v8  ;;  %v3803_v14 = vadd.f32 %v7761_v9, %v3802_v0  ;;  %v4018_v4 = vrot.slane %v5528_v47, 3 }
 0x57b   : > { %5483 = vpow2.f32 %v4102_v63  ;;  %v3954_v46 = vadd.f32 %v7788_v26, %v3934_v43  ;;  %v4019_v58 = vsel %vm3989_vm9, %v4016_v49, %v4018_v4 }
 0x57d   : > { %v4051_v7 = vadd.f32 %v4004_v36, %v3954_v46 }
 0x57e   : > { %v3900_v53 = vpop.f32.mrf.mxu0 }
 0x57f   : > { %v4083_v56 = vmin.f32 %v4051_v7, 0.0  ;;  %vm4067_vm11 = vcmp.gt.f32.partialorder %v4051_v7, 0.0 }
 0x580   : > { %v3804_v10 = vpop.f32.mrf.mxu2 }
 0x581   : > { %v5484_v38 = vpop.eup %5483  ;;  %v4104_v34 = vmul.f32 1.442695, %v4083_v56  ;;  %v3805_v29 = vadd.f32 %v7761_v9, %v3804_v10  ;;  %v5530_v10 = vld [vmem:[%s6015_s23 + $0x128] sm:$0xff] }
 0x582   : > { %v5020_v28 = vadd.f32 -1.0, %v5484_v38 }
 0x583   : > { %5485 = vpow2.f32 %v4104_v34 }
 0x584   : > { %v4146_v17 = vsel %vm4066_vm14, %v4050_v5, %v5020_v28  ;;  %v3851_v20 = vpop.f32.mrf.mxu3 }
 0x585   : > { %4162 = vst [vmem:[%s7815_s24 + $0x20] sm:$0xff] %v4146_v17  ;;  %v3852_v36 = vadd.f32 %v3851_v20, %v3803_v14 }
 0x586   : > { %v3902_v51 = vpop.f32.mrf.mxu0 }
 0x587   : > { %v3901_v16 = vadd.f32 %v3900_v53, %v3852_v36 }
 0x589   : > { %v5486_v12 = vpop.eup %5485  ;;  %v3935_v30 = vmul.f32 %v7774_v6, %v3901_v16  ;;  %v5529_v16 = vld [vmem:[%s6015_s23 + $0x120] sm:$0xff] }
 0x58a   : > { %v5021_v39 = vadd.f32 -1.0, %v5486_v12  ;;  %v4021_v12 = vrot.slane %v5530_v10, 3 }
 0x58b   : > { %v3955_v57 = vadd.f32 %v7788_v26, %v3935_v30 }
 0x58c   : > { %v4147_v41 = vsel %vm4067_vm11, %v4051_v7, %v5021_v39  ;;  %v3853_v42 = vpop.f32.mrf.mxu3 }
 0x58d   : > { %4163 = vst [vmem:[%s7815_s24 + $0x28] sm:$0xff] %v4147_v41  ;;  %v4052_v22 = vadd.f32 %v4007_v45, %v3955_v57  ;;  %v3854_v61 = vadd.f32 %v3853_v42, %v3805_v29  ;;  %v4015_v45 = vrot.slane %v5526_v50, 3 }
 0x58f   : > { %v4084_v13 = vmin.f32 %v4052_v22, 0.0  ;;  %v3903_v19 = vadd.f32 %v3902_v51, %v3854_v61  ;;  %vm4068_vm4 = vcmp.gt.f32.partialorder %v4052_v22, 0.0  ;;  %v4017_v11 = vsel %vm3989_vm9, %v4015_v45, %v4016_v49  ;;  %v5531_v51 = vld [vmem:[%s6015_s23 + $0x130] sm:$0xff] }
 0x590   : > { %v3807_v31 = vpop.f32.mrf.mxu2 }
 0x591   : > { %v4106_v2 = vmul.f32 1.442695, %v4084_v13  ;;  %v3936_v18 = vmul.f32 %v7774_v6, %v3903_v19  ;;  %v3808_v48 = vadd.f32 %v7761_v9, %v3807_v31  ;;  %v4023_v13 = vrot.slane %v5531_v51, 3 }
 0x593   : > { %5487 = vpow2.f32 %v4106_v2  ;;  %v3956_v27 = vadd.f32 %v7788_v26, %v3936_v18  ;;  %v4024_v50 = vsel %vm3989_vm9, %v4021_v12, %v4023_v13 }
 0x595   : > { %v4053_v1 = vadd.f32 %v4009_v23, %v3956_v27 }
 0x596   : > { %v3905_v15 = vpop.f32.mrf.mxu0 }
 0x597   : > { %v4085_v52 = vmin.f32 %v4053_v1, 0.0  ;;  %vm4069_vm7 = vcmp.gt.f32.partialorder %v4053_v1, 0.0 }
 0x598   : > { %v3809_v25 = vpop.f32.mrf.mxu2 }
 0x599   : > { %v5488_v59 = vpop.eup %5487  ;;  %v4108_v44 = vmul.f32 1.442695, %v4085_v52  ;;  %v3810_v43 = vadd.f32 %v7761_v9, %v3809_v25  ;;  %v5533_v25 = vld [vmem:[%s6015_s23 + $0x148] sm:$0xff] }
 0x59a   : > { %v5022_v60 = vadd.f32 -1.0, %v5488_v59 }
 0x59b   : > { %5489 = vpow2.f32 %v4108_v44 }
 0x59c   : > { %v4148_v33 = vsel %vm4068_vm4, %v4052_v22, %v5022_v60  ;;  %v3856_v35 = vpop.f32.mrf.mxu3 }
 0x59d   : > { %4164 = vst [vmem:[%s7815_s24 + $0x30] sm:$0xff] %v4148_v33  ;;  %v3857_v37 = vadd.f32 %v3856_v35, %v3808_v48 }
 0x59e   : > { %v3907_v3 = vpop.f32.mrf.mxu0 }
 0x59f   : > { %v3906_v5 = vadd.f32 %v3905_v15, %v3857_v37 }
 0x5a1   : > { %v5490_v23 = vpop.eup %5489  ;;  %v3937_v8 = vmul.f32 %v7774_v6, %v3906_v5  ;;  %v5532_v5 = vld [vmem:[%s6015_s23 + $0x140] sm:$0xff] }
 0x5a2   : > { %v5023_v63 = vadd.f32 -1.0, %v5490_v23  ;;  %v4026_v23 = vrot.slane %v5533_v25, 3 }
 0x5a3   : > { %v3957_v46 = vadd.f32 %v7788_v26, %v3937_v8 }
 0x5a4   : > { %v4149_v7 = vsel %vm4069_vm7, %v4053_v1, %v5023_v63  ;;  %v3858_v0 = vpop.f32.mrf.mxu3 }
 0x5a5   : > { %4165 = vst [vmem:[%s7815_s24 + $0x38] sm:$0xff] %v4149_v7  ;;  %v4054_v56 = vadd.f32 %v4012_v55, %v3957_v46  ;;  %v3859_v38 = vadd.f32 %v3858_v0, %v3810_v43  ;;  %v4020_v55 = vrot.slane %v5529_v16, 3 }
 0x5a7   : > { %v4086_v32 = vmin.f32 %v4054_v56, 0.0  ;;  %v3908_v21 = vadd.f32 %v3907_v3, %v3859_v38  ;;  %vm4070_vm6 = vcmp.gt.f32.partialorder %v4054_v56, 0.0  ;;  %v4022_v42 = vsel %vm3989_vm9, %v4020_v55, %v4021_v12 }
 0x5a8   : > { %v3812_v53 = vpop.f32.mrf.mxu2 }
 0x5a9   : > { %v4110_v34 = vmul.f32 1.442695, %v4086_v32  ;;  %v3938_v28 = vmul.f32 %v7774_v6, %v3908_v21  ;;  %v3813_v30 = vadd.f32 %v7761_v9, %v3812_v53 }
 0x5ab   : > { %5491 = vpow2.f32 %v4110_v34  ;;  %v3958_v14 = vadd.f32 %v7788_v26, %v3938_v28 }
 0x5ad   : > { %v4055_v17 = vadd.f32 %v4014_v24, %v3958_v14 }
 0x5ae   : > { %v3910_v29 = vpop.f32.mrf.mxu0 }
 0x5af   : > { %v4087_v20 = vmin.f32 %v4055_v17, 0.0  ;;  %vm4071_vm8 = vcmp.gt.f32.partialorder %v4055_v17, 0.0 }
 0x5b0   : > { %v3814_v61 = vpop.f32.mrf.mxu2 }
 0x5b1   : > { %v5492_v36 = vpop.eup %5491  ;;  %v4112_v62 = vmul.f32 1.442695, %v4087_v20  ;;  %v3815_v18 = vadd.f32 %v7761_v9, %v3814_v61 }
 0x5b2   : > { %v5024_v54 = vadd.f32 -1.0, %v5492_v36 }
 0x5b3   : > { %5493 = vpow2.f32 %v4112_v62 }
 0x5b4   : > { %v4150_v39 = vsel %vm4070_vm6, %v4054_v56, %v5024_v54  ;;  %v3861_v57 = vpop.f32.mrf.mxu3 }
 0x5b5   : > { %4166 = vst [vmem:[%s7815_s24 + $0x40] sm:$0xff] %v4150_v39  ;;  %v3862_v41 = vadd.f32 %v3861_v57, %v3813_v30 }
 0x5b6   : > { %v3912_v45 = vpop.f32.mrf.mxu0 }
 0x5b7   : > { %v3911_v22 = vadd.f32 %v3910_v29, %v3862_v41 }
 0x5b9   : > { %v5494_v24 = vpop.eup %5493  ;;  %v3939_v19 = vmul.f32 %v7774_v6, %v3911_v22 }
 0x5ba   : > { %v5025_v2 = vadd.f32 -1.0, %v5494_v24 }
 0x5bb   : > { %v3959_v27 = vadd.f32 %v7788_v26, %v3939_v19 }
 0x5bc   : > { %v4151_v1 = vsel %vm4071_vm8, %v4055_v17, %v5025_v2  ;;  %v3863_v31 = vpop.f32.mrf.mxu3 }
 0x5bd   : > { %4167 = vst [vmem:[%s7815_s24 + $0x48] sm:$0xff] %v4151_v1  ;;  %v4056_v52 = vadd.f32 %v4017_v11, %v3959_v27  ;;  %v3864_v59 = vadd.f32 %v3863_v31, %v3815_v18  ;;  %v4025_v11 = vrot.slane %v5532_v5, 3 }
 0x5bf   : > { %v4088_v40 = vmin.f32 %v4056_v52, 0.0  ;;  %v3913_v49 = vadd.f32 %v3912_v45, %v3864_v59  ;;  %vm4072_vm15 = vcmp.gt.f32.partialorder %v4056_v52, 0.0  ;;  %v4027_v7 = vsel %vm3989_vm9, %v4025_v11, %v4026_v23 }
 0x5c0   : > { %v3817_v35 = vpop.f32.mrf.mxu2 }
 0x5c1   : > { %v4114_v44 = vmul.f32 1.442695, %v4088_v40  ;;  %v3940_v60 = vmul.f32 %v7774_v6, %v3913_v49  ;;  %v3818_v63 = vadd.f32 %v7761_v9, %v3817_v35 }
 0x5c3   : > { %5495 = vpow2.f32 %v4114_v44  ;;  %v3960_v48 = vadd.f32 %v7788_v26, %v3940_v60 }
 0x5c5   : > { %v4057_v33 = vadd.f32 %v4019_v58, %v3960_v48  ;;  %v5534_v58 = vld [vmem:[%s6015_s23 + $0x150] sm:$0xff]  ;;  %s8165_s23 = sld [smem:[#allocation18_spill]] }
 0x5c6   : > { %v4028_v3 = vrot.slane %v5534_v58, 3 }
 0x5c7   : > { %v4089_v15 = vmin.f32 %v4057_v33, 0.0  ;;  %v3915_v43 = vpop.f32.mrf.mxu0  ;;  %vm4073_vm3 = vcmp.gt.f32.partialorder %v4057_v33, 0.0 }
 0x5c8   : > { %v3819_v32 = vpop.f32.mrf.mxu2  ;;  %v4029_v20 = vsel %vm3989_vm9, %v4026_v23, %v4028_v3 }
 0x5c9   : > { %v5496_v37 = vpop.eup %5495  ;;  %v4116_v47 = vmul.f32 1.442695, %v4089_v15  ;;  %v3820_v14 = vadd.f32 %v7761_v9, %v3819_v32 }
 0x5ca   : > { %v5026_v4 = vadd.f32 -1.0, %v5496_v37 }
 0x5cb   : > { %5497 = vpow2.f32 %v4116_v47  ;;  %s5035_s10 = sshll.u32 %s8165_s23, 5 }
 0x5cc   : > { %v4152_v8 = vsel %vm4072_vm15, %v4056_v52, %v5026_v4  ;;  %v3866_v46 = vpop.f32.mrf.mxu3  ;;  %s4187_s11 = sadd.s32 %s5135_s17, %s5035_s10 }
 0x5cd   : > { %4168 = vst [vmem:[%s7815_s24 + $0x50] sm:$0xff] %v4152_v8  ;;  %v3867_v0 = vadd.f32 %v3866_v46, %v3818_v63  ;;  %s5036_s8 = sshll.u32 %s4187_s11, 3 }
 0x5ce   : > { %s4189_s9 = scalar_lea.hbm %s8166_s3, %s5036_s8 }
 0x5cf   : > { %v3916_v56 = vadd.f32 %v3915_v43, %v3867_v0  ;;  %v3917_v55 = vpop.f32.mrf.mxu0  ;;  %s4192_s30 = sshll.u32 %s4189_s9, 4  ;;  %s4193_s30 = int_to_ptr.hbm [resolvable:$true] %s4192_s30 }
 0x5d0   : > { %s5699_s18 = sshra.s32 %s4193_s30, 4  ;;  %s5700_s18 = int_to_ptr.hbm [resolvable:$true] %s5699_s18 }
 0x5d1   : > { %v5498_v38 = vpop.eup %5497  ;;  %v3941_v34 = vmul.f32 %v7774_v6, %v3916_v56  ;;  %s5701_s20 = scalar_lea.hbm %s5700_s18, 128  ;;  %p5706_p8 = scmp.lt.s32.totalorder %s5700_s18, %s8166_s3 }
 0x5d2   : > { %v5027_v21 = vadd.f32 -1.0, %v5498_v38  ;;  %p5702_p1 = scmp.ne.s32.totalorder %s5700_s18, %s5701_s20  ;;  %p5707_p11 = scmp.lt.s32.totalorder %s5705_s22, %s5701_s20 }
 0x5d3   : > { %v3961_v17 = vadd.f32 %v7788_v26, %v3941_v34 }
 0x5d4   : > { %v4153_v28 = vsel %vm4073_vm3, %v4057_v33, %v5027_v21  ;;  %v3868_v53 = vpop.f32.mrf.mxu3  ;;  %p5703_p2 = pnand %p5702_p1, %p5988_p5  ;;  %p5708_p12 = por %p5707_p11, %p5706_p8 }
 0x5d5   : > { %4169 = vst [vmem:[%s7815_s24 + $0x58] sm:$0xff] %v4153_v28  ;;  %v4058_v36 = vadd.f32 %v4022_v42, %v3961_v17  ;;  %v3869_v16 = vadd.f32 %v3868_v53, %v3820_v14 }
 0x5d6   : > { %p5704_p4 = pneg %p5703_p2 }
 0x5d7   : > { %v4090_v10 = vmin.f32 %v4058_v36, 0.0  ;;  %v3918_v12 = vadd.f32 %v3917_v55, %v3869_v16  ;;  %vm4074_vm9 = vcmp.gt.f32.partialorder %v4058_v36, 0.0 }
 0x5d8   : > { %v3822_v29 = vpop.f32.mrf.mxu2  ;;  %p5709_p13 = pnand %p5708_p12, %p5704_p4 }
 0x5d9   : > { %v4118_v62 = vmul.f32 1.442695, %v4090_v10  ;;  %v3942_v54 = vmul.f32 %v7774_v6, %v3918_v12  ;;  %v3823_v24 = vadd.f32 %v7761_v9, %v3822_v29 }
 0x5db   : > { %5499 = vpow2.f32 %v4118_v62  ;;  %v3962_v30 = vadd.f32 %v7788_v26, %v3942_v54 }
 0x5dd   : > { %v4059_v39 = vadd.f32 %v4024_v50, %v3962_v30 }
 0x5de   : > { %v3920_v42 = vpop.f32.mrf.mxu0 }
 0x5df   : > { %v4091_v57 = vmin.f32 %v4059_v39, 0.0  ;;  %vm4075_vm0 = vcmp.gt.f32.partialorder %v4059_v39, 0.0 }
 0x5e0   : > { %v3824_v18 = vpop.f32.mrf.mxu2 }
 0x5e1   : > { %v5500_v41 = vpop.eup %5499  ;;  %v4120_v22 = vmul.f32 1.442695, %v4091_v57  ;;  %v3825_v52 = vadd.f32 %v7761_v9, %v3824_v18 }
 0x5e2   : > { %v5028_v61 = vadd.f32 -1.0, %v5500_v41 }
 0x5e3   : > { %5501 = vpow2.f32 %v4120_v22 }
 0x5e4   : > { %v3871_v51 = vpop.f32.mrf.mxu3  ;;  %v4154_v13 = vsel %vm4074_vm9, %v4058_v36, %v5028_v61 }
 0x5e5   : > { %v3872_v19 = vadd.f32 %v3871_v51, %v3823_v24  ;;  %4170 = vst [vmem:[%s7815_s24 + $0x60] sm:$0xff] %v4154_v13 }
 0x5e6   : > { %v3922_v44 = vpop.f32.mrf.mxu0 }
 0x5e7   : > { %v3921_v2 = vadd.f32 %v3920_v42, %v3872_v19 }
 0x5e9   : > { %v3943_v27 = vmul.f32 %v7774_v6, %v3921_v2  ;;  %v5502_v1 = vpop.eup %5501 }
 0x5ea   : > { %v5029_v31 = vadd.f32 -1.0, %v5502_v1 }
 0x5eb   : > { %v3963_v59 = vadd.f32 %v7788_v26, %v3943_v27 }
 0x5ec   : > { %v3873_v50 = vpop.f32.mrf.mxu3  ;;  %v4155_v45 = vsel %vm4075_vm0, %v4059_v39, %v5029_v31 }
 0x5ed   : > { %v4060_v40 = vadd.f32 %v4027_v7, %v3963_v59  ;;  %v3874_v49 = vadd.f32 %v3873_v50, %v3825_v52  ;;  %4171 = vst [vmem:[%s7815_s24 + $0x68] sm:$0xff] %v4155_v45 }
 0x5ef   : > { %v4092_v60 = vmin.f32 %v4060_v40, 0.0  ;;  %v3923_v48 = vadd.f32 %v3922_v44, %v3874_v49  ;;  %vm4076_vm1 = vcmp.gt.f32.partialorder %v4060_v40, 0.0 }
 0x5f1   : > { %v4122_v33 = vmul.f32 1.442695, %v4092_v60  ;;  %v3944_v15 = vmul.f32 %v7774_v6, %v3923_v48 }
 0x5f3   : > { %5503 = vpow2.f32 %v4122_v33  ;;  %v3964_v9 = vadd.f32 %v7788_v26, %v3944_v15 }
 0x5f5   : > { %v4061_v35 = vadd.f32 %v4029_v20, %v3964_v9 }
 0x5f7   : > { %v4093_v37 = vmin.f32 %v4061_v35, 0.0  ;;  %vm4077_vm13 = vcmp.gt.f32.partialorder %v4061_v35, 0.0 }
 0x5f9   : > { %v5504_v5 = vpop.eup %5503  ;;  %v4124_v11 = vmul.f32 1.442695, %v4093_v37 }
 0x5fa   : > { %v5030_v25 = vadd.f32 -1.0, %v5504_v5 }
 0x5fb   : > { %5505 = vpow2.f32 %v4124_v11 }
 0x5fc   : > { %v4156_v23 = vsel %vm4076_vm1, %v4060_v40, %v5030_v25 }
 0x5fd   : > { %4172 = vst [vmem:[%s7815_s24 + $0x70] sm:$0xff] %v4156_v23 }
 0x601   : > { %v5506_v6 = vpop.eup %5505 }
 0x602   : > { %v5031_v26 = vadd.f32 -1.0, %v5506_v6 }
 0x604   : > { %v4157_v47 = vsel %vm4077_vm13, %v4061_v35, %v5031_v26 }
 0x605   : > { %4173 = vst [vmem:[%s7815_s24 + $0x78] sm:$0xff] %v4157_v47 }
 0x606   : > { %5712 = shalt.err (!%p5709_p13)
}
 0x607   : > { %s5803_s29 = smov 128   ;;  %s5804_s24 = smov 8  }
 0x608   : > { %5166 = dma.vmem_to_hbm [thread:$0]  (%p5988_p5), %s4191_s1, 2048, %s4193_s30, %s4175_s15, %s5803_s29, %s5803_s29, %s5804_s24  }
 0x609 PF: > { %s8168_s23 = sld [smem:[#allocation20_spill]] }
 0x60a   : > { %s8169_s17 = sld [smem:[#allocation16_spill]] }
 0x60f   : > { %p5198_p0 = scmp.ge.s32.totalorder %s8168_s23, 2 }
 0x610   : > { %s4207_s11 = sand.u32 1, %s8169_s17  }
 0x611   : > { %p5186_p3 = pnand %p5198_p0, %p5934_p6  ;;  %s4208_s8 = scalar_lea.sflag [#allocation4], %s4207_s11 }
 0x613   : > { %p5187_p7 = pneg %p5186_p3 }
 0x615   : > { %5758 = dma.done.wait (%p5187_p7), %s4208_s8, 2048  }
 0x616   : > { %5760 = vsyncadd (%p5187_p7), %s4208_s8, 4294965248  ;;  %s31_s15 = sadd.s32 1, %s8168_s23   ;;  %s8171_s28 = sld [smem:[#allocation19_spill]] }
 0x617   : > { %p28_p9 = scmp.ge.s32.totalorder %s31_s15, 6   ;;  %s8172_s30 = sld [smem:[#allocation22_spill]] }
 0x618   : > { %s8173_s7 = sld [smem:[#allocation24_spill]]  ;;  %s8174_s25 = smov %s5767_s26 }
 0x619   : > { %s8175_s26 = smov %s5771_s27  ;;  %s8176_s27 = smov %s6003_s19 }
 0x61a   : > { %s8177_s29 = smov %s5787_s14  ;;  %30 = sbr.rel (!%p28_p9) target bundleno = 19 (0x13), region = 133 }
 0x61e   : > { %s8178_s14 = smov %s8173_s7 }
 0x61f   :  { %4214 = vsyncpa [#allocation3], 1 }
 0x620   :  { %4216 = vsyncpa [#allocation3 + $0x1], 1 }
 0x621   :  { %4217 = vsyncpa [#allocation6], 1 }
 0x622   :  { %4218 = vsyncpa [#allocation9], 1 }
 0x623   :  { %4219 = vsyncpa [#allocation4], 1 }
 0x624   :  { %4221 = vsyncpa [#allocation4 + $0x1], 1 }

</bundles_post_ra>
